<compile_context>
chip_gen: v5e
topology: v5e:2x2
jax: 0.10.0
libtpu: 0.0.40
codegen_flags: <defaults>
</compile_context>

<pallas_src>
import functools

import jax
import jax.numpy as jnp
import numpy as np
from jax.experimental import pallas as pl
from jax.experimental.pallas import tpu as pltpu

LANES = 128
NEG_SLOPE = 0.2
MASK_FILL = -1e30


def _round_up(x, m):
    return (x + m - 1) // m * m


def _pad2(a, rows, cols):
    r, c = a.shape
    return jnp.pad(a, ((0, rows - r), (0, cols - c)))


# ----------------------------------------------------------------------------
# Kernel 1: linear projection + per-node attention terms (row-tiled).
# ----------------------------------------------------------------------------
def proj_kernel(x_ref, w_ref, al_ref, ar_ref, z_ref, el_ref, er_ref):
    z = jnp.dot(x_ref[...], w_ref[...], preferred_element_type=jnp.float32)
    z_ref[...] = z
    el_ref[...] = jnp.sum(z * al_ref[...], axis=-1, keepdims=True)  # src term
    er_ref[...] = jnp.sum(z * ar_ref[...], axis=-1, keepdims=True)  # dst term


# ----------------------------------------------------------------------------
# Kernel 2: masked edge-softmax + aggregation, online-softmax over src tiles.
#   grid = (dst tiles [parallel], src tiles [arbitrary])
# ----------------------------------------------------------------------------
def attn_kernel(er_ref, el_ref, z_ref, adj_ref, b_ref, o_ref,
                m_ref, l_ref, acc_ref, *, apply_relu):
    k = pl.program_id(1)

    @pl.when(k == 0)
    def _():
        m_ref[...] = jnp.full_like(m_ref, MASK_FILL)
        l_ref[...] = jnp.zeros_like(l_ref)
        acc_ref[...] = jnp.zeros_like(acc_ref)

    # s[dst, src] = leaky_relu(er[dst] + el[src]); dst on sublanes, src on lanes.
    s = er_ref[...] + el_ref[...]                    # (TM,1)+(1,TS) -> (TM,TS)
    s = jnp.maximum(s, NEG_SLOPE * s)                # LeakyReLU(0.2)
    s = jnp.where(adj_ref[...] > 0, s, MASK_FILL)    # single mask select

    m_old = m_ref[...]
    m_new = jnp.maximum(m_old, jnp.max(s, axis=-1, keepdims=True))
    corr = jnp.exp(m_old - m_new)                    # rescale previous partials
    p = jnp.exp(s - m_new)                           # masked entries underflow to 0
    l_ref[...] = corr * l_ref[...] + jnp.sum(p, axis=-1, keepdims=True)
    acc_ref[...] = corr * acc_ref[...] + jnp.dot(
        p, z_ref[...], preferred_element_type=jnp.float32)
    m_ref[...] = m_new

    @pl.when(k == pl.num_programs(1) - 1)
    def _():
        out = acc_ref[...] * pl.reciprocal(l_ref[...], approx=True) + b_ref[...]
        if apply_relu:
            out = jnp.maximum(out, 0.0)
        o_ref[...] = out.astype(o_ref.dtype)


# ----------------------------------------------------------------------------
# One GAT layer (all feature dims already lane-padded; adj already bf16).
# ----------------------------------------------------------------------------
def gat_layer(x_p, w_p, al_p, ar_p, b_p, adj_bf16, *, apply_relu,
              tm=128, ts=128):
    n, f_in = x_p.shape
    f_out = w_p.shape[1]
    tm = min(tm, n)
    ts = min(ts, n)
    assert n % tm == 0 and n % ts == 0, "N must be divisible by the tile sizes"

    z, el, er = pl.pallas_call(
        proj_kernel,
        out_shape=(jax.ShapeDtypeStruct((n, f_out), jnp.float32),
                   jax.ShapeDtypeStruct((n, 1), jnp.float32),
                   jax.ShapeDtypeStruct((n, 1), jnp.float32)),
        grid=(n // tm,),
        in_specs=[
            pl.BlockSpec((tm, f_in), lambda i: (i, 0)),
            pl.BlockSpec((f_in, f_out), lambda i: (0, 0)),
            pl.BlockSpec((1, f_out), lambda i: (0, 0)),
            pl.BlockSpec((1, f_out), lambda i: (0, 0)),
        ],
        out_specs=(pl.BlockSpec((tm, f_out), lambda i: (i, 0)),
                   pl.BlockSpec((tm, 1), lambda i: (i, 0)),
                   pl.BlockSpec((tm, 1), lambda i: (i, 0))),
        compiler_params=pltpu.CompilerParams(
            dimension_semantics=("parallel",)),
    )(x_p, w_p, al_p, ar_p)

    # Layout-only: put the source term in lane orientation (N floats, no
    # in-kernel N x N transpose anywhere).
    el_row = el.T                                   # (1, n)

    kernel = functools.partial(attn_kernel, apply_relu=apply_relu)
    out = pl.pallas_call(
        kernel,
        out_shape=jax.ShapeDtypeStruct((n, f_out), jnp.float32),
        grid=(n // tm, n // ts),
        in_specs=[
            pl.BlockSpec((tm, 1), lambda i, k: (i, 0)),       # er  (dst tile)
            pl.BlockSpec((1, ts), lambda i, k: (0, k)),       # el  (src tile, lanes)
            pl.BlockSpec((ts, f_out), lambda i, k: (k, 0)),   # z   (src values)
            pl.BlockSpec((tm, ts), lambda i, k: (i, k)),      # adj tile (bf16)
            pl.BlockSpec((1, f_out), lambda i, k: (0, 0)),    # bias
        ],
        out_specs=pl.BlockSpec((tm, f_out), lambda i, k: (i, 0)),
        scratch_shapes=[
            pltpu.VMEM((tm, 1), jnp.float32),       # running max m
            pltpu.VMEM((tm, 1), jnp.float32),       # running denom l
            pltpu.VMEM((tm, f_out), jnp.float32),   # accumulator
        ],
        compiler_params=pltpu.CompilerParams(
            dimension_semantics=("parallel", "arbitrary")),
    )(er, el_row, z, adj_bf16, b_p)
    return out


# ----------------------------------------------------------------------------
# GAT module: GATConv(in, hid, 1, relu) -> GATConv(hid, out, 1)
# ----------------------------------------------------------------------------
def init_gat_params(key, in_size, hid_size, out_size):
    ks = jax.random.split(key, 8)

    def xavier(k, shape):
        fan_in, fan_out = shape[0], shape[-1]
        scale = np.sqrt(2.0 / (fan_in + fan_out))
        return scale * jax.random.normal(k, shape, dtype=jnp.float32)

    return {
        "w1": xavier(ks[0], (in_size, hid_size)),
        "al1": xavier(ks[1], (1, hid_size)),
        "ar1": xavier(ks[2], (1, hid_size)),
        "b1": jnp.zeros((1, hid_size), jnp.float32),
        "w2": xavier(ks[3], (hid_size, out_size)),
        "al2": xavier(ks[4], (1, out_size)),
        "ar2": xavier(ks[5], (1, out_size)),
        "b2": jnp.zeros((1, out_size), jnp.float32),
    }


@jax.jit
def gat_forward(params, adj, features):
    n, in_size = features.shape
    hid_size = params["w1"].shape[1]
    out_size = params["w2"].shape[1]
    fp_in = _round_up(in_size, LANES)
    fp_hid = _round_up(hid_size, LANES)
    fp_out = _round_up(out_size, LANES)

    # 0/1 mask is exact in bf16; halves adjacency HBM traffic / VMEM footprint.
    adj_bf16 = adj.astype(jnp.bfloat16)

    x_p = _pad2(features, n, fp_in)
    w1 = _pad2(params["w1"], fp_in, fp_hid)
    al1 = _pad2(params["al1"], 1, fp_hid)
    ar1 = _pad2(params["ar1"], 1, fp_hid)
    b1 = _pad2(params["b1"], 1, fp_hid)
    w2 = _pad2(params["w2"], fp_hid, fp_out)
    al2 = _pad2(params["al2"], 1, fp_out)
    ar2 = _pad2(params["ar2"], 1, fp_out)
    b2 = _pad2(params["b2"], 1, fp_out)

    h = gat_layer(x_p, w1, al1, ar1, b1, adj_bf16, apply_relu=True)
    h = gat_layer(h, w2, al2, ar2, b2, adj_bf16, apply_relu=False)
    return h[:, :out_size]


# ----------------------------------------------------------------------------
# Plain-JAX reference for verification.
# ----------------------------------------------------------------------------
def gat_layer_ref(x, w, al, ar, b, adj, apply_relu):
    z = x @ w
    el = jnp.sum(z * al, axis=-1)
    er = jnp.sum(z * ar, axis=-1)
    s = er[:, None] + el[None, :]
    s = jnp.where(s >= 0.0, s, 0.2 * s)
    s = jnp.where(adj > 0.0, s, -jnp.inf)
    alpha = jax.nn.softmax(s, axis=-1)
    out = alpha @ z + b
    return jnp.maximum(out, 0.0) if apply_relu else out


def gat_forward_ref(params, adj, features):
    h = gat_layer_ref(features, params["w1"], params["al1"], params["ar1"],
                      params["b1"], adj, True)
    h = gat_layer_ref(h, params["w2"], params["al2"], params["ar2"],
                      params["b2"], adj, False)
    return h


if __name__ == "__main__":
    N, IN, HID, OUT = 128, 16, 32, 8

    key = jax.random.PRNGKey(0)
    k_feat, k_adj, k_par = jax.random.split(key, 3)

    features = jax.random.normal(k_feat, (N, IN), dtype=jnp.float32)
    # Random sparse-ish graph + self-loops (every node has at least one in-edge).
    adj = (jax.random.uniform(k_adj, (N, N)) < 0.15).astype(jnp.float32)
    adj = jnp.maximum(adj, jnp.eye(N, dtype=jnp.float32))

    params = init_gat_params(k_par, IN, HID, OUT)

    out = jax.block_until_ready(gat_forward(params, adj, features))
    ref = jax.block_until_ready(gat_forward_ref(params, adj, features))

    # Tolerance covers the approximate (EUP) reciprocal in the softmax denom.
    np.testing.assert_allclose(np.asarray(out), np.asarray(ref),
                               rtol=2e-3, atol=2e-3)
    assert out.shape == (N, OUT) and out.dtype == jnp.float32
    print("KERNEL_OK")
</pallas_src>

<mosaic_0001>
module attributes {stable_mosaic.version = 11 : i64} {
  func.func @attn_kernel(%arg0: i32, %arg1: i32, %arg2: memref<128x1xf32, #tpu.memory_space<vmem>>, %arg3: memref<1x128xf32, #tpu.memory_space<vmem>>, %arg4: memref<128x128xf32, #tpu.memory_space<vmem>>, %arg5: memref<128x128xbf16, #tpu.memory_space<vmem>>, %arg6: memref<1x128xf32, #tpu.memory_space<vmem>>, %arg7: memref<128x128xf32, #tpu.memory_space<vmem>>, %arg8: memref<128x1xf32, #tpu.memory_space<vmem>>, %arg9: memref<128x1xf32, #tpu.memory_space<vmem>>, %arg10: memref<128x128xf32, #tpu.memory_space<vmem>>) attributes {dimension_semantics = [#tpu.dimension_semantics<parallel>, #tpu.dimension_semantics<arbitrary>], iteration_bounds = array<i64: 1, 1>, scalar_prefetch = 0 : i64, scratch_operands = 3 : i64, tpu.core_type = #tpu.core_type<tc>, window_params = [{transform_indices = @transform_0, window_bounds = array<i64: 128, 1>}, {transform_indices = @transform_1, window_bounds = array<i64: 1, 128>}, {transform_indices = @transform_2, window_bounds = array<i64: 128, 128>}, {transform_indices = @transform_3, window_bounds = array<i64: 128, 128>}, {pipeline_mode = #tpu.pipeline_mode<synchronous>, transform_indices = @transform_4, window_bounds = array<i64: 1, 128>}, {transform_indices = @transform_5, window_bounds = array<i64: 128, 128>}]} {
    %c0_i32 = arith.constant 0 : i32
    %0 = arith.cmpi eq, %arg1, %c0_i32 : i32
    %1 = arith.extui %0 : i1 to i32
    %c0_i32_0 = arith.constant 0 : i32
    %2 = arith.cmpi ne, %1, %c0_i32_0 : i32
    scf.if %2 {
      %cst_27 = arith.constant -1.000000e+30 : f32
      %42 = vector.broadcast %cst_27 : f32 to vector<128x1xf32>
      %c0_28 = arith.constant 0 : index
      %c0_29 = arith.constant 0 : index
      %43 = vector.load %arg8[%c0_28, %c0_29] : memref<128x1xf32, #tpu.memory_space<vmem>>, vector<128x1xf32>
      tpu.vector_store %arg8[%c0_28, %c0_29], %42 {strides = array<i32>} : memref<128x1xf32, #tpu.memory_space<vmem>>, vector<128x1xf32>,
      %cst_30 = arith.constant 0.000000e+00 : f32
      %44 = vector.broadcast %cst_30 : f32 to vector<128x1xf32>
      %c0_31 = arith.constant 0 : index
      %c0_32 = arith.constant 0 : index
      %45 = vector.load %arg9[%c0_31, %c0_32] : memref<128x1xf32, #tpu.memory_space<vmem>>, vector<128x1xf32>
      tpu.vector_store %arg9[%c0_31, %c0_32], %44 {strides = array<i32>} : memref<128x1xf32, #tpu.memory_space<vmem>>, vector<128x1xf32>,
      %cst_33 = arith.constant 0.000000e+00 : f32
      %46 = vector.broadcast %cst_33 : f32 to vector<128x128xf32>
      %c0_34 = arith.constant 0 : index
      %c0_35 = arith.constant 0 : index
      %47 = vector.load %arg10[%c0_34, %c0_35] : memref<128x128xf32, #tpu.memory_space<vmem>>, vector<128x128xf32>
      tpu.vector_store %arg10[%c0_34, %c0_35], %46 {strides = array<i32>} : memref<128x128xf32, #tpu.memory_space<vmem>>, vector<128x128xf32>,
    } else {
    }
    %c0 = arith.constant 0 : index
    %c0_1 = arith.constant 0 : index
    %3 = vector.load %arg2[%c0, %c0_1] : memref<128x1xf32, #tpu.memory_space<vmem>>, vector<128x1xf32>
    %c0_2 = arith.constant 0 : index
    %c0_3 = arith.constant 0 : index
    %4 = vector.load %arg3[%c0_2, %c0_3] : memref<1x128xf32, #tpu.memory_space<vmem>>, vector<1x128xf32>
    %5 = vector.broadcast %3 : vector<128x1xf32> to vector<128x128xf32>
    %6 = vector.broadcast %4 : vector<1x128xf32> to vector<128x128xf32>
    %7 = arith.addf %5, %6 : vector<128x128xf32>
    %cst = arith.constant 2.000000e-01 : f32
    %8 = vector.broadcast %cst : f32 to vector<128x128xf32>
    %9 = arith.mulf %8, %7 : vector<128x128xf32>
    %10 = arith.maximumf %7, %9 : vector<128x128xf32>
    %c0_4 = arith.constant 0 : index
    %c0_5 = arith.constant 0 : index
    %11 = vector.load %arg5[%c0_4, %c0_5] : memref<128x128xbf16, #tpu.memory_space<vmem>>, vector<128x128xbf16>
    %cst_6 = arith.constant 0.000000e+00 : bf16
    %12 = vector.broadcast %cst_6 : bf16 to vector<128x128xbf16>
    %13 = arith.cmpf ogt, %11, %12 : vector<128x128xbf16>
    %cst_7 = arith.constant -1.000000e+30 : f32
    %14 = vector.broadcast %cst_7 : f32 to vector<128x128xf32>
    %15 = arith.select %13, %10, %14 : vector<128x128xi1>, vector<128x128xf32>
    %c0_8 = arith.constant 0 : index
    %c0_9 = arith.constant 0 : index
    %16 = vector.load %arg8[%c0_8, %c0_9] : memref<128x1xf32, #tpu.memory_space<vmem>>, vector<128x1xf32>
    %cst_10 = arith.constant dense<0xFF800000> : vector<128xf32>
    %17 = vector.multi_reduction <maximumf>, %15, %cst_10 [1] : vector<128x128xf32> to vector<128xf32>
    %18 = vector.shape_cast %17 : vector<128xf32> to vector<128x1xf32>
    %19 = arith.maximumf %16, %18 : vector<128x1xf32>
    %20 = arith.subf %16, %19 : vector<128x1xf32>
    %21 = math.exp %20 : vector<128x1xf32>
    %22 = vector.broadcast %19 : vector<128x1xf32> to vector<128x128xf32>
    %23 = arith.subf %15, %22 : vector<128x128xf32>
    %24 = math.exp %23 : vector<128x128xf32>
    %c0_11 = arith.constant 0 : index
    %c0_12 = arith.constant 0 : index
    %25 = vector.load %arg9[%c0_11, %c0_12] : memref<128x1xf32, #tpu.memory_space<vmem>>, vector<128x1xf32>
    %26 = arith.mulf %21, %25 : vector<128x1xf32>
    %cst_13 = arith.constant dense<0.000000e+00> : vector<128xf32>
    %27 = vector.multi_reduction <add>, %24, %cst_13 [1] : vector<128x128xf32> to vector<128xf32>
    %28 = vector.shape_cast %27 : vector<128xf32> to vector<128x1xf32>
    %29 = arith.addf %26, %28 : vector<128x1xf32>
    %c0_14 = arith.constant 0 : index
    %c0_15 = arith.constant 0 : index
    %30 = vector.load %arg9[%c0_14, %c0_15] : memref<128x1xf32, #tpu.memory_space<vmem>>, vector<128x1xf32>
    tpu.vector_store %arg9[%c0_14, %c0_15], %29 {strides = array<i32>} : memref<128x1xf32, #tpu.memory_space<vmem>>, vector<128x1xf32>,
    %c0_16 = arith.constant 0 : index
    %c0_17 = arith.constant 0 : index
    %31 = vector.load %arg10[%c0_16, %c0_17] : memref<128x128xf32, #tpu.memory_space<vmem>>, vector<128x128xf32>
    %32 = vector.broadcast %21 : vector<128x1xf32> to vector<128x128xf32>
    %33 = arith.mulf %32, %31 : vector<128x128xf32>
    %c0_18 = arith.constant 0 : index
    %c0_19 = arith.constant 0 : index
    %34 = vector.load %arg4[%c0_18, %c0_19] : memref<128x128xf32, #tpu.memory_space<vmem>>, vector<128x128xf32>
    %cst_20 = arith.constant dense<0.000000e+00> : vector<128x128xf32>
    %35 = tpu.matmul %24, %34, %cst_20 {dimension_numbers = #tpu.dot_dimension_numbers<[1], [0], [0], [1], [0, 0, 1, 1], [], []>} : vector<128x128xf32>, vector<128x128xf32>, vector<128x128xf32> -> vector<128x128xf32>
    %36 = arith.addf %33, %35 : vector<128x128xf32>
    %c0_21 = arith.constant 0 : index
    %c0_22 = arith.constant 0 : index
    %37 = vector.load %arg10[%c0_21, %c0_22] : memref<128x128xf32, #tpu.memory_space<vmem>>, vector<128x128xf32>
    tpu.vector_store %arg10[%c0_21, %c0_22], %36 {strides = array<i32>} : memref<128x128xf32, #tpu.memory_space<vmem>>, vector<128x128xf32>,
    %c0_23 = arith.constant 0 : index
    %c0_24 = arith.constant 0 : index
    %38 = vector.load %arg8[%c0_23, %c0_24] : memref<128x1xf32, #tpu.memory_space<vmem>>, vector<128x1xf32>
    tpu.vector_store %arg8[%c0_23, %c0_24], %19 {strides = array<i32>} : memref<128x1xf32, #tpu.memory_space<vmem>>, vector<128x1xf32>,
    %c0_i32_25 = arith.constant 0 : i32
    %39 = arith.cmpi eq, %arg1, %c0_i32_25 : i32
    %40 = arith.extui %39 : i1 to i32
    %c0_i32_26 = arith.constant 0 : i32
    %41 = arith.cmpi ne, %40, %c0_i32_26 : i32
    scf.if %41 {
      %c0_27 = arith.constant 0 : index
      %c0_28 = arith.constant 0 : index
      %42 = vector.load %arg10[%c0_27, %c0_28] : memref<128x128xf32, #tpu.memory_space<vmem>>, vector<128x128xf32>
      %c0_29 = arith.constant 0 : index
      %c0_30 = arith.constant 0 : index
      %43 = vector.load %arg9[%c0_29, %c0_30] : memref<128x1xf32, #tpu.memory_space<vmem>>, vector<128x1xf32>
      %44 = tpu.reciprocal %43 {approx = true} : vector<128x1xf32> -> vector<128x1xf32>
      %45 = vector.broadcast %44 : vector<128x1xf32> to vector<128x128xf32>
      %46 = arith.mulf %42, %45 : vector<128x128xf32>
      %c0_31 = arith.constant 0 : index
      %c0_32 = arith.constant 0 : index
      %47 = vector.load %arg6[%c0_31, %c0_32] : memref<1x128xf32, #tpu.memory_space<vmem>>, vector<1x128xf32>
      %48 = vector.broadcast %47 : vector<1x128xf32> to vector<128x128xf32>
      %49 = arith.addf %46, %48 : vector<128x128xf32>
      %cst_33 = arith.constant 0.000000e+00 : f32
      %50 = vector.broadcast %cst_33 : f32 to vector<128x128xf32>
      %51 = arith.maximumf %49, %50 : vector<128x128xf32>
      %c0_34 = arith.constant 0 : index
      %c0_35 = arith.constant 0 : index
      %52 = vector.load %arg7[%c0_34, %c0_35] : memref<128x128xf32, #tpu.memory_space<vmem>>, vector<128x128xf32>
      tpu.vector_store %arg7[%c0_34, %c0_35], %51 {strides = array<i32>} : memref<128x128xf32, #tpu.memory_space<vmem>>, vector<128x128xf32>,
    } else {
    }
    return
  }
  func.func @transform_0(%arg0: i32, %arg1: i32) -> (i32, i32) {
    %c0_i32 = arith.constant 0 : i32
    %c0_i32_0 = arith.constant 0 : i32
    return %arg0, %c0_i32 : i32, i32
  }
  func.func @transform_1(%arg0: i32, %arg1: i32) -> (i32, i32) {
    %c0_i32 = arith.constant 0 : i32
    %c0_i32_0 = arith.constant 0 : i32
    return %c0_i32, %arg1 : i32, i32
  }
  func.func @transform_2(%arg0: i32, %arg1: i32) -> (i32, i32) {
    %c0_i32 = arith.constant 0 : i32
    %c0_i32_0 = arith.constant 0 : i32
    return %arg1, %c0_i32 : i32, i32
  }
  func.func @transform_3(%arg0: i32, %arg1: i32) -> (i32, i32) {
    %c0_i32 = arith.constant 0 : i32
    return %arg0, %arg1 : i32, i32
  }
  func.func @transform_4(%arg0: i32, %arg1: i32) -> (i32, i32) {
    %c0_i32 = arith.constant 0 : i32
    %c0_i32_0 = arith.constant 0 : i32
    %c0_i32_1 = arith.constant 0 : i32
    return %c0_i32, %c0_i32_0 : i32, i32
  }
  func.func @transform_5(%arg0: i32, %arg1: i32) -> (i32, i32) {
    %c0_i32 = arith.constant 0 : i32
    %c0_i32_0 = arith.constant 0 : i32
    return %arg0, %c0_i32 : i32, i32
  }
}

module attributes {stable_mosaic.version = 11 : i64} {
  func.func @proj_kernel(%arg0: i32, %arg1: memref<128x128xf32, #tpu.memory_space<vmem>>, %arg2: memref<128x128xf32, #tpu.memory_space<vmem>>, %arg3: memref<1x128xf32, #tpu.memory_space<vmem>>, %arg4: memref<1x128xf32, #tpu.memory_space<vmem>>, %arg5: memref<128x128xf32, #tpu.memory_space<vmem>>, %arg6: memref<128x1xf32, #tpu.memory_space<vmem>>, %arg7: memref<128x1xf32, #tpu.memory_space<vmem>>) attributes {dimension_semantics = [#tpu.dimension_semantics<parallel>], iteration_bounds = array<i64: 1>, scalar_prefetch = 0 : i64, scratch_operands = 0 : i64, tpu.core_type = #tpu.core_type<tc>, window_params = [{transform_indices = @transform_0, window_bounds = array<i64: 128, 128>}, {pipeline_mode = #tpu.pipeline_mode<synchronous>, transform_indices = @transform_1, window_bounds = array<i64: 128, 128>}, {pipeline_mode = #tpu.pipeline_mode<synchronous>, transform_indices = @transform_2, window_bounds = array<i64: 1, 128>}, {pipeline_mode = #tpu.pipeline_mode<synchronous>, transform_indices = @transform_3, window_bounds = array<i64: 1, 128>}, {transform_indices = @transform_4, window_bounds = array<i64: 128, 128>}, {transform_indices = @transform_5, window_bounds = array<i64: 128, 1>}, {transform_indices = @transform_6, window_bounds = array<i64: 128, 1>}]} {
    %c0 = arith.constant 0 : index
    %c0_0 = arith.constant 0 : index
    %0 = vector.load %arg1[%c0, %c0_0] : memref<128x128xf32, #tpu.memory_space<vmem>>, vector<128x128xf32>
    %c0_1 = arith.constant 0 : index
    %c0_2 = arith.constant 0 : index
    %1 = vector.load %arg2[%c0_1, %c0_2] : memref<128x128xf32, #tpu.memory_space<vmem>>, vector<128x128xf32>
    %cst = arith.constant dense<0.000000e+00> : vector<128x128xf32>
    %2 = tpu.matmul %0, %1, %cst {dimension_numbers = #tpu.dot_dimension_numbers<[1], [0], [0], [1], [0, 0, 1, 1], [], []>} : vector<128x128xf32>, vector<128x128xf32>, vector<128x128xf32> -> vector<128x128xf32>
    %c0_3 = arith.constant 0 : index
    %c0_4 = arith.constant 0 : index
    %3 = vector.load %arg5[%c0_3, %c0_4] : memref<128x128xf32, #tpu.memory_space<vmem>>, vector<128x128xf32>
    tpu.vector_store %arg5[%c0_3, %c0_4], %2 {strides = array<i32>} : memref<128x128xf32, #tpu.memory_space<vmem>>, vector<128x128xf32>,
    %c0_5 = arith.constant 0 : index
    %c0_6 = arith.constant 0 : index
    %4 = vector.load %arg3[%c0_5, %c0_6] : memref<1x128xf32, #tpu.memory_space<vmem>>, vector<1x128xf32>
    %5 = vector.broadcast %4 : vector<1x128xf32> to vector<128x128xf32>
    %6 = arith.mulf %2, %5 : vector<128x128xf32>
    %cst_7 = arith.constant dense<0.000000e+00> : vector<128xf32>
    %7 = vector.multi_reduction <add>, %6, %cst_7 [1] : vector<128x128xf32> to vector<128xf32>
    %8 = vector.shape_cast %7 : vector<128xf32> to vector<128x1xf32>
    %c0_8 = arith.constant 0 : index
    %c0_9 = arith.constant 0 : index
    %9 = vector.load %arg6[%c0_8, %c0_9] : memref<128x1xf32, #tpu.memory_space<vmem>>, vector<128x1xf32>
    tpu.vector_store %arg6[%c0_8, %c0_9], %8 {strides = array<i32>} : memref<128x1xf32, #tpu.memory_space<vmem>>, vector<128x1xf32>,
    %c0_10 = arith.constant 0 : index
    %c0_11 = arith.constant 0 : index
    %10 = vector.load %arg4[%c0_10, %c0_11] : memref<1x128xf32, #tpu.memory_space<vmem>>, vector<1x128xf32>
    %11 = vector.broadcast %10 : vector<1x128xf32> to vector<128x128xf32>
    %12 = arith.mulf %2, %11 : vector<128x128xf32>
    %cst_12 = arith.constant dense<0.000000e+00> : vector<128xf32>
    %13 = vector.multi_reduction <add>, %12, %cst_12 [1] : vector<128x128xf32> to vector<128xf32>
    %14 = vector.shape_cast %13 : vector<128xf32> to vector<128x1xf32>
    %c0_13 = arith.constant 0 : index
    %c0_14 = arith.constant 0 : index
    %15 = vector.load %arg7[%c0_13, %c0_14] : memref<128x1xf32, #tpu.memory_space<vmem>>, vector<128x1xf32>
    tpu.vector_store %arg7[%c0_13, %c0_14], %14 {strides = array<i32>} : memref<128x1xf32, #tpu.memory_space<vmem>>, vector<128x1xf32>,
    return
  }
  func.func @transform_0(%arg0: i32) -> (i32, i32) {
    %c0_i32 = arith.constant 0 : i32
    %c0_i32_0 = arith.constant 0 : i32
    return %arg0, %c0_i32 : i32, i32
  }
  func.func @transform_1(%arg0: i32) -> (i32, i32) {
    %c0_i32 = arith.constant 0 : i32
    %c0_i32_0 = arith.constant 0 : i32
    %c0_i32_1 = arith.constant 0 : i32
    return %c0_i32, %c0_i32_0 : i32, i32
  }
  func.func @transform_2(%arg0: i32) -> (i32, i32) {
    %c0_i32 = arith.constant 0 : i32
    %c0_i32_0 = arith.constant 0 : i32
    %c0_i32_1 = arith.constant 0 : i32
    return %c0_i32, %c0_i32_0 : i32, i32
  }
  func.func @transform_3(%arg0: i32) -> (i32, i32) {
    %c0_i32 = arith.constant 0 : i32
    %c0_i32_0 = arith.constant 0 : i32
    %c0_i32_1 = arith.constant 0 : i32
    return %c0_i32, %c0_i32_0 : i32, i32
  }
  func.func @transform_4(%arg0: i32) -> (i32, i32) {
    %c0_i32 = arith.constant 0 : i32
    %c0_i32_0 = arith.constant 0 : i32
    return %arg0, %c0_i32 : i32, i32
  }
  func.func @transform_5(%arg0: i32) -> (i32, i32) {
    %c0_i32 = arith.constant 0 : i32
    %c0_i32_0 = arith.constant 0 : i32
    return %arg0, %c0_i32 : i32, i32
  }
  func.func @transform_6(%arg0: i32) -> (i32, i32) {
    %c0_i32 = arith.constant 0 : i32
    %c0_i32_0 = arith.constant 0 : i32
    return %arg0, %c0_i32 : i32, i32
  }
}

module attributes {stable_mosaic.version = 11 : i64} {
  func.func @attn_kernel(%arg0: i32, %arg1: i32, %arg2: memref<128x1xf32, #tpu.memory_space<vmem>>, %arg3: memref<1x128xf32, #tpu.memory_space<vmem>>, %arg4: memref<128x128xf32, #tpu.memory_space<vmem>>, %arg5: memref<128x128xbf16, #tpu.memory_space<vmem>>, %arg6: memref<1x128xf32, #tpu.memory_space<vmem>>, %arg7: memref<128x128xf32, #tpu.memory_space<vmem>>, %arg8: memref<128x1xf32, #tpu.memory_space<vmem>>, %arg9: memref<128x1xf32, #tpu.memory_space<vmem>>, %arg10: memref<128x128xf32, #tpu.memory_space<vmem>>) attributes {dimension_semantics = [#tpu.dimension_semantics<parallel>, #tpu.dimension_semantics<arbitrary>], iteration_bounds = array<i64: 1, 1>, scalar_prefetch = 0 : i64, scratch_operands = 3 : i64, tpu.core_type = #tpu.core_type<tc>, window_params = [{transform_indices = @transform_0, window_bounds = array<i64: 128, 1>}, {transform_indices = @transform_1, window_bounds = array<i64: 1, 128>}, {transform_indices = @transform_2, window_bounds = array<i64: 128, 128>}, {transform_indices = @transform_3, window_bounds = array<i64: 128, 128>}, {pipeline_mode = #tpu.pipeline_mode<synchronous>, transform_indices = @transform_4, window_bounds = array<i64: 1, 128>}, {transform_indices = @transform_5, window_bounds = array<i64: 128, 128>}]} {
    %c0_i32 = arith.constant 0 : i32
    %0 = arith.cmpi eq, %arg1, %c0_i32 : i32
    %1 = arith.extui %0 : i1 to i32
    %c0_i32_0 = arith.constant 0 : i32
    %2 = arith.cmpi ne, %1, %c0_i32_0 : i32
    scf.if %2 {
      %cst_27 = arith.constant -1.000000e+30 : f32
      %42 = vector.broadcast %cst_27 : f32 to vector<128x1xf32>
      %c0_28 = arith.constant 0 : index
      %c0_29 = arith.constant 0 : index
      %43 = vector.load %arg8[%c0_28, %c0_29] : memref<128x1xf32, #tpu.memory_space<vmem>>, vector<128x1xf32>
      tpu.vector_store %arg8[%c0_28, %c0_29], %42 {strides = array<i32>} : memref<128x1xf32, #tpu.memory_space<vmem>>, vector<128x1xf32>,
      %cst_30 = arith.constant 0.000000e+00 : f32
      %44 = vector.broadcast %cst_30 : f32 to vector<128x1xf32>
      %c0_31 = arith.constant 0 : index
      %c0_32 = arith.constant 0 : index
      %45 = vector.load %arg9[%c0_31, %c0_32] : memref<128x1xf32, #tpu.memory_space<vmem>>, vector<128x1xf32>
      tpu.vector_store %arg9[%c0_31, %c0_32], %44 {strides = array<i32>} : memref<128x1xf32, #tpu.memory_space<vmem>>, vector<128x1xf32>,
      %cst_33 = arith.constant 0.000000e+00 : f32
      %46 = vector.broadcast %cst_33 : f32 to vector<128x128xf32>
      %c0_34 = arith.constant 0 : index
      %c0_35 = arith.constant 0 : index
      %47 = vector.load %arg10[%c0_34, %c0_35] : memref<128x128xf32, #tpu.memory_space<vmem>>, vector<128x128xf32>
      tpu.vector_store %arg10[%c0_34, %c0_35], %46 {strides = array<i32>} : memref<128x128xf32, #tpu.memory_space<vmem>>, vector<128x128xf32>,
    } else {
    }
    %c0 = arith.constant 0 : index
    %c0_1 = arith.constant 0 : index
    %3 = vector.load %arg2[%c0, %c0_1] : memref<128x1xf32, #tpu.memory_space<vmem>>, vector<128x1xf32>
    %c0_2 = arith.constant 0 : index
    %c0_3 = arith.constant 0 : index
    %4 = vector.load %arg3[%c0_2, %c0_3] : memref<1x128xf32, #tpu.memory_space<vmem>>, vector<1x128xf32>
    %5 = vector.broadcast %3 : vector<128x1xf32> to vector<128x128xf32>
    %6 = vector.broadcast %4 : vector<1x128xf32> to vector<128x128xf32>
    %7 = arith.addf %5, %6 : vector<128x128xf32>
    %cst = arith.constant 2.000000e-01 : f32
    %8 = vector.broadcast %cst : f32 to vector<128x128xf32>
    %9 = arith.mulf %8, %7 : vector<128x128xf32>
    %10 = arith.maximumf %7, %9 : vector<128x128xf32>
    %c0_4 = arith.constant 0 : index
    %c0_5 = arith.constant 0 : index
    %11 = vector.load %arg5[%c0_4, %c0_5] : memref<128x128xbf16, #tpu.memory_space<vmem>>, vector<128x128xbf16>
    %cst_6 = arith.constant 0.000000e+00 : bf16
    %12 = vector.broadcast %cst_6 : bf16 to vector<128x128xbf16>
    %13 = arith.cmpf ogt, %11, %12 : vector<128x128xbf16>
    %cst_7 = arith.constant -1.000000e+30 : f32
    %14 = vector.broadcast %cst_7 : f32 to vector<128x128xf32>
    %15 = arith.select %13, %10, %14 : vector<128x128xi1>, vector<128x128xf32>
    %c0_8 = arith.constant 0 : index
    %c0_9 = arith.constant 0 : index
    %16 = vector.load %arg8[%c0_8, %c0_9] : memref<128x1xf32, #tpu.memory_space<vmem>>, vector<128x1xf32>
    %cst_10 = arith.constant dense<0xFF800000> : vector<128xf32>
    %17 = vector.multi_reduction <maximumf>, %15, %cst_10 [1] : vector<128x128xf32> to vector<128xf32>
    %18 = vector.shape_cast %17 : vector<128xf32> to vector<128x1xf32>
    %19 = arith.maximumf %16, %18 : vector<128x1xf32>
    %20 = arith.subf %16, %19 : vector<128x1xf32>
    %21 = math.exp %20 : vector<128x1xf32>
    %22 = vector.broadcast %19 : vector<128x1xf32> to vector<128x128xf32>
    %23 = arith.subf %15, %22 : vector<128x128xf32>
    %24 = math.exp %23 : vector<128x128xf32>
    %c0_11 = arith.constant 0 : index
    %c0_12 = arith.constant 0 : index
    %25 = vector.load %arg9[%c0_11, %c0_12] : memref<128x1xf32, #tpu.memory_space<vmem>>, vector<128x1xf32>
    %26 = arith.mulf %21, %25 : vector<128x1xf32>
    %cst_13 = arith.constant dense<0.000000e+00> : vector<128xf32>
    %27 = vector.multi_reduction <add>, %24, %cst_13 [1] : vector<128x128xf32> to vector<128xf32>
    %28 = vector.shape_cast %27 : vector<128xf32> to vector<128x1xf32>
    %29 = arith.addf %26, %28 : vector<128x1xf32>
    %c0_14 = arith.constant 0 : index
    %c0_15 = arith.constant 0 : index
    %30 = vector.load %arg9[%c0_14, %c0_15] : memref<128x1xf32, #tpu.memory_space<vmem>>, vector<128x1xf32>
    tpu.vector_store %arg9[%c0_14, %c0_15], %29 {strides = array<i32>} : memref<128x1xf32, #tpu.memory_space<vmem>>, vector<128x1xf32>,
    %c0_16 = arith.constant 0 : index
    %c0_17 = arith.constant 0 : index
    %31 = vector.load %arg10[%c0_16, %c0_17] : memref<128x128xf32, #tpu.memory_space<vmem>>, vector<128x128xf32>
    %32 = vector.broadcast %21 : vector<128x1xf32> to vector<128x128xf32>
    %33 = arith.mulf %32, %31 : vector<128x128xf32>
    %c0_18 = arith.constant 0 : index
    %c0_19 = arith.constant 0 : index
    %34 = vector.load %arg4[%c0_18, %c0_19] : memref<128x128xf32, #tpu.memory_space<vmem>>, vector<128x128xf32>
    %cst_20 = arith.constant dense<0.000000e+00> : vector<128x128xf32>
    %35 = tpu.matmul %24, %34, %cst_20 {dimension_numbers = #tpu.dot_dimension_numbers<[1], [0], [0], [1], [0, 0, 1, 1], [], []>} : vector<128x128xf32>, vector<128x128xf32>, vector<128x128xf32> -> vector<128x128xf32>
    %36 = arith.addf %33, %35 : vector<128x128xf32>
    %c0_21 = arith.constant 0 : index
    %c0_22 = arith.constant 0 : index
    %37 = vector.load %arg10[%c0_21, %c0_22] : memref<128x128xf32, #tpu.memory_space<vmem>>, vector<128x128xf32>
    tpu.vector_store %arg10[%c0_21, %c0_22], %36 {strides = array<i32>} : memref<128x128xf32, #tpu.memory_space<vmem>>, vector<128x128xf32>,
    %c0_23 = arith.constant 0 : index
    %c0_24 = arith.constant 0 : index
    %38 = vector.load %arg8[%c0_23, %c0_24] : memref<128x1xf32, #tpu.memory_space<vmem>>, vector<128x1xf32>
    tpu.vector_store %arg8[%c0_23, %c0_24], %19 {strides = array<i32>} : memref<128x1xf32, #tpu.memory_space<vmem>>, vector<128x1xf32>,
    %c0_i32_25 = arith.constant 0 : i32
    %39 = arith.cmpi eq, %arg1, %c0_i32_25 : i32
    %40 = arith.extui %39 : i1 to i32
    %c0_i32_26 = arith.constant 0 : i32
    %41 = arith.cmpi ne, %40, %c0_i32_26 : i32
    scf.if %41 {
      %c0_27 = arith.constant 0 : index
      %c0_28 = arith.constant 0 : index
      %42 = vector.load %arg10[%c0_27, %c0_28] : memref<128x128xf32, #tpu.memory_space<vmem>>, vector<128x128xf32>
      %c0_29 = arith.constant 0 : index
      %c0_30 = arith.constant 0 : index
      %43 = vector.load %arg9[%c0_29, %c0_30] : memref<128x1xf32, #tpu.memory_space<vmem>>, vector<128x1xf32>
      %44 = tpu.reciprocal %43 {approx = true} : vector<128x1xf32> -> vector<128x1xf32>
      %45 = vector.broadcast %44 : vector<128x1xf32> to vector<128x128xf32>
      %46 = arith.mulf %42, %45 : vector<128x128xf32>
      %c0_31 = arith.constant 0 : index
      %c0_32 = arith.constant 0 : index
      %47 = vector.load %arg6[%c0_31, %c0_32] : memref<1x128xf32, #tpu.memory_space<vmem>>, vector<1x128xf32>
      %48 = vector.broadcast %47 : vector<1x128xf32> to vector<128x128xf32>
      %49 = arith.addf %46, %48 : vector<128x128xf32>
      %c0_33 = arith.constant 0 : index
      %c0_34 = arith.constant 0 : index
      %50 = vector.load %arg7[%c0_33, %c0_34] : memref<128x128xf32, #tpu.memory_space<vmem>>, vector<128x128xf32>
      tpu.vector_store %arg7[%c0_33, %c0_34], %49 {strides = array<i32>} : memref<128x128xf32, #tpu.memory_space<vmem>>, vector<128x128xf32>,
    } else {
    }
    return
  }
  func.func @transform_0(%arg0: i32, %arg1: i32) -> (i32, i32) {
    %c0_i32 = arith.constant 0 : i32
    %c0_i32_0 = arith.constant 0 : i32
    return %arg0, %c0_i32 : i32, i32
  }
  func.func @transform_1(%arg0: i32, %arg1: i32) -> (i32, i32) {
    %c0_i32 = arith.constant 0 : i32
    %c0_i32_0 = arith.constant 0 : i32
    return %c0_i32, %arg1 : i32, i32
  }
  func.func @transform_2(%arg0: i32, %arg1: i32) -> (i32, i32) {
    %c0_i32 = arith.constant 0 : i32
    %c0_i32_0 = arith.constant 0 : i32
    return %arg1, %c0_i32 : i32, i32
  }
  func.func @transform_3(%arg0: i32, %arg1: i32) -> (i32, i32) {
    %c0_i32 = arith.constant 0 : i32
    return %arg0, %arg1 : i32, i32
  }
  func.func @transform_4(%arg0: i32, %arg1: i32) -> (i32, i32) {
    %c0_i32 = arith.constant 0 : i32
    %c0_i32_0 = arith.constant 0 : i32
    %c0_i32_1 = arith.constant 0 : i32
    return %c0_i32, %c0_i32_0 : i32, i32
  }
  func.func @transform_5(%arg0: i32, %arg1: i32) -> (i32, i32) {
    %c0_i32 = arith.constant 0 : i32
    %c0_i32_0 = arith.constant 0 : i32
    return %arg0, %c0_i32 : i32, i32
  }
}

</mosaic_0001>

<bundles_post_ra>
// kernel: gat_forward.4
= control target key start
LH: loop header
LB: loop body
LE: loop exit
PB: predicated region body
PF: predicated region fallthrough
CT: control target
= control target key end

     0   :  { %vm185_vm0 = vcmask 7168   ;;  %s681_s1 = inlined_call_operand.vmem [shape: f32[128,128], index: 1, kind: input, shape index: {}]   ;;  %s682_s0 = inlined_call_operand.vmem [shape: f32[128,128], index: 0, kind: input, shape index: {}]   ;;  %s683_s2 = inlined_call_operand.vmem [shape: f32[1,128], index: 2, kind: input, shape index: {}]   ;;  %s684_s3 = inlined_call_operand.vmem [shape: f32[1,128], index: 3, kind: input, shape index: {}]   ;;  %s685_s4 = inlined_call_operand.vmem [shape: f32[128,128], index: 4, kind: output, shape index: {0}]   ;;  %s686_s6 = inlined_call_operand.vmem [shape: f32[128,1], index: 6, kind: output, shape index: {2}]   ;;  %s687_s5 = inlined_call_operand.vmem [shape: f32[128,1], index: 5, kind: output, shape index: {1}]  }
   0x1   :  { %v51_v0 = vld [vmem:[%s681_s1 + $0x78] sm:$0xff]  ;;  %v50_v1 = vld [vmem:[%s681_s1 + $0x70] sm:$0xff]  ;;  %v49_v2 = vld [vmem:[%s681_s1 + $0x68] sm:$0xff] }
   0x2   :  { %52 = vmatpush.msra.mxu0 %v51_v0  ;;  %282 = vmatpush.msra.mxu1 %v51_v0  ;;  %v48_v3 = vld [vmem:[%s681_s1 + $0x60] sm:$0xff]  ;;  %v47_v4 = vld [vmem:[%s681_s1 + $0x58] sm:$0xff]  ;;  %v46_v5 = vld [vmem:[%s681_s1 + $0x50] sm:$0xff] }
   0x3   :  { %284 = vmatpush.msra.mxu3 %v51_v0  ;;  %283 = vmatpush.msra.mxu2 %v51_v0  ;;  %v45_v6 = vld [vmem:[%s681_s1 + $0x48] sm:$0xff]  ;;  %v44_v7 = vld [vmem:[%s681_s1 + $0x40] sm:$0xff]  ;;  %v43_v8 = vld [vmem:[%s681_s1 + $0x38] sm:$0xff] }
   0x4   :  { %53 = vmatpush.msra.mxu0 %v50_v1  ;;  %285 = vmatpush.msra.mxu1 %v50_v1  ;;  %v42_v9 = vld [vmem:[%s681_s1 + $0x30] sm:$0xff]  ;;  %v41_v10 = vld [vmem:[%s681_s1 + $0x28] sm:$0xff]  ;;  %v40_v11 = vld [vmem:[%s681_s1 + $0x20] sm:$0xff] }
   0x5   :  { %287 = vmatpush.msra.mxu3 %v50_v1  ;;  %286 = vmatpush.msra.mxu2 %v50_v1  ;;  %v39_v12 = vld [vmem:[%s681_s1 + $0x18] sm:$0xff]  ;;  %v38_v13 = vld [vmem:[%s681_s1 + $0x10] sm:$0xff]  ;;  %v37_v14 = vld [vmem:[%s681_s1 + $0x8] sm:$0xff] }
   0x6   :  { %54 = vmatpush.msra.mxu0 %v49_v2  ;;  %288 = vmatpush.msra.mxu1 %v49_v2  ;;  %v36_v15 = vld [vmem:[%s681_s1] sm:$0xff]  ;;  %v21_v20 = vld [vmem:[%s682_s0 + $0x8] sm:$0xff]  ;;  %v22_v24 = vld [vmem:[%s682_s0 + $0x10] sm:$0xff] }
   0x7   :  { %290 = vmatpush.msra.mxu3 %v49_v2  ;;  %289 = vmatpush.msra.mxu2 %v49_v2  ;;  %v20_v16 = vld [vmem:[%s682_s0] sm:$0xff]  ;;  %v25_v21 = vld [vmem:[%s682_s0 + $0x28] sm:$0xff]  ;;  %v26_v25 = vld [vmem:[%s682_s0 + $0x30] sm:$0xff] }
   0x8   :  { %55 = vmatpush.msra.mxu0 %v48_v3  ;;  %291 = vmatpush.msra.mxu1 %v48_v3  ;;  %v24_v17 = vld [vmem:[%s682_s0 + $0x20] sm:$0xff]  ;;  %v33_v22 = vld [vmem:[%s682_s0 + $0x68] sm:$0xff]  ;;  %v34_v26 = vld [vmem:[%s682_s0 + $0x70] sm:$0xff] }
   0x9   :  { %293 = vmatpush.msra.mxu3 %v48_v3  ;;  %292 = vmatpush.msra.mxu2 %v48_v3  ;;  %v32_v18 = vld [vmem:[%s682_s0 + $0x60] sm:$0xff]  ;;  %v29_v23 = vld [vmem:[%s682_s0 + $0x48] sm:$0xff]  ;;  %v30_v27 = vld [vmem:[%s682_s0 + $0x50] sm:$0xff] }
   0xa   :  { %56 = vmatpush.msra.mxu0 %v47_v4  ;;  %294 = vmatpush.msra.mxu1 %v47_v4  ;;  %v28_v19 = vld [vmem:[%s682_s0 + $0x40] sm:$0xff]  ;;  %v23_v28 = vld [vmem:[%s682_s0 + $0x18] sm:$0xff] }
   0xb   :  { %296 = vmatpush.msra.mxu3 %v47_v4  ;;  %295 = vmatpush.msra.mxu2 %v47_v4  ;;  %v27_v29 = vld [vmem:[%s682_s0 + $0x38] sm:$0xff]  ;;  %v466_v32 = vld [vmem:[%s683_s2] ss:$0 sm:$0xff] }
   0xc   :  { %57 = vmatpush.msra.mxu0 %v46_v5  ;;  %297 = vmatpush.msra.mxu1 %v46_v5  ;;  %v31_v30 = vld [vmem:[%s682_s0 + $0x58] sm:$0xff]  ;;  %v471_v33 = vld [vmem:[%s684_s3] ss:$0 sm:$0xff] }
   0xd   :  { %299 = vmatpush.msra.mxu3 %v46_v5  ;;  %298 = vmatpush.msra.mxu2 %v46_v5  ;;  %v35_v31 = vld [vmem:[%s682_s0 + $0x78] sm:$0xff] }
   0xe   :  { %58 = vmatpush.msra.mxu0 %v45_v6  ;;  %300 = vmatpush.msra.mxu1 %v45_v6 }
   0xf   :  { %302 = vmatpush.msra.mxu3 %v45_v6  ;;  %301 = vmatpush.msra.mxu2 %v45_v6 }
  0x10   :  { %59 = vmatpush.msra.mxu0 %v44_v7  ;;  %303 = vmatpush.msra.mxu1 %v44_v7 }
  0x11   :  { %305 = vmatpush.msra.mxu3 %v44_v7  ;;  %304 = vmatpush.msra.mxu2 %v44_v7 }
  0x12   :  { %60 = vmatpush.msra.mxu0 %v43_v8  ;;  %306 = vmatpush.msra.mxu1 %v43_v8 }
  0x13   :  { %308 = vmatpush.msra.mxu3 %v43_v8  ;;  %307 = vmatpush.msra.mxu2 %v43_v8 }
  0x14   :  { %61 = vmatpush.msra.mxu0 %v42_v9  ;;  %309 = vmatpush.msra.mxu1 %v42_v9 }
  0x15   :  { %311 = vmatpush.msra.mxu3 %v42_v9  ;;  %310 = vmatpush.msra.mxu2 %v42_v9 }
  0x16   :  { %62 = vmatpush.msra.mxu0 %v41_v10  ;;  %312 = vmatpush.msra.mxu1 %v41_v10 }
  0x17   :  { %314 = vmatpush.msra.mxu3 %v41_v10  ;;  %313 = vmatpush.msra.mxu2 %v41_v10 }
  0x18   :  { %63 = vmatpush.msra.mxu0 %v40_v11  ;;  %315 = vmatpush.msra.mxu1 %v40_v11 }
  0x19   :  { %317 = vmatpush.msra.mxu3 %v40_v11  ;;  %316 = vmatpush.msra.mxu2 %v40_v11 }
  0x1a   :  { %64 = vmatpush.msra.mxu0 %v39_v12  ;;  %318 = vmatpush.msra.mxu1 %v39_v12 }
  0x1b   :  { %320 = vmatpush.msra.mxu3 %v39_v12  ;;  %319 = vmatpush.msra.mxu2 %v39_v12 }
  0x1c   :  { %65 = vmatpush.msra.mxu0 %v38_v13  ;;  %321 = vmatpush.msra.mxu1 %v38_v13 }
  0x1d   :  { %323 = vmatpush.msra.mxu3 %v38_v13  ;;  %322 = vmatpush.msra.mxu2 %v38_v13 }
  0x1e   :  { %66 = vmatpush.msra.mxu0 %v37_v14  ;;  %324 = vmatpush.msra.mxu1 %v37_v14 }
  0x1f   :  { %326 = vmatpush.msra.mxu3 %v37_v14  ;;  %325 = vmatpush.msra.mxu2 %v37_v14 }
  0x20   :  { %67 = vmatpush.msra.mxu0 %v36_v15  ;;  %327 = vmatpush.msra.mxu1 %v36_v15 }
  0x21   :  { %68 = vmatmul.f32.vlgmr.msra.gmra.mxu0 %v20_v16  ;;  %80 = vmatmul.f32.vlgmr.msra.gmra.mxu1 %v24_v17 }
  0x22   :  { %329 = vmatpush.msra.mxu3 %v36_v15  ;;  %328 = vmatpush.msra.mxu2 %v36_v15 }
  0x23   :  { %104 = vmatmul.f32.vlgmr.msra.gmra.mxu3 %v32_v18  ;;  %92 = vmatmul.f32.vlgmr.msra.gmra.mxu2 %v28_v19 }
  0x29   :  { %71 = vmatmul.f32.gmra.mxu0 %v21_v20  ;;  %83 = vmatmul.f32.gmra.mxu1 %v25_v21 }
  0x2b   :  { %107 = vmatmul.f32.gmra.mxu3 %v33_v22  ;;  %95 = vmatmul.f32.gmra.mxu2 %v29_v23 }
  0x31   :  { %74 = vmatmul.f32.gmra.mxu0 %v22_v24  ;;  %86 = vmatmul.f32.gmra.mxu1 %v26_v25 }
  0x33   :  { %110 = vmatmul.f32.gmra.mxu3 %v34_v26  ;;  %98 = vmatmul.f32.gmra.mxu2 %v30_v27 }
  0x39   :  { %77 = vmatmul.f32.gmra.mxu0 %v23_v28  ;;  %89 = vmatmul.f32.gmra.mxu1 %v27_v29 }
  0x3b   :  { %101 = vmatmul.f32.gmra.mxu2 %v31_v30  ;;  %113 = vmatmul.f32.gmra.mxu3 %v35_v31 }
  0x9e   :  { %v69_v34 = vpop.f32.mrf.mxu0  ;;  %v81_v35 = vpop.f32.mrf.mxu1 }
  0x9f   :  { %117 = vst [vmem:[%s685_s4] sm:$0xff] %v69_v34  ;;  %v141_v36 = vmul.f32 %v466_v32, %v81_v35  ;;  %v206_v37 = vmul.f32 %v471_v33, %v69_v34  ;;  %v137_v38 = vmul.f32 %v466_v32, %v69_v34  ;;  %v210_v39 = vmul.f32 %v471_v33, %v81_v35 }
  0xa0   :  { %121 = vst [vmem:[%s685_s4 + $0x20] sm:$0xff] %v81_v35 }
  0xa1   :  { %161 = vadd.xlane.f32.xlu2 %v141_v36  ;;  %222 = vadd.xlane.f32.xlu1 %v206_v37 }
  0xa2   :  { %153 = vadd.xlane.f32.xlu0 %v137_v38 }
  0xa6   :  { %v105_v40 = vpop.f32.mrf.mxu3  ;;  %v93_v41 = vpop.f32.mrf.mxu2 }
  0xa7   :  { %129 = vst [vmem:[%s685_s4 + $0x60] sm:$0xff] %v105_v40  ;;  %v218_v42 = vmul.f32 %v471_v33, %v105_v40  ;;  %v149_v43 = vmul.f32 %v466_v32, %v105_v40  ;;  %v72_v44 = vpop.f32.mrf.mxu0  ;;  %v84_v45 = vpop.f32.mrf.mxu1  ;;  %v145_v46 = vmul.f32 %v466_v32, %v93_v41  ;;  %v214_v48 = vmul.f32 %v471_v33, %v93_v41 }
  0xa8   :  { %125 = vst [vmem:[%s685_s4 + $0x40] sm:$0xff] %v93_v41  ;;  %v142_v53 = vmul.f32 %v466_v32, %v84_v45  ;;  %v138_v55 = vmul.f32 %v466_v32, %v72_v44  ;;  %v211_v61 = vmul.f32 %v471_v33, %v84_v45  ;;  %v207_v0 = vmul.f32 %v471_v33, %v72_v44 }
  0xa9   :  { %230 = vadd.xlane.f32.xlu2 %v210_v39  ;;  %246 = vadd.xlane.f32.xlu1 %v218_v42  ;;  %118 = vst [vmem:[%s685_s4 + $0x8] sm:$0xff] %v72_v44 }
  0xaa   :  { %177 = vadd.xlane.f32.xlu0 %v149_v43  ;;  %122 = vst [vmem:[%s685_s4 + $0x28] sm:$0xff] %v84_v45 }
  0xae   :  { %v108_v47 = vpop.f32.mrf.mxu3  ;;  %v96_v49 = vpop.f32.mrf.mxu2 }
  0xaf   :  { %130 = vst [vmem:[%s685_s4 + $0x68] sm:$0xff] %v108_v47  ;;  %v150_v50 = vmul.f32 %v466_v32, %v108_v47  ;;  %v75_v51 = vpop.f32.mrf.mxu0  ;;  %v87_v52 = vpop.f32.mrf.mxu1  ;;  %v215_v54 = vmul.f32 %v471_v33, %v96_v49  ;;  %v146_v3 = vmul.f32 %v466_v32, %v96_v49  ;;  %v219_v14 = vmul.f32 %v471_v33, %v108_v47 }
  0xb0   :  { %126 = vst [vmem:[%s685_s4 + $0x48] sm:$0xff] %v96_v49  ;;  %v139_v60 = vmul.f32 %v466_v32, %v75_v51  ;;  %v212_v2 = vmul.f32 %v471_v33, %v87_v52  ;;  %v143_v6 = vmul.f32 %v466_v32, %v87_v52  ;;  %v208_v9 = vmul.f32 %v471_v33, %v75_v51 }
  0xb1   :  { %169 = vadd.xlane.f32.xlu2 %v145_v46  ;;  %179 = vadd.xlane.f32.xlu1 %v150_v50  ;;  %119 = vst [vmem:[%s685_s4 + $0x10] sm:$0xff] %v75_v51 }
  0xb2   :  { %238 = vadd.xlane.f32.xlu0 %v214_v48  ;;  %123 = vst [vmem:[%s685_s4 + $0x30] sm:$0xff] %v87_v52 }
  0xb6   :  { %v111_v56 = vpop.f32.mrf.mxu3  ;;  %v99_v57 = vpop.f32.mrf.mxu2 }
  0xb7   :  { %131 = vst [vmem:[%s685_s4 + $0x70] sm:$0xff] %v111_v56  ;;  %v78_v58 = vpop.f32.mrf.mxu0  ;;  %v90_v59 = vpop.f32.mrf.mxu1  ;;  %v151_v1 = vmul.f32 %v466_v32, %v111_v56  ;;  %v216_v4 = vmul.f32 %v471_v33, %v99_v57  ;;  %v147_v5 = vmul.f32 %v466_v32, %v99_v57  ;;  %v220_v17 = vmul.f32 %v471_v33, %v111_v56 }
  0xb8   :  { %127 = vst [vmem:[%s685_s4 + $0x50] sm:$0xff] %v99_v57  ;;  %v213_v7 = vmul.f32 %v471_v33, %v90_v59  ;;  %v140_v8 = vmul.f32 %v466_v32, %v78_v58  ;;  %v144_v11 = vmul.f32 %v466_v32, %v90_v59  ;;  %v209_v15 = vmul.f32 %v471_v33, %v78_v58 }
  0xb9   :  { %163 = vadd.xlane.f32.xlu2 %v142_v53  ;;  %240 = vadd.xlane.f32.xlu1 %v215_v54  ;;  %120 = vst [vmem:[%s685_s4 + $0x18] sm:$0xff] %v78_v58 }
  0xba   :  { %155 = vadd.xlane.f32.xlu0 %v138_v55  ;;  %124 = vst [vmem:[%s685_s4 + $0x38] sm:$0xff] %v90_v59 }
  0xbe   :  { %v102_v62 = vpop.f32.mrf.mxu2  ;;  %v114_v63 = vpop.f32.mrf.mxu3 }
  0xbf   :  { %128 = vst [vmem:[%s685_s4 + $0x58] sm:$0xff] %v102_v62  ;;  %v148_v10 = vmul.f32 %v466_v32, %v102_v62  ;;  %v152_v12 = vmul.f32 %v466_v32, %v114_v63  ;;  %v217_v13 = vmul.f32 %v471_v33, %v102_v62  ;;  %v221_v16 = vmul.f32 %v471_v33, %v114_v63 }
  0xc0   :  { %132 = vst [vmem:[%s685_s4 + $0x78] sm:$0xff] %v114_v63 }
  0xc1   :  { %224 = vadd.xlane.f32.xlu2 %v207_v0  ;;  %157 = vadd.xlane.f32.xlu1 %v139_v60 }
  0xc2   :  { %232 = vadd.xlane.f32.xlu0 %v211_v61 }
  0xc9   :  { %181 = vadd.xlane.f32.xlu2 %v151_v1  ;;  %234 = vadd.xlane.f32.xlu1 %v212_v2 }
  0xca   :  { %171 = vadd.xlane.f32.xlu0 %v146_v3 }
  0xd1   :  { %242 = vadd.xlane.f32.xlu2 %v216_v4  ;;  %173 = vadd.xlane.f32.xlu1 %v147_v5 }
  0xd2   :  { %165 = vadd.xlane.f32.xlu0 %v143_v6 }
  0xd9   :  { %236 = vadd.xlane.f32.xlu2 %v213_v7  ;;  %159 = vadd.xlane.f32.xlu1 %v140_v8 }
  0xda   :  { %226 = vadd.xlane.f32.xlu0 %v208_v9 }
  0xe1   :  { %175 = vadd.xlane.f32.xlu2 %v148_v10  ;;  %167 = vadd.xlane.f32.xlu1 %v144_v11 }
  0xe2   :  { %183 = vadd.xlane.f32.xlu0 %v152_v12 }
  0xe9   :  { %248 = vadd.xlane.f32.xlu2 %v219_v14  ;;  %228 = vadd.xlane.f32.xlu1 %v209_v15 }
  0xea   :  { %244 = vadd.xlane.f32.xlu0 %v217_v13 }
  0xf1   :  { %252 = vadd.xlane.f32.xlu1 %v221_v16 }
  0xf2   :  { %250 = vadd.xlane.f32.xlu0 %v220_v17 }
 0x114   :  { %v162_v18 = vpop.xlane.xlu2 %161  ;;  %v223_v19 = vpop.xlane.xlu1 %222 }
 0x115   :  { %190 = vst.msk [vmem:[%s687_s5 + $0x20] sm:$0xff] %vm185_vm0, %v162_v18  ;;  %v154_v20 = vpop.xlane.xlu0 %153 }
 0x116   :  { %254 = vst.msk [vmem:[%s686_s6] sm:$0xff] %vm185_vm0, %v223_v19 }
 0x117   :  { %186 = vst.msk [vmem:[%s687_s5] sm:$0xff] %vm185_vm0, %v154_v20 }
 0x11c   :  { %v231_v21 = vpop.xlane.xlu2 %230  ;;  %v247_v22 = vpop.xlane.xlu1 %246 }
 0x11d   :  { %258 = vst.msk [vmem:[%s686_s6 + $0x20] sm:$0xff] %vm185_vm0, %v231_v21  ;;  %v178_v23 = vpop.xlane.xlu0 %177 }
 0x11e   :  { %266 = vst.msk [vmem:[%s686_s6 + $0x60] sm:$0xff] %vm185_vm0, %v247_v22 }
 0x11f   :  { %198 = vst.msk [vmem:[%s687_s5 + $0x60] sm:$0xff] %vm185_vm0, %v178_v23 }
 0x124   :  { %v170_v24 = vpop.xlane.xlu2 %169  ;;  %v180_v25 = vpop.xlane.xlu1 %179 }
 0x125   :  { %194 = vst.msk [vmem:[%s687_s5 + $0x40] sm:$0xff] %vm185_vm0, %v170_v24  ;;  %v239_v26 = vpop.xlane.xlu0 %238 }
 0x126   :  { %199 = vst.msk [vmem:[%s687_s5 + $0x68] sm:$0xff] %vm185_vm0, %v180_v25 }
 0x127   :  { %262 = vst.msk [vmem:[%s686_s6 + $0x40] sm:$0xff] %vm185_vm0, %v239_v26 }
 0x12c   :  { %v164_v27 = vpop.xlane.xlu2 %163  ;;  %v241_v28 = vpop.xlane.xlu1 %240 }
 0x12d   :  { %191 = vst.msk [vmem:[%s687_s5 + $0x28] sm:$0xff] %vm185_vm0, %v164_v27  ;;  %v156_v29 = vpop.xlane.xlu0 %155 }
 0x12e   :  { %263 = vst.msk [vmem:[%s686_s6 + $0x48] sm:$0xff] %vm185_vm0, %v241_v28 }
 0x12f   :  { %187 = vst.msk [vmem:[%s687_s5 + $0x8] sm:$0xff] %vm185_vm0, %v156_v29 }
 0x134   :  { %v225_v30 = vpop.xlane.xlu2 %224  ;;  %v158_v31 = vpop.xlane.xlu1 %157 }
 0x135   :  { %255 = vst.msk [vmem:[%s686_s6 + $0x8] sm:$0xff] %vm185_vm0, %v225_v30  ;;  %v233_v32 = vpop.xlane.xlu0 %232 }
 0x136   :  { %259 = vst.msk [vmem:[%s686_s6 + $0x28] sm:$0xff] %vm185_vm0, %v233_v32 }
 0x137   :  { %188 = vst.msk [vmem:[%s687_s5 + $0x10] sm:$0xff] %vm185_vm0, %v158_v31 }
 0x13c   :  { %v182_v33 = vpop.xlane.xlu2 %181  ;;  %v235_v34 = vpop.xlane.xlu1 %234 }
 0x13d   :  { %200 = vst.msk [vmem:[%s687_s5 + $0x70] sm:$0xff] %vm185_vm0, %v182_v33  ;;  %v172_v35 = vpop.xlane.xlu0 %171 }
 0x13e   :  { %195 = vst.msk [vmem:[%s687_s5 + $0x48] sm:$0xff] %vm185_vm0, %v172_v35 }
 0x13f   :  { %260 = vst.msk [vmem:[%s686_s6 + $0x30] sm:$0xff] %vm185_vm0, %v235_v34 }
 0x144   :  { %v243_v36 = vpop.xlane.xlu2 %242  ;;  %v174_v37 = vpop.xlane.xlu1 %173 }
 0x145   :  { %264 = vst.msk [vmem:[%s686_s6 + $0x50] sm:$0xff] %vm185_vm0, %v243_v36  ;;  %v166_v38 = vpop.xlane.xlu0 %165 }
 0x146   :  { %192 = vst.msk [vmem:[%s687_s5 + $0x30] sm:$0xff] %vm185_vm0, %v166_v38 }
 0x147   :  { %196 = vst.msk [vmem:[%s687_s5 + $0x50] sm:$0xff] %vm185_vm0, %v174_v37 }
 0x14c   :  { %v237_v39 = vpop.xlane.xlu2 %236  ;;  %v160_v40 = vpop.xlane.xlu1 %159 }
 0x14d   :  { %261 = vst.msk [vmem:[%s686_s6 + $0x38] sm:$0xff] %vm185_vm0, %v237_v39  ;;  %v227_v41 = vpop.xlane.xlu0 %226 }
 0x14e   :  { %256 = vst.msk [vmem:[%s686_s6 + $0x10] sm:$0xff] %vm185_vm0, %v227_v41 }
 0x14f   :  { %189 = vst.msk [vmem:[%s687_s5 + $0x18] sm:$0xff] %vm185_vm0, %v160_v40 }
 0x154   :  { %v176_v42 = vpop.xlane.xlu2 %175  ;;  %v168_v43 = vpop.xlane.xlu1 %167 }
 0x155   :  { %197 = vst.msk [vmem:[%s687_s5 + $0x58] sm:$0xff] %vm185_vm0, %v176_v42  ;;  %v184_v44 = vpop.xlane.xlu0 %183 }
 0x156   :  { %201 = vst.msk [vmem:[%s687_s5 + $0x78] sm:$0xff] %vm185_vm0, %v184_v44 }
 0x157   :  { %193 = vst.msk [vmem:[%s687_s5 + $0x38] sm:$0xff] %vm185_vm0, %v168_v43 }
 0x15c   :  { %v249_v45 = vpop.xlane.xlu2 %248  ;;  %v229_v46 = vpop.xlane.xlu1 %228 }
 0x15d   :  { %267 = vst.msk [vmem:[%s686_s6 + $0x68] sm:$0xff] %vm185_vm0, %v249_v45  ;;  %v245_v47 = vpop.xlane.xlu0 %244 }
 0x15e   :  { %265 = vst.msk [vmem:[%s686_s6 + $0x58] sm:$0xff] %vm185_vm0, %v245_v47 }
 0x15f   :  { %257 = vst.msk [vmem:[%s686_s6 + $0x18] sm:$0xff] %vm185_vm0, %v229_v46 }
 0x164   :  { %v253_v48 = vpop.xlane.xlu1 %252 }
 0x165   :  { %v251_v49 = vpop.xlane.xlu0 %250  ;;  %269 = vst.msk [vmem:[%s686_s6 + $0x78] sm:$0xff] %vm185_vm0, %v253_v48 }
 0x166   :  { %268 = vst.msk [vmem:[%s686_s6 + $0x70] sm:$0xff] %vm185_vm0, %v251_v49 }

// kernel: gat_forward.5
= control target key start
LH: loop header
LB: loop body
LE: loop exit
PB: predicated region body
PF: predicated region fallthrough
CT: control target
= control target key end

     0   :  { %v1257_v0 = vmov 0   ;;  %vm24_vm7 = vcmask 7168   ;;  %s1884_s0 = inlined_call_operand.vmem [shape: f32[128,1], index: 0, kind: input, shape index: {}]   ;;  %s1885_s1 = inlined_call_operand.vmem [shape: f32[1,128], index: 1, kind: input, shape index: {}]   ;;  %s1886_s3 = inlined_call_operand.vmem [shape: bf16[128,128], index: 3, kind: input, shape index: {}]   ;;  %s1887_s2 = inlined_call_operand.vmem [shape: f32[128,128], index: 2, kind: input, shape index: {}]   ;;  %s1888_s4 = inlined_call_operand.vmem [shape: f32[1,128], index: 4, kind: input, shape index: {}]   ;;  %s1889_s5 = inlined_call_operand.vmem [shape: f32[128,128], index: 5, kind: output, shape index: {}]  }
   0x1   :  { %1157 = vset.pattern.permute.xlu1 %v1257_v0  ;;  %1156 = vset.pattern.permute.xlu0 %v1257_v0  ;;  %v75_v1 = vld [vmem:[%s1884_s0 + $0x10] sm:$0xff]  ;;  %v73_v2 = vld [vmem:[%s1884_s0] sm:$0xff]  ;;  %v76_v4 = vld [vmem:[%s1884_s0 + $0x18] sm:$0xff] }
   0x2   :  { %102 = vperm.xlu1 %1157, %v75_v1   ;;  %92 = vperm.xlu0 %1156, %v73_v2   ;;  %v77_v3 = vld [vmem:[%s1884_s0 + $0x20] sm:$0xff]  ;;  %v74_v5 = vld [vmem:[%s1884_s0 + $0x8] sm:$0xff]  ;;  %v80_v7 = vld [vmem:[%s1884_s0 + $0x38] sm:$0xff] }
   0x3   :  { %1158 = vset.pattern.permute.xlu2 %v1257_v0  ;;  %v78_v6 = vld [vmem:[%s1884_s0 + $0x28] sm:$0xff]  ;;  %v79_v8 = vld [vmem:[%s1884_s0 + $0x30] sm:$0xff]  ;;  %v81_v9 = vld [vmem:[%s1884_s0 + $0x40] sm:$0xff] }
   0x4   :  { %112 = vperm.xlu2 %1158, %v77_v3   ;;  %v83_v10 = vld [vmem:[%s1884_s0 + $0x50] sm:$0xff]  ;;  %v82_v11 = vld [vmem:[%s1884_s0 + $0x48] sm:$0xff]  ;;  %v84_v12 = vld [vmem:[%s1884_s0 + $0x58] sm:$0xff] }
   0x5   :  { %v86_v13 = vld [vmem:[%s1884_s0 + $0x68] sm:$0xff]  ;;  %v85_v14 = vld [vmem:[%s1884_s0 + $0x60] sm:$0xff]  ;;  %v87_v15 = vld [vmem:[%s1884_s0 + $0x70] sm:$0xff] }
   0x6   :  { %v88_v16 = vld [vmem:[%s1884_s0 + $0x78] sm:$0xff]  ;;  %v1341_v17 = vld [vmem:[%s1885_s1] ss:$0 sm:$0xff]  ;;  %v1098_v18 = vld [vmem:[%s1886_s3 + $0x8] sm:$0xff]  }
   0x7   :  { %v1067_v19 = vld [vmem:[%s1886_s3] sm:$0xff]   ;;  %v1072_v23 = vunpack.c.l.bf16 %v1098_v18  ;;  %v1355_v30 = vld [vmem:[%s1886_s3 + $0x10] sm:$0xff]   ;;  %v1100_v47 = vld [vmem:[%s1886_s3 + $0x18] sm:$0xff]   ;;  %v1073_v53 = vunpack.c.h.bf16 %v1098_v18 }
   0x8   :  { %v1068_v24 = vunpack.c.l.bf16 %v1067_v19  ;;  %v1076_v34 = vunpack.c.l.bf16 %v1355_v30  ;;  %v1069_v39 = vunpack.c.h.bf16 %v1067_v19  ;;  %v1081_v52 = vunpack.c.h.bf16 %v1100_v47  ;;  %v1381_v1 = vld [vmem:[%s1886_s3 + $0x28] sm:$0xff]   ;;  %v1101_v2 = vld [vmem:[%s1886_s3 + $0x20] sm:$0xff]  }
   0x9   :  { %vm255_vm0 = vcmp.gt.f32.partialorder %v1072_v23, 0.0  ;;  %v1080_v54 = vunpack.c.l.bf16 %v1100_v47  ;;  %vm256_vm5 = vcmp.gt.f32.partialorder %v1073_v53, 0.0  ;;  %v1104_v47 = vld [vmem:[%s1886_s3 + $0x38] sm:$0xff]  }
   0xa   :  { %107 = vperm.xlu1 %1157, %v76_v4   ;;  %97 = vperm.xlu0 %1156, %v74_v5   ;;  %vm253_vm1 = vcmp.gt.f32.partialorder %v1068_v24, 0.0  ;;  %vm257_vm2 = vcmp.gt.f32.partialorder %v1076_v34, 0.0  ;;  %vm254_vm3 = vcmp.gt.f32.partialorder %v1069_v39, 0.0  ;;  %vm260_vm4 = vcmp.gt.f32.partialorder %v1081_v52, 0.0 }
   0xb   :  { %vm259_vm6 = vcmp.gt.f32.partialorder %v1080_v54, 0.0  ;;  %v1097_v52 = vunpack.c.h.bf16 %v1104_v47 }
   0xc   :  { %117 = vperm.xlu2 %1158, %v78_v6   ;;  %v1077_v6 = vunpack.c.h.bf16 %v1355_v30 }
   0xd   :  { %vm268_vm15 = vcmp.gt.f32.partialorder %v1097_v52, 0.0 }
   0xe   :  { %vm258_vm8 = vcmp.gt.f32.partialorder %v1077_v6, 0.0 }
  0x12   :  { %127 = vperm.xlu1 %1157, %v80_v7   ;;  %122 = vperm.xlu0 %1156, %v79_v8  }
  0x14   :  { %132 = vperm.xlu2 %1158, %v81_v9   ;;  %v1088_v9 = vunpack.c.l.bf16 %v1381_v1 }
  0x16   :  { %vm263_vm9 = vcmp.gt.f32.partialorder %v1088_v9, 0.0 }
  0x1a   :  { %142 = vperm.xlu1 %1157, %v83_v10   ;;  %137 = vperm.xlu0 %1156, %v82_v11   ;;  %v1085_v10 = vunpack.c.h.bf16 %v1101_v2 }
  0x1c   :  { %147 = vperm.xlu2 %1158, %v84_v12   ;;  %vm262_vm10 = vcmp.gt.f32.partialorder %v1085_v10, 0.0 }
  0x22   :  { %157 = vperm.xlu1 %1157, %v86_v13   ;;  %152 = vperm.xlu0 %1156, %v85_v14   ;;  %v1258_v13 = vmov -1e+30  }
  0x23   :  { %25 = vst.msk [vmem:[#allocation2] sm:$0xff] %vm24_vm7, %v1258_v13 }
  0x24   :  { %162 = vperm.xlu2 %1158, %v87_v15   ;;  %26 = vst.msk [vmem:[#allocation2 + $0x8] sm:$0xff] %vm24_vm7, %v1258_v13 }
  0x25   :  { %27 = vst.msk [vmem:[#allocation2 + $0x10] sm:$0xff] %vm24_vm7, %v1258_v13 }
  0x26   :  { %28 = vst.msk [vmem:[#allocation2 + $0x18] sm:$0xff] %vm24_vm7, %v1258_v13 }
  0x27   :  { %29 = vst.msk [vmem:[#allocation2 + $0x20] sm:$0xff] %vm24_vm7, %v1258_v13 }
  0x28   :  { %30 = vst.msk [vmem:[#allocation2 + $0x28] sm:$0xff] %vm24_vm7, %v1258_v13 }
  0x29   :  { %31 = vst.msk [vmem:[#allocation2 + $0x30] sm:$0xff] %vm24_vm7, %v1258_v13 }
  0x2a   :  { %167 = vperm.xlu0 %1156, %v88_v16   ;;  %32 = vst.msk [vmem:[#allocation2 + $0x38] sm:$0xff] %vm24_vm7, %v1258_v13 }
  0x2b   :  { %33 = vst.msk [vmem:[#allocation2 + $0x40] sm:$0xff] %vm24_vm7, %v1258_v13  ;;  %v1480_v10 = vld [vmem:[#allocation2 + $0x8] sm:$0xff] }
  0x2c   :  { %34 = vst.msk [vmem:[#allocation2 + $0x48] sm:$0xff] %vm24_vm7, %v1258_v13 }
  0x2d   :  { %35 = vst.msk [vmem:[#allocation2 + $0x50] sm:$0xff] %vm24_vm7, %v1258_v13 }
  0x2e   :  { %36 = vst.msk [vmem:[#allocation2 + $0x58] sm:$0xff] %vm24_vm7, %v1258_v13  ;;  %v289_v9 = vld [vmem:[#allocation2 + $0x20] sm:$0xff] }
  0x2f   :  { %37 = vst.msk [vmem:[#allocation2 + $0x60] sm:$0xff] %vm24_vm7, %v1258_v13 }
  0x30   :  { %38 = vst.msk [vmem:[#allocation2 + $0x68] sm:$0xff] %vm24_vm7, %v1258_v13 }
  0x31   :  { %39 = vst.msk [vmem:[#allocation2 + $0x70] sm:$0xff] %vm24_vm7, %v1258_v13 }
  0x32   :  { %40 = vst.msk [vmem:[#allocation2 + $0x78] sm:$0xff] %vm24_vm7, %v1258_v13 }
  0x5e   :  { %v113_v20 = vpop.permute.xlu2 %112 }
  0x5f   :  { %v177_v25 = vadd.f32 %v1341_v17, %v113_v20 }
  0x61   :  { %v193_v31 = vmul.f32 0.2, %v177_v25 }
  0x63   :  { %v209_v41 = vmax.f32 %v177_v25, %v193_v31 }
  0x65   :  { %v1366_v45 = vsel %vm257_vm2, %v209_v41, -1e+30 }
  0x66   :  { %v118_v42 = vpop.permute.xlu2 %117 }
  0x67   :  { %v178_v57 = vadd.f32 %v1341_v17, %v118_v42 }
  0x69   :  { %v194_v0 = vmul.f32 0.2, %v178_v57 }
  0x6b   :  { %v210_v15 = vmax.f32 %v178_v57, %v194_v0  ;;  %v1471_v0 = vld [vmem:[#allocation2] sm:$0xff] }
  0x6d   :  { %v1408_v24 = vsel %vm258_vm8, %v210_v15, -1e+30  ;;  %v1489_v15 = vld [vmem:[#allocation2 + $0x38] sm:$0xff] }
  0x6e   :  { %v133_v61 = vpop.permute.xlu2 %132 }
  0x6f   :  { %v181_v14 = vadd.f32 %v1341_v17, %v133_v61  ;;  %v1096_v61 = vunpack.c.l.bf16 %v1104_v47 }
  0x74   :  { %v103_v21 = vpop.permute.xlu1 %102  ;;  %v93_v22 = vpop.permute.xlu0 %92 }
  0x75   :  { %v175_v26 = vadd.f32 %v1341_v17, %v103_v21  ;;  %v173_v27 = vadd.f32 %v1341_v17, %v93_v22  ;;  %v1103_v21 = vld [vmem:[%s1886_s3 + $0x30] sm:$0xff]   ;;  %v197_v22 = vmul.f32 0.2, %v181_v14 }
  0x76   :  { %v148_v23 = vpop.permute.xlu2 %147  ;;  %v1093_v30 = vunpack.c.h.bf16 %v1103_v21  ;;  %v1092_v31 = vunpack.c.l.bf16 %v1103_v21 }
  0x77   :  { %v191_v28 = vmul.f32 0.2, %v175_v26  ;;  %v189_v29 = vmul.f32 0.2, %v173_v27  ;;  %v184_v34 = vadd.f32 %v1341_v17, %v148_v23 }
  0x78   :  { %vm266_vm12 = vcmp.gt.f32.partialorder %v1093_v30, 0.0  ;;  %vm265_vm13 = vcmp.gt.f32.partialorder %v1092_v31, 0.0  ;;  %v1512_v30 = vld [vmem:[#allocation2 + $0x48] sm:$0xff] }
  0x79   :  { %v207_v32 = vmax.f32 %v175_v26, %v191_v28  ;;  %v205_v33 = vmax.f32 %v173_v27, %v189_v29  ;;  %v1084_v27 = vunpack.c.l.bf16 %v1101_v2  ;;  %v200_v42 = vmul.f32 0.2, %v184_v34 }
  0x7b   :  { %v1358_v35 = vsel %vm255_vm0, %v207_v32, -1e+30  ;;  %v1360_v36 = vsel %vm253_vm1, %v205_v33, -1e+30  ;;  %vm261_vm11 = vcmp.gt.f32.partialorder %v1084_v27, 0.0  ;;  %vm267_vm0 = vcmp.gt.f32.partialorder %v1096_v61, 0.0 }
  0x7c   :  { %v108_v37 = vpop.permute.xlu1 %107  ;;  %305 = vmax.xlane.f32.xlu0 %v1358_v35  ;;  %301 = vmax.xlane.f32.xlu1 %v1360_v36  ;;  %v98_v38 = vpop.permute.xlu0 %97 }
  0x7d   :  { %v174_v40 = vadd.f32 %v1341_v17, %v98_v38  ;;  %v176_v43 = vadd.f32 %v1341_v17, %v108_v37  ;;  %v213_v37 = vmax.f32 %v181_v14, %v197_v22 }
  0x7f   :  { %v190_v44 = vmul.f32 0.2, %v174_v40  ;;  %v192_v48 = vmul.f32 0.2, %v176_v43 }
  0x81   :  { %v206_v46 = vmax.f32 %v174_v40, %v190_v44  ;;  %v208_v60 = vmax.f32 %v176_v43, %v192_v48  ;;  %v1428_v43 = vsel %vm261_vm11, %v213_v37, -1e+30  ;;  %v163_v48 = vpop.permute.xlu2 %162 }
  0x82   :  { %v187_v54 = vadd.f32 %v1341_v17, %v163_v48 }
  0x83   :  { %v1371_v49 = vsel %vm254_vm3, %v206_v46, -1e+30  ;;  %v1388_v4 = vsel %vm256_vm5, %v208_v60, -1e+30 }
  0x84   :  { %v128_v50 = vpop.permute.xlu1 %127  ;;  %309 = vmax.xlane.f32.xlu1 %v1366_v45  ;;  %303 = vmax.xlane.f32.xlu2 %v1371_v49  ;;  %v123_v51 = vpop.permute.xlu0 %122 }
  0x85   :  { %v180_v55 = vadd.f32 %v1341_v17, %v128_v50  ;;  %v179_v56 = vadd.f32 %v1341_v17, %v123_v51  ;;  %v1089_v51 = vunpack.c.h.bf16 %v1381_v1  ;;  %v287_v1 = vld [vmem:[#allocation2 + $0x10] sm:$0xff] }
  0x87   :  { %v196_v58 = vmul.f32 0.2, %v180_v55  ;;  %v195_v59 = vmul.f32 0.2, %v179_v56  ;;  %vm264_vm14 = vcmp.gt.f32.partialorder %v1089_v51, 0.0 }
  0x89   :  { %v212_v62 = vmax.f32 %v180_v55, %v196_v58  ;;  %v211_v63 = vmax.f32 %v179_v56, %v195_v59  ;;  %v216_v56 = vmax.f32 %v184_v34, %v200_v42  ;;  %v203_v58 = vmul.f32 0.2, %v187_v54  ;;  %v1536_v42 = vld [vmem:[#allocation2 + $0x60] sm:$0xff] }
  0x8b   :  { %v1386_v3 = vsel %vm260_vm4, %v212_v62, -1e+30  ;;  %v1390_v5 = vsel %vm259_vm6, %v211_v63, -1e+30  ;;  %v1446_v59 = vsel %vm264_vm14, %v216_v56, -1e+30  ;;  %v219_v62 = vmax.f32 %v187_v54, %v203_v58 }
  0x8c   :  { %v143_v7 = vpop.permute.xlu1 %142  ;;  %315 = vmax.xlane.f32.xlu1 %v1386_v3  ;;  %307 = vmax.xlane.f32.xlu2 %v1388_v4  ;;  %v138_v8 = vpop.permute.xlu0 %137  ;;  %v1556_v56 = vld [vmem:[#allocation2 + $0x58] sm:$0xff] }
  0x8d   :  { %v183_v11 = vadd.f32 %v1341_v17, %v143_v7  ;;  %313 = vmax.xlane.f32.xlu0 %v1390_v5  ;;  %v182_v12 = vadd.f32 %v1341_v17, %v138_v8  ;;  %v1452_v63 = vsel %vm267_vm0, %v219_v62, -1e+30 }
  0x8f   :  { %v199_v16 = vmul.f32 0.2, %v183_v11  ;;  %v198_v18 = vmul.f32 0.2, %v182_v12 }
  0x91   :  { %v215_v19 = vmax.f32 %v183_v11, %v199_v16  ;;  %v214_v20 = vmax.f32 %v182_v12, %v198_v18  ;;  %v1491_v16 = vld [vmem:[#allocation2 + $0x18] sm:$0xff]  ;;  %v1493_v18 = vld [vmem:[#allocation2 + $0x30] sm:$0xff] }
  0x93   :  { %v1411_v25 = vsel %vm263_vm9, %v215_v19, -1e+30  ;;  %v1413_v26 = vsel %vm262_vm10, %v214_v20, -1e+30 }
  0x94   :  { %v158_v28 = vpop.permute.xlu1 %157  ;;  %321 = vmax.xlane.f32.xlu1 %v1411_v25  ;;  %311 = vmax.xlane.f32.xlu2 %v1408_v24  ;;  %v153_v29 = vpop.permute.xlu0 %152 }
  0x95   :  { %v186_v32 = vadd.f32 %v1341_v17, %v158_v28  ;;  %319 = vmax.xlane.f32.xlu0 %v1413_v26  ;;  %v185_v33 = vadd.f32 %v1341_v17, %v153_v29  ;;  %v1508_v28 = vld [vmem:[#allocation2 + $0x50] sm:$0xff]  ;;  %v1510_v29 = vld [vmem:[#allocation2 + $0x28] sm:$0xff] }
  0x97   :  { %v202_v38 = vmul.f32 0.2, %v186_v32  ;;  %v201_v39 = vmul.f32 0.2, %v185_v33 }
  0x99   :  { %v218_v40 = vmax.f32 %v186_v32, %v202_v38  ;;  %v217_v41 = vmax.f32 %v185_v33, %v201_v39 }
  0x9b   :  { %v1431_v44 = vsel %vm266_vm12, %v218_v40, -1e+30  ;;  %v1433_v46 = vsel %vm265_vm13, %v217_v41, -1e+30  ;;  %v1532_v40 = vld [vmem:[#allocation2 + $0x68] sm:$0xff]  ;;  %v1534_v41 = vld [vmem:[#allocation2 + $0x40] sm:$0xff] }
  0x9c   :  { %327 = vmax.xlane.f32.xlu1 %v1431_v44  ;;  %317 = vmax.xlane.f32.xlu2 %v1428_v43  ;;  %v168_v50 = vpop.permute.xlu0 %167 }
  0x9d   :  { %325 = vmax.xlane.f32.xlu0 %v1433_v46  ;;  %v188_v53 = vadd.f32 %v1341_v17, %v168_v50  ;;  %v1259_v17 = vmov 0.0  }
  0x9e   :  { %41 = vst.msk [vmem:[#allocation3] sm:$0xff] %vm24_vm7, %v1259_v17 }
  0x9f   :  { %v204_v55 = vmul.f32 0.2, %v188_v53  ;;  %42 = vst.msk [vmem:[#allocation3 + $0x8] sm:$0xff] %vm24_vm7, %v1259_v17 }
  0xa0   :  { %43 = vst.msk [vmem:[#allocation3 + $0x10] sm:$0xff] %vm24_vm7, %v1259_v17 }
  0xa1   :  { %v220_v57 = vmax.f32 %v188_v53, %v204_v55  ;;  %44 = vst.msk [vmem:[#allocation3 + $0x18] sm:$0xff] %vm24_vm7, %v1259_v17 }
  0xa2   :  { %45 = vst.msk [vmem:[#allocation3 + $0x20] sm:$0xff] %vm24_vm7, %v1259_v17 }
  0xa3   :  { %v1448_v60 = vsel %vm268_vm15, %v220_v57, -1e+30  ;;  %46 = vst.msk [vmem:[#allocation3 + $0x28] sm:$0xff] %vm24_vm7, %v1259_v17  ;;  %v1558_v57 = vld [vmem:[#allocation2 + $0x78] sm:$0xff] }
  0xa4   :  { %323 = vmax.xlane.f32.xlu2 %v1446_v59  ;;  %47 = vst.msk [vmem:[#allocation3 + $0x30] sm:$0xff] %vm24_vm7, %v1259_v17 }
  0xa5   :  { %331 = vmax.xlane.f32.xlu0 %v1448_v60  ;;  %48 = vst.msk [vmem:[#allocation3 + $0x38] sm:$0xff] %vm24_vm7, %v1259_v17 }
  0xa6   :  { %49 = vst.msk [vmem:[#allocation3 + $0x40] sm:$0xff] %vm24_vm7, %v1259_v17 }
  0xa7   :  { %50 = vst.msk [vmem:[#allocation3 + $0x48] sm:$0xff] %vm24_vm7, %v1259_v17 }
  0xa8   :  { %51 = vst.msk [vmem:[#allocation3 + $0x50] sm:$0xff] %vm24_vm7, %v1259_v17 }
  0xa9   :  { %52 = vst.msk [vmem:[#allocation3 + $0x58] sm:$0xff] %vm24_vm7, %v1259_v17 }
  0xaa   :  { %53 = vst.msk [vmem:[#allocation3 + $0x60] sm:$0xff] %vm24_vm7, %v1259_v17 }
  0xab   :  { %54 = vst.msk [vmem:[#allocation3 + $0x68] sm:$0xff] %vm24_vm7, %v1259_v17 }
  0xac   :  { %329 = vmax.xlane.f32.xlu2 %v1452_v63  ;;  %55 = vst.msk [vmem:[#allocation3 + $0x70] sm:$0xff] %vm24_vm7, %v1259_v17 }
  0xad   :  { %56 = vst.msk [vmem:[#allocation3 + $0x78] sm:$0xff] %vm24_vm7, %v1259_v17 }
  0xef   :  { %v302_v2 = vpop.xlane.xlu1 %301  ;;  %v306_v6 = vpop.xlane.xlu0 %305 }
  0xf0   :  { %v1474_v7 = vmax.f32 %v1471_v0, %v302_v2  ;;  %v335_v8 = vmax.f32 %v287_v1, %v306_v6 }
  0xf2   :  { %847 = vst.msk [vmem:[#allocation2] sm:$0xff] %vm24_vm7, %v1474_v7  ;;  %399 = vperm.xlu1 %1157, %v1474_v7   ;;  %409 = vperm.xlu0 %1156, %v335_v8   ;;  %v351_v39 = vsub.f32 %v287_v1, %v335_v8  ;;  %v349_v6 = vsub.f32 %v1471_v0, %v1474_v7 }
  0xf3   :  { %849 = vst.msk [vmem:[#allocation2 + $0x10] sm:$0xff] %vm24_vm7, %v335_v8 }
  0xf4   :  { %v369_v47 = vmul.f32 1.442695, %v351_v39  ;;  %v365_v0 = vmul.f32 1.442695, %v349_v6  ;;  %v743_v6 = vld [vmem:[%s1887_s2 + $0x48] sm:$0xff] }
  0xf6   :  { %1161 = vpow2.f32 %v369_v47 }
  0xf7   :  { %v310_v11 = vpop.xlane.xlu1 %309  ;;  %v304_v12 = vpop.xlane.xlu2 %303 }
  0xf8   :  { %v337_v13 = vmax.f32 %v289_v9, %v310_v11  ;;  %v1483_v14 = vmax.f32 %v1480_v10, %v304_v12  ;;  %v1580_v11 = vld [vmem:[#allocation2 + $0x70] sm:$0xff] }
  0xfa   :  { %851 = vst.msk [vmem:[#allocation2 + $0x20] sm:$0xff] %vm24_vm7, %v337_v13  ;;  %404 = vperm.xlu2 %1158, %v1483_v14   ;;  %419 = vperm.xlu0 %1156, %v337_v13   ;;  %v353_v55 = vsub.f32 %v289_v9, %v337_v13  ;;  %v350_v9 = vsub.f32 %v1480_v10, %v1483_v14 }
  0xfb   :  { %848 = vst.msk [vmem:[#allocation2 + $0x8] sm:$0xff] %vm24_vm7, %v1483_v14 }
  0xfc   :  { %v373_v58 = vmul.f32 1.442695, %v353_v55  ;;  %v1563_v1 = vpop.eup %1161  ;;  %v367_v13 = vmul.f32 1.442695, %v350_v9  ;;  %v741_v9 = vld [vmem:[%s1887_s2 + $0x38] sm:$0xff] }
  0xfe   :  { %1163 = vpow2.f32 %v373_v58 }
  0xff   :  { %v316_v19 = vpop.xlane.xlu1 %315  ;;  %v308_v20 = vpop.xlane.xlu2 %307  ;;  %1165 = vpow2.f32 %v365_v0 }
 0x100   :  { %v340_v21 = vmax.f32 %v1489_v15, %v316_v19  ;;  %v1497_v22 = vmax.f32 %v1491_v16, %v308_v20  ;;  %v314_v23 = vpop.xlane.xlu0 %313 }
 0x101   :  { %v1500_v27 = vmax.f32 %v1493_v18, %v314_v23 }
 0x102   :  { %854 = vst.msk [vmem:[#allocation2 + $0x38] sm:$0xff] %vm24_vm7, %v340_v21  ;;  %414 = vperm.xlu1 %1157, %v1497_v22   ;;  %434 = vperm.xlu0 %1156, %v340_v21   ;;  %v356_v8 = vsub.f32 %v1489_v15, %v340_v21  ;;  %v352_v15 = vsub.f32 %v1491_v16, %v1497_v22 }
 0x103   :  { %850 = vst.msk [vmem:[#allocation2 + $0x18] sm:$0xff] %vm24_vm7, %v1497_v22 }
 0x104   :  { %853 = vst.msk [vmem:[#allocation2 + $0x30] sm:$0xff] %vm24_vm7, %v1500_v27  ;;  %v379_v7 = vmul.f32 1.442695, %v356_v8  ;;  %v1585_v20 = vpop.eup %1163  ;;  %v371_v21 = vmul.f32 1.442695, %v352_v15  ;;  %v742_v8 = vld [vmem:[%s1887_s2 + $0x40] sm:$0xff] }
 0x105   :  { %v1598_v16 = vpop.eup %1165 }
 0x106   :  { %1167 = vpow2.f32 %v379_v7  ;;  %v740_v7 = vld [vmem:[%s1887_s2 + $0x30] sm:$0xff] }
 0x107   :  { %v322_v31 = vpop.xlane.xlu1 %321  ;;  %v312_v32 = vpop.xlane.xlu2 %311  ;;  %1169 = vpow2.f32 %v367_v13  ;;  %v739_v13 = vld [vmem:[%s1887_s2 + $0x28] sm:$0xff] }
 0x108   :  { %v1515_v33 = vmax.f32 %v1508_v28, %v322_v31  ;;  %v1518_v34 = vmax.f32 %v1510_v29, %v312_v32  ;;  %v320_v37 = vpop.xlane.xlu0 %319  ;;  %1171 = vpow2.f32 %v371_v21  ;;  %v735_v21 = vld [vmem:[%s1887_s2 + $0x8] sm:$0xff] }
 0x109   :  { %v1521_v38 = vmax.f32 %v1512_v30, %v320_v37  ;;  %v355_v37 = vsub.f32 %v1493_v18, %v1500_v27 }
 0x10a   :  { %857 = vst.msk [vmem:[#allocation2 + $0x50] sm:$0xff] %vm24_vm7, %v1515_v33  ;;  %424 = vperm.xlu2 %1158, %v1518_v34   ;;  %449 = vperm.xlu0 %1156, %v1515_v33   ;;  %v359_v10 = vsub.f32 %v1508_v28, %v1515_v33  ;;  %v354_v14 = vsub.f32 %v1510_v29, %v1518_v34  ;;  %v749_v29 = vld [vmem:[%s1887_s2 + $0x78] sm:$0xff] }
 0x10b   :  { %852 = vst.msk [vmem:[#allocation2 + $0x28] sm:$0xff] %vm24_vm7, %v1518_v34  ;;  %429 = vperm.xlu1 %1157, %v1500_v27   ;;  %750 = vmatpush.msra.mxu0 %v749_v29  ;;  %v377_v18 = vmul.f32 1.442695, %v355_v37 }
 0x10c   :  { %856 = vst.msk [vmem:[#allocation2 + $0x48] sm:$0xff] %vm24_vm7, %v1521_v38  ;;  %v385_v23 = vmul.f32 1.442695, %v359_v10  ;;  %v375_v22 = vmul.f32 1.442695, %v354_v14  ;;  %v1600_v31 = vpop.eup %1167  ;;  %1105 = vmatpush.msra.mxu1 %v749_v29  ;;  %1106 = vmatpush.msra.mxu2 %v749_v29  ;;  %v737_v10 = vld [vmem:[%s1887_s2 + $0x18] sm:$0xff] }
 0x10d   :  { %v1602_v32 = vpop.eup %1169  ;;  %1107 = vmatpush.msra.mxu3 %v749_v29  ;;  %v736_v14 = vld [vmem:[%s1887_s2 + $0x10] sm:$0xff] }
 0x10e   :  { %1173 = vpow2.f32 %v385_v23  ;;  %v1616_v34 = vpop.eup %1171  ;;  %v734_v23 = vld [vmem:[%s1887_s2] sm:$0xff] }
 0x10f   :  { %v328_v48 = vpop.xlane.xlu1 %327  ;;  %v318_v50 = vpop.xlane.xlu2 %317  ;;  %1175 = vpow2.f32 %v375_v22 }
 0x110   :  { %v1539_v51 = vmax.f32 %v1532_v40, %v328_v48  ;;  %v1542_v52 = vmax.f32 %v1534_v41, %v318_v50  ;;  %v326_v53 = vpop.xlane.xlu0 %325  ;;  %1177 = vpow2.f32 %v377_v18  ;;  %v358_v48 = vsub.f32 %v1512_v30, %v1521_v38 }
 0x111   :  { %v1545_v54 = vmax.f32 %v1536_v42, %v326_v53 }
 0x112   :  { %860 = vst.msk [vmem:[#allocation2 + $0x68] sm:$0xff] %vm24_vm7, %v1539_v51  ;;  %439 = vperm.xlu2 %1158, %v1542_v52   ;;  %464 = vperm.xlu0 %1156, %v1539_v51   ;;  %v362_v28 = vsub.f32 %v1532_v40, %v1539_v51  ;;  %v357_v33 = vsub.f32 %v1534_v41, %v1542_v52  ;;  %v748_v41 = vld [vmem:[%s1887_s2 + $0x70] sm:$0xff]  ;;  %v747_v51 = vld [vmem:[%s1887_s2 + $0x68] sm:$0xff] }
 0x113   :  { %855 = vst.msk [vmem:[#allocation2 + $0x40] sm:$0xff] %vm24_vm7, %v1542_v52  ;;  %444 = vperm.xlu1 %1157, %v1521_v38   ;;  %751 = vmatpush.msra.mxu0 %v748_v41  ;;  %v383_v52 = vmul.f32 1.442695, %v358_v48  ;;  %v746_v38 = vld [vmem:[%s1887_s2 + $0x60] sm:$0xff] }
 0x114   :  { %859 = vst.msk [vmem:[#allocation2 + $0x60] sm:$0xff] %vm24_vm7, %v1545_v54  ;;  %v391_v27 = vmul.f32 1.442695, %v362_v28  ;;  %v381_v39 = vmul.f32 1.442695, %v357_v33  ;;  %v1618_v40 = vpop.eup %1173  ;;  %1108 = vmatpush.msra.mxu1 %v748_v41  ;;  %1109 = vmatpush.msra.mxu2 %v748_v41 }
 0x115   :  { %v1620_v47 = vpop.eup %1175  ;;  %1110 = vmatpush.msra.mxu3 %v748_v41  ;;  %752 = vmatpush.msra.mxu0 %v747_v51 }
 0x116   :  { %1179 = vpow2.f32 %v391_v27  ;;  %1111 = vmatpush.msra.mxu1 %v747_v51  ;;  %v1635_v53 = vpop.eup %1177  ;;  %1112 = vmatpush.msra.mxu2 %v747_v51 }
 0x117   :  { %v324_v61 = vpop.xlane.xlu2 %323  ;;  %1181 = vpow2.f32 %v381_v39  ;;  %1113 = vmatpush.msra.mxu3 %v747_v51  ;;  %753 = vmatpush.msra.mxu0 %v746_v38 }
 0x118   :  { %v1561_v62 = vmax.f32 %v1556_v56, %v324_v61  ;;  %v332_v17 = vpop.xlane.xlu0 %331  ;;  %1114 = vmatpush.msra.mxu1 %v746_v38  ;;  %v744_v61 = vld [vmem:[%s1887_s2 + $0x50] sm:$0xff]  ;;  %1183 = vpow2.f32 %v383_v52  ;;  %1115 = vmatpush.msra.mxu2 %v746_v38 }
 0x119   :  { %v1566_v2 = vmax.f32 %v1558_v57, %v332_v17  ;;  %1116 = vmatpush.msra.mxu3 %v746_v38 }
 0x11a   :  { %858 = vst.msk [vmem:[#allocation2 + $0x58] sm:$0xff] %vm24_vm7, %v1561_v62  ;;  %454 = vperm.xlu2 %1158, %v1561_v62   ;;  %650 = vperm.xlu0 %1156, %v1563_v1   ;;  %v360_v50 = vsub.f32 %v1556_v56, %v1561_v62  ;;  %v745_v56 = vld [vmem:[%s1887_s2 + $0x58] sm:$0xff]  ;;  %v361_v62 = vsub.f32 %v1536_v42, %v1545_v54 }
 0x11b   :  { %862 = vst.msk [vmem:[#allocation2 + $0x78] sm:$0xff] %vm24_vm7, %v1566_v2  ;;  %459 = vperm.xlu1 %1157, %v1545_v54   ;;  %754 = vmatpush.msra.mxu0 %v745_v56 }
 0x11c   :  { %v387_v30 = vmul.f32 1.442695, %v360_v50  ;;  %v1640_v55 = vpop.eup %1179  ;;  %1117 = vmatpush.msra.mxu1 %v745_v56  ;;  %1118 = vmatpush.msra.mxu2 %v745_v56  ;;  %v389_v42 = vmul.f32 1.442695, %v361_v62 }
 0x11d   :  { %v1645_v58 = vpop.eup %1181  ;;  %755 = vmatpush.msra.mxu0 %v744_v61  ;;  %1119 = vmatpush.msra.mxu3 %v745_v56 }
 0x11e   :  { %1185 = vpow2.f32 %v387_v30  ;;  %1120 = vmatpush.msra.mxu1 %v744_v61  ;;  %1121 = vmatpush.msra.mxu2 %v744_v61 }
 0x11f   :  { %v330_v12 = vpop.xlane.xlu2 %329  ;;  %756 = vmatpush.msra.mxu0 %v743_v6  ;;  %1122 = vmatpush.msra.mxu3 %v744_v61  ;;  %1187 = vpow2.f32 %v389_v42 }
 0x120   :  { %v1583_v19 = vmax.f32 %v1580_v11, %v330_v12  ;;  %1123 = vmatpush.msra.mxu1 %v743_v6  ;;  %1124 = vmatpush.msra.mxu2 %v743_v6  ;;  %v364_v12 = vsub.f32 %v1558_v57, %v1566_v2  ;;  %v738_v57 = vld [vmem:[%s1887_s2 + $0x20] sm:$0xff] }
 0x121   :  { %757 = vmatpush.msra.mxu0 %v742_v8  ;;  %1125 = vmatpush.msra.mxu3 %v743_v6 }
 0x122   :  { %861 = vst.msk [vmem:[#allocation2 + $0x70] sm:$0xff] %vm24_vm7, %v1583_v19  ;;  %469 = vperm.xlu2 %1158, %v1583_v19   ;;  %660 = vperm.xlu0 %1156, %v1585_v20   ;;  %v363_v17 = vsub.f32 %v1580_v11, %v1583_v19  ;;  %v1666_v11 = vpop.eup %1183  ;;  %v395_v19 = vmul.f32 1.442695, %v364_v12 }
 0x123   :  { %474 = vperm.xlu1 %1157, %v1566_v2   ;;  %758 = vmatpush.msra.mxu0 %v741_v9 }
 0x124   :  { %v393_v54 = vmul.f32 1.442695, %v363_v17  ;;  %v1668_v0 = vpop.eup %1185  ;;  %1126 = vmatpush.msra.mxu1 %v742_v8  ;;  %1127 = vmatpush.msra.mxu2 %v742_v8 }
 0x125   :  { %759 = vmatpush.msra.mxu0 %v740_v7  ;;  %1128 = vmatpush.msra.mxu3 %v742_v8  ;;  %v1683_v2 = vpop.eup %1187 }
 0x126   :  { %1189 = vpow2.f32 %v393_v54  ;;  %1129 = vmatpush.msra.mxu1 %v741_v9  ;;  %1130 = vmatpush.msra.mxu2 %v741_v9 }
 0x127   :  { %760 = vmatpush.msra.mxu0 %v739_v13  ;;  %1131 = vmatpush.msra.mxu3 %v741_v9  ;;  %1191 = vpow2.f32 %v395_v19 }
 0x128   :  { %1132 = vmatpush.msra.mxu1 %v740_v7  ;;  %1133 = vmatpush.msra.mxu2 %v740_v7 }
 0x129   :  { %761 = vmatpush.msra.mxu0 %v738_v57  ;;  %1134 = vmatpush.msra.mxu3 %v740_v7 }
 0x12a   :  { %640 = vperm.xlu2 %1158, %v1598_v16   ;;  %675 = vperm.xlu0 %1156, %v1600_v31  }
 0x12b   :  { %645 = vperm.xlu1 %1157, %v1602_v32   ;;  %1135 = vmatpush.msra.mxu1 %v739_v13 }
 0x12c   :  { %v1685_v15 = vpop.eup %1189  ;;  %762 = vmatpush.msra.mxu0 %v737_v10  ;;  %1136 = vmatpush.msra.mxu2 %v739_v13 }
 0x12d   :  { %1138 = vmatpush.msra.mxu1 %v738_v57  ;;  %1137 = vmatpush.msra.mxu3 %v739_v13  ;;  %v1701_v22 = vpop.eup %1191 }
 0x12e   :  { %763 = vmatpush.msra.mxu0 %v736_v14  ;;  %1139 = vmatpush.msra.mxu2 %v738_v57 }
 0x12f   :  { %1141 = vmatpush.msra.mxu1 %v737_v10  ;;  %1140 = vmatpush.msra.mxu3 %v738_v57 }
 0x130   :  { %764 = vmatpush.msra.mxu0 %v735_v21  ;;  %1142 = vmatpush.msra.mxu2 %v737_v10 }
 0x131   :  { %1144 = vmatpush.msra.mxu1 %v736_v14  ;;  %1143 = vmatpush.msra.mxu3 %v737_v10 }
 0x132   :  { %655 = vperm.xlu2 %1158, %v1616_v34   ;;  %690 = vperm.xlu0 %1156, %v1618_v40  }
 0x133   :  { %665 = vperm.xlu1 %1157, %v1620_v47   ;;  %765 = vmatpush.msra.mxu0 %v734_v23 }
 0x134   :  { %1145 = vmatpush.msra.mxu2 %v736_v14  ;;  %1147 = vmatpush.msra.mxu1 %v735_v21 }
 0x135   :  { %1146 = vmatpush.msra.mxu3 %v736_v14 }
 0x136   :  { %1148 = vmatpush.msra.mxu2 %v735_v21  ;;  %1150 = vmatpush.msra.mxu1 %v734_v23 }
 0x137   :  { %1149 = vmatpush.msra.mxu3 %v735_v21 }
 0x138   :  { %1151 = vmatpush.msra.mxu2 %v734_v23 }
 0x139   :  { %1152 = vmatpush.msra.mxu3 %v734_v23 }
 0x13a   :  { %705 = vperm.xlu0 %1156, %v1640_v55   ;;  %670 = vperm.xlu2 %1158, %v1635_v53  }
 0x13b   :  { %680 = vperm.xlu1 %1157, %v1645_v58  }
 0x142   :  { %685 = vperm.xlu2 %1158, %v1666_v11  }
 0x143   :  { %695 = vperm.xlu1 %1157, %v1668_v0  }
 0x14a   :  { %700 = vperm.xlu2 %1158, %v1683_v2  }
 0x14b   :  { %710 = vperm.xlu1 %1157, %v1685_v15  }
 0x152   :  { %715 = vperm.xlu2 %1158, %v1701_v22  }
 0x154   :  { %v405_v37 = vpop.permute.xlu2 %404 }
 0x155   :  { %v478_v41 = vsub.f32 %v1371_v49, %v405_v37 }
 0x157   :  { %v495_v50 = vmul.f32 1.442695, %v478_v41 }
 0x164   :  { %v400_v28 = vpop.permute.xlu1 %399  ;;  %v425_v29 = vpop.permute.xlu2 %424 }
 0x165   :  { %v477_v33 = vsub.f32 %v1360_v36, %v400_v28  ;;  %v410_v18 = vpop.permute.xlu0 %409  ;;  %v482_v38 = vsub.f32 %v1408_v24, %v425_v29 }
 0x166   :  { %v479_v27 = vsub.f32 %v1358_v35, %v410_v18 }
 0x167   :  { %v493_v39 = vmul.f32 1.442695, %v477_v33  ;;  %v503_v35 = vmul.f32 1.442695, %v482_v38 }
 0x168   :  { %v497_v48 = vmul.f32 1.442695, %v479_v27 }
 0x169   :  { %1193 = vpow2.f32 %v493_v39 }
 0x16a   :  { %1195 = vpow2.f32 %v497_v48 }
 0x16b   :  { %1197 = vpow2.f32 %v495_v50 }
 0x16c   :  { %v440_v51 = vpop.permute.xlu2 %439 }
 0x16d   :  { %v485_v52 = vsub.f32 %v1428_v43, %v440_v51  ;;  %v420_v30 = vpop.permute.xlu0 %419 }
 0x16e   :  { %v481_v56 = vsub.f32 %v1366_v45, %v420_v30 }
 0x16f   :  { %v1194_v61 = vpop.eup %1193  ;;  %v509_v36 = vmul.f32 1.442695, %v485_v52 }
 0x170   :  { %v501_v62 = vmul.f32 1.442695, %v481_v56  ;;  %766 = vmatmul.f32.vlgmr.msra.gmra.mxu0 %v1194_v61  ;;  %557 = vadd.xlane.f32.xlu0 %v1194_v61  ;;  %v1196_v49 = vpop.eup %1195 }
 0x171   :  { %1199 = vpow2.f32 %v509_v36  ;;  %v1198_v8 = vpop.eup %1197 }
 0x172   :  { %1201 = vpow2.f32 %v501_v62 }
 0x173   :  { %1203 = vpow2.f32 %v503_v35 }
 0x174   :  { %v415_v17 = vpop.permute.xlu1 %414  ;;  %v455_v54 = vpop.permute.xlu2 %454 }
 0x175   :  { %v480_v6 = vsub.f32 %v1388_v4, %v415_v17  ;;  %561 = vadd.xlane.f32.xlu1 %v1196_v49  ;;  %v435_v43 = vpop.permute.xlu0 %434  ;;  %v488_v4 = vsub.f32 %v1446_v59, %v455_v54 }
 0x176   :  { %v484_v7 = vsub.f32 %v1386_v3, %v435_v43 }
 0x177   :  { %v1200_v24 = vpop.eup %1199  ;;  %v499_v42 = vmul.f32 1.442695, %v480_v6  ;;  %v515_v21 = vmul.f32 1.442695, %v488_v4 }
 0x178   :  { %v1202_v45 = vpop.eup %1201  ;;  %769 = vmatmul.f32.gmra.mxu0 %v1198_v8  ;;  %790 = vmatmul.f32.vlgmr.msra.gmra.mxu2 %v1200_v24  ;;  %v507_v10 = vmul.f32 1.442695, %v484_v7 }
 0x179   :  { %1205 = vpow2.f32 %v499_v42  ;;  %778 = vmatmul.f32.vlgmr.msra.gmra.mxu1 %v1202_v45  ;;  %v1204_v9 = vpop.eup %1203 }
 0x17b   :  { %559 = vadd.xlane.f32.xlu2 %v1198_v8 }
 0x17c   :  { %v470_v23 = vpop.permute.xlu2 %469 }
 0x17d   :  { %v430_v12 = vpop.permute.xlu1 %429  ;;  %567 = vadd.xlane.f32.xlu1 %v1204_v9  ;;  %v450_v57 = vpop.permute.xlu0 %449  ;;  %v491_v59 = vsub.f32 %v1452_v63, %v470_v23 }
 0x17e   :  { %v483_v13 = vsub.f32 %v1390_v5, %v430_v12  ;;  %v487_v3 = vsub.f32 %v1411_v25, %v450_v57  ;;  %v525_v12 = vld [vmem:[#allocation3] sm:$0xff] }
 0x17f   :  { %v1206_v19 = vpop.eup %1205  ;;  %v521_v39 = vmul.f32 1.442695, %v491_v59  ;;  %v530_v59 = vld [vmem:[#allocation3 + $0x28] sm:$0xff] }
 0x180   :  { %v505_v14 = vmul.f32 1.442695, %v483_v13  ;;  %563 = vadd.xlane.f32.xlu0 %v1206_v19  ;;  %772 = vmatmul.f32.gmra.mxu0 %v1196_v49  ;;  %v513_v29 = vmul.f32 1.442695, %v487_v3  ;;  %v541_v13 = vmul.f32 %v1598_v16, %v525_v12  ;;  %v536_v12 = vld [vmem:[#allocation3 + $0x58] sm:$0xff] }
 0x181   :  { %781 = vmatmul.f32.gmra.mxu1 %v1204_v9 }
 0x182   :  { %1207 = vpow2.f32 %v505_v14 }
 0x183   :  { %565 = vadd.xlane.f32.xlu2 %v1202_v45  ;;  %1209 = vpow2.f32 %v507_v10  ;;  %v527_v10 = vld [vmem:[#allocation3 + $0x10] sm:$0xff] }
 0x184   :  { %1211 = vpow2.f32 %v515_v21  ;;  %v1722_v35 = vpop.permute.xlu2 %640  ;;  %v543_v21 = vmul.f32 %v1563_v1, %v527_v10 }
 0x185   :  { %v445_v37 = vpop.permute.xlu1 %444  ;;  %573 = vadd.xlane.f32.xlu1 %v1200_v24  ;;  %v465_v18 = vpop.permute.xlu0 %464 }
 0x186   :  { %v486_v5 = vsub.f32 %v1413_v26, %v445_v37  ;;  %v490_v25 = vsub.f32 %v1431_v44, %v465_v18  ;;  %v526_v37 = vld [vmem:[#allocation3 + $0x8] sm:$0xff]  ;;  %v528_v18 = vld [vmem:[#allocation3 + $0x18] sm:$0xff] }
 0x187   :  { %v544_v1 = vmul.f32 %v1616_v34, %v528_v18  ;;  %v531_v34 = vld [vmem:[#allocation3 + $0x30] sm:$0xff] }
 0x188   :  { %v1208_v28 = vpop.eup %1207  ;;  %v511_v33 = vmul.f32 1.442695, %v486_v5  ;;  %775 = vmatmul.f32.gmra.mxu0 %v1206_v19  ;;  %v519_v50 = vmul.f32 1.442695, %v490_v25  ;;  %v542_v5 = vmul.f32 %v1602_v32, %v526_v37  ;;  %v534_v37 = vld [vmem:[#allocation3 + $0x48] sm:$0xff] }
 0x189   :  { %569 = vadd.xlane.f32.xlu0 %v1208_v28  ;;  %784 = vmatmul.f32.gmra.mxu1 %v1208_v28  ;;  %v1210_v27 = vpop.eup %1209 }
 0x18a   :  { %1213 = vpow2.f32 %v511_v33  ;;  %v1212_v41 = vpop.eup %1211  ;;  %v546_v33 = vmul.f32 %v1620_v47, %v530_v59 }
 0x18b   :  { %571 = vadd.xlane.f32.xlu2 %v1210_v27  ;;  %1215 = vpow2.f32 %v513_v29 }
 0x18c   :  { %1217 = vpow2.f32 %v521_v39  ;;  %v1728_v17 = vpop.permute.xlu2 %655 }
 0x18d   :  { %v460_v48 = vpop.permute.xlu1 %459  ;;  %579 = vadd.xlane.f32.xlu1 %v1212_v41  ;;  %v1720_v62 = vpop.permute.xlu0 %650 }
 0x18e   :  { %v489_v26 = vsub.f32 %v1433_v46, %v460_v48 }
 0x190   :  { %v1214_v63 = vpop.eup %1213  ;;  %v517_v51 = vmul.f32 1.442695, %v489_v26 }
 0x191   :  { %575 = vadd.xlane.f32.xlu0 %v1214_v63  ;;  %787 = vmatmul.f32.gmra.mxu1 %v1210_v27  ;;  %v1216_v52 = vpop.eup %1215 }
 0x192   :  { %1219 = vpow2.f32 %v517_v51  ;;  %793 = vmatmul.f32.gmra.mxu2 %v1214_v63  ;;  %v1218_v30 = vpop.eup %1217  ;;  %v533_v63 = vld [vmem:[#allocation3 + $0x40] sm:$0xff] }
 0x193   :  { %577 = vadd.xlane.f32.xlu2 %v1216_v52  ;;  %1221 = vpow2.f32 %v519_v50 }
 0x194   :  { %v1734_v8 = vpop.permute.xlu2 %670 }
 0x195   :  { %v475_v38 = vpop.permute.xlu1 %474  ;;  %585 = vadd.xlane.f32.xlu1 %v1218_v30 }
 0x196   :  { %v492_v44 = vsub.f32 %v1448_v60, %v475_v38  ;;  %v1726_v60 = vpop.permute.xlu0 %660 }
 0x198   :  { %v1220_v56 = vpop.eup %1219  ;;  %v523_v61 = vmul.f32 1.442695, %v492_v44 }
 0x199   :  { %581 = vadd.xlane.f32.xlu0 %v1220_v56  ;;  %802 = vmatmul.f32.vlgmr.msra.gmra.mxu3 %v1220_v56  ;;  %v1222_v46 = vpop.eup %1221 }
 0x19a   :  { %1223 = vpow2.f32 %v523_v61  ;;  %796 = vmatmul.f32.gmra.mxu2 %v1216_v52  ;;  %v549_v52 = vmul.f32 %v1645_v58, %v533_v63  ;;  %v532_v61 = vld [vmem:[#allocation3 + $0x38] sm:$0xff] }
 0x19b   :  { %583 = vadd.xlane.f32.xlu2 %v1222_v46  ;;  %v548_v58 = vmul.f32 %v1600_v31, %v532_v61  ;;  %v535_v31 = vld [vmem:[#allocation3 + $0x50] sm:$0xff] }
 0x19c   :  { %v1740_v45 = vpop.permute.xlu2 %685 }
 0x19d   :  { %v1724_v49 = vpop.permute.xlu1 %645 }
 0x19e   :  { %v1732_v43 = vpop.permute.xlu0 %675 }
 0x1a0   :  { %v1224_v36 = vpop.eup %1223 }
 0x1a1   :  { %587 = vadd.xlane.f32.xlu0 %v1224_v36  ;;  %805 = vmatmul.f32.gmra.mxu3 %v1222_v46 }
 0x1a2   :  { %799 = vmatmul.f32.gmra.mxu2 %v1212_v41  ;;  %v529_v41 = vld [vmem:[#allocation3 + $0x20] sm:$0xff] }
 0x1a3   :  { %v545_v50 = vmul.f32 %v1585_v20, %v529_v41  ;;  %v547_v20 = vmul.f32 %v1635_v53, %v531_v34 }
 0x1a4   :  { %v1746_v7 = vpop.permute.xlu2 %700 }
 0x1a5   :  { %v1730_v6 = vpop.permute.xlu1 %665 }
 0x1a6   :  { %v1738_v42 = vpop.permute.xlu0 %690 }
 0x1a9   :  { %808 = vmatmul.f32.gmra.mxu3 %v1218_v30 }
 0x1ac   :  { %v1751_v14 = vpop.permute.xlu2 %715 }
 0x1ad   :  { %v1736_v24 = vpop.permute.xlu1 %680 }
 0x1ae   :  { %v1744_v9 = vpop.permute.xlu0 %705 }
 0x1b1   :  { %811 = vmatmul.f32.gmra.mxu3 %v1224_v36 }
 0x1b5   :  { %v1742_v54 = vpop.permute.xlu1 %695 }
 0x1bd   :  { %v1748_v4 = vpop.permute.xlu1 %710 }
 0x1e3   :  { %v558_v19 = vpop.xlane.xlu0 %557 }
 0x1e4   :  { %v589_v57 = vadd.f32 %v558_v19, %v541_v13 }
 0x1e6   :  { %606 = vst.msk [vmem:[#allocation3] sm:$0xff] %vm24_vm7, %v589_v57 }
 0x1e8   :  { %v562_v23 = vpop.xlane.xlu1 %561 }
 0x1e9   :  { %v591_v3 = vadd.f32 %v562_v23, %v543_v21  ;;  %v552_v23 = vmul.f32 %v1668_v0, %v536_v12  ;;  %v539_v0 = vld [vmem:[#allocation3 + $0x70] sm:$0xff] }
 0x1eb   :  { %608 = vst.msk [vmem:[#allocation3 + $0x10] sm:$0xff] %vm24_vm7, %v591_v3 }
 0x1ed   :  { %v882_v28 = vld [vmem:[#allocation3] sm:$0xff] }
 0x1ee   :  { %v560_v29 = vpop.xlane.xlu2 %559  ;;  %1225 = vrcp.f32 %v882_v28 }
 0x1ef   :  { %v590_v16 = vadd.f32 %v560_v29, %v542_v5  ;;  %v550_v29 = vmul.f32 %v1666_v11, %v534_v37  ;;  %v537_v11 = vld [vmem:[#allocation3 + $0x60] sm:$0xff] }
 0x1f0   :  { %v568_v27 = vpop.xlane.xlu1 %567 }
 0x1f1   :  { %607 = vst.msk [vmem:[#allocation3 + $0x8] sm:$0xff] %vm24_vm7, %v590_v16  ;;  %v594_v39 = vadd.f32 %v568_v27, %v546_v33  ;;  %v551_v27 = vmul.f32 %v1618_v40, %v535_v31  ;;  %v538_v40 = vld [vmem:[#allocation3 + $0x68] sm:$0xff] }
 0x1f2   :  { %v884_v25 = vld [vmem:[#allocation3 + $0x10] sm:$0xff]  ;;  %v554_v34 = vmul.f32 %v1640_v55, %v538_v40 }
 0x1f3   :  { %611 = vst.msk [vmem:[#allocation3 + $0x28] sm:$0xff] %vm24_vm7, %v594_v39  ;;  %v564_v48 = vpop.xlane.xlu0 %563  ;;  %1227 = vrcp.f32 %v884_v25 }
 0x1f4   :  { %v1226_v32 = vpop.eup %1225  ;;  %v592_v26 = vadd.f32 %v564_v48, %v544_v1  ;;  %v555_v48 = vmul.f32 %v1685_v15, %v539_v0 }
 0x1f5   :  { %916 = vperm.xlu0 %1156, %v1226_v32  }
 0x1f6   :  { %609 = vst.msk [vmem:[#allocation3 + $0x18] sm:$0xff] %vm24_vm7, %v592_v26  ;;  %v566_v47 = vpop.xlane.xlu2 %565  ;;  %v1784_v31 = vpop.f32.mrf.mxu1 }
 0x1f7   :  { %v593_v51 = vadd.f32 %v566_v47, %v545_v50 }
 0x1f8   :  { %v574_v30 = vpop.xlane.xlu1 %573  ;;  %v883_v38 = vld [vmem:[#allocation3 + $0x8] sm:$0xff] }
 0x1f9   :  { %v1228_v44 = vpop.eup %1227  ;;  %610 = vst.msk [vmem:[#allocation3 + $0x20] sm:$0xff] %vm24_vm7, %v593_v51  ;;  %v597_v56 = vadd.f32 %v574_v30, %v549_v52  ;;  %1229 = vrcp.f32 %v883_v38  ;;  %v553_v51 = vmul.f32 %v1683_v2, %v537_v11 }
 0x1fa   :  { %926 = vperm.xlu2 %1158, %v1228_v44   ;;  %v887_v46 = vld [vmem:[#allocation3 + $0x28] sm:$0xff] }
 0x1fb   :  { %614 = vst.msk [vmem:[#allocation3 + $0x40] sm:$0xff] %vm24_vm7, %v597_v56  ;;  %1231 = vrcp.f32 %v887_v46  ;;  %v540_v46 = vld [vmem:[#allocation3 + $0x78] sm:$0xff] }
 0x1fc   :  { %v570_v36 = vpop.xlane.xlu0 %569  ;;  %v556_v12 = vmul.f32 %v1701_v22, %v540_v46 }
 0x1fd   :  { %v595_v13 = vadd.f32 %v570_v36, %v547_v20  ;;  %v885_v19 = vld [vmem:[#allocation3 + $0x18] sm:$0xff] }
 0x1fe   :  { %v572_v57 = vpop.xlane.xlu2 %571  ;;  %1233 = vrcp.f32 %v885_v19 }
 0x1ff   :  { %v1230_v10 = vpop.eup %1229  ;;  %612 = vst.msk [vmem:[#allocation3 + $0x30] sm:$0xff] %vm24_vm7, %v595_v13  ;;  %v596_v21 = vadd.f32 %v572_v57, %v548_v58 }
 0x200   :  { %v580_v3 = vpop.xlane.xlu1 %579  ;;  %921 = vperm.xlu1 %1157, %v1230_v10   ;;  %v886_v59 = vld [vmem:[#allocation3 + $0x20] sm:$0xff] }
 0x201   :  { %v1232_v53 = vpop.eup %1231  ;;  %613 = vst.msk [vmem:[#allocation3 + $0x38] sm:$0xff] %vm24_vm7, %v596_v21  ;;  %v600_v5 = vadd.f32 %v580_v3, %v552_v23  ;;  %1235 = vrcp.f32 %v886_v59  ;;  %v767_v59 = vpop.f32.mrf.mxu0 }
 0x202   :  { %941 = vperm.xlu2 %1158, %v1232_v53   ;;  %v890_v28 = vld [vmem:[#allocation3 + $0x40] sm:$0xff] }
 0x203   :  { %617 = vst.msk [vmem:[#allocation3 + $0x58] sm:$0xff] %vm24_vm7, %v600_v5  ;;  %1237 = vrcp.f32 %v890_v28  ;;  %v791_v5 = vpop.f32.mrf.mxu2 }
 0x204   :  { %v1234_v16 = vpop.eup %1233  ;;  %v576_v33 = vpop.xlane.xlu0 %575 }
 0x205   :  { %v598_v18 = vadd.f32 %v576_v33, %v550_v29  ;;  %931 = vperm.xlu0 %1156, %v1234_v16   ;;  %v720_v29 = vmul.f32 0.0, %v1720_v62  ;;  %v1790_v33 = vld [vmem:[%s1888_s4] ss:$0 sm:$0xff] }
 0x206   :  { %v578_v39 = vpop.xlane.xlu2 %577  ;;  %v888_v1 = vld [vmem:[#allocation3 + $0x30] sm:$0xff] }
 0x207   :  { %v1236_v41 = vpop.eup %1235  ;;  %615 = vst.msk [vmem:[#allocation3 + $0x48] sm:$0xff] %vm24_vm7, %v598_v18  ;;  %v599_v25 = vadd.f32 %v578_v39, %v551_v27  ;;  %1239 = vrcp.f32 %v888_v1  ;;  %v782_v1 = vpop.f32.mrf.mxu1 }
 0x208   :  { %v586_v32 = vpop.xlane.xlu1 %585  ;;  %936 = vperm.xlu1 %1157, %v1236_v41   ;;  %v889_v26 = vld [vmem:[#allocation3 + $0x38] sm:$0xff]  ;;  %v723_v41 = vmul.f32 0.0, %v1730_v6  ;;  %v718_v6 = vmul.f32 0.0, %v1722_v35 }
 0x209   :  { %v1238_v63 = vpop.eup %1237  ;;  %616 = vst.msk [vmem:[#allocation3 + $0x50] sm:$0xff] %vm24_vm7, %v599_v25  ;;  %v603_v50 = vadd.f32 %v586_v32, %v555_v48  ;;  %1241 = vrcp.f32 %v889_v26  ;;  %v770_v53 = vpop.f32.mrf.mxu0 }
 0x20a   :  { %956 = vperm.xlu2 %1158, %v1238_v63   ;;  %v893_v47 = vld [vmem:[#allocation3 + $0x58] sm:$0xff]  ;;  %v820_v48 = vadd.f32 %v782_v1, %v723_v41  ;;  %v724_v41 = vmul.f32 0.0, %v1734_v8 }
 0x20b   :  { %620 = vst.msk [vmem:[#allocation3 + $0x70] sm:$0xff] %vm24_vm7, %v603_v50  ;;  %1243 = vrcp.f32 %v893_v47  ;;  %v726_v50 = vmul.f32 0.0, %v1736_v24  ;;  %v729_v24 = vmul.f32 0.0, %v1742_v54 }
 0x20c   :  { %v582_v52 = vpop.xlane.xlu0 %581 }
 0x20d   :  { %v1240_v15 = vpop.eup %1239  ;;  %v601_v30 = vadd.f32 %v582_v52, %v553_v51  ;;  %v823_v47 = vadd.f32 %v791_v5, %v726_v50 }
 0x20e   :  { %946 = vperm.xlu0 %1156, %v1240_v15   ;;  %v584_v38 = vpop.xlane.xlu2 %583  ;;  %v891_v44 = vld [vmem:[#allocation3 + $0x48] sm:$0xff]  ;;  %v815_v15 = vadd.f32 %v767_v59, %v718_v6 }
 0x20f   :  { %v1242_v56 = vpop.eup %1241  ;;  %618 = vst.msk [vmem:[#allocation3 + $0x60] sm:$0xff] %vm24_vm7, %v601_v30  ;;  %v602_v61 = vadd.f32 %v584_v38, %v554_v34  ;;  %1245 = vrcp.f32 %v891_v44 }
 0x210   :  { %951 = vperm.xlu1 %1157, %v1242_v56   ;;  %v892_v20 = vld [vmem:[#allocation3 + $0x50] sm:$0xff] }
 0x211   :  { %v1244_v36 = vpop.eup %1243  ;;  %619 = vst.msk [vmem:[#allocation3 + $0x68] sm:$0xff] %vm24_vm7, %v602_v61  ;;  %1247 = vrcp.f32 %v892_v20  ;;  %v773_v28 = vpop.f32.mrf.mxu0 }
 0x212   :  { %971 = vperm.xlu2 %1158, %v1244_v36   ;;  %v896_v2 = vld [vmem:[#allocation3 + $0x70] sm:$0xff]  ;;  %v817_v16 = vadd.f32 %v773_v28, %v720_v29 }
 0x213   :  { %1249 = vrcp.f32 %v896_v2 }
 0x214   :  { %v588_v55 = vpop.xlane.xlu0 %587 }
 0x215   :  { %v1246_v13 = vpop.eup %1245  ;;  %v604_v58 = vadd.f32 %v588_v55, %v556_v12  ;;  %v1792_v0 = vpop.f32.mrf.mxu2  ;;  %v719_v12 = vmul.f32 0.0, %v1724_v49 }
 0x216   :  { %961 = vperm.xlu0 %1156, %v1246_v13   ;;  %v894_v19 = vld [vmem:[#allocation3 + $0x60] sm:$0xff]  ;;  %v732_v13 = vmul.f32 0.0, %v1748_v4  ;;  %v722_v4 = vmul.f32 0.0, %v1726_v60 }
 0x217   :  { %v1248_v57 = vpop.eup %1247  ;;  %621 = vst.msk [vmem:[#allocation3 + $0x78] sm:$0xff] %vm24_vm7, %v604_v58  ;;  %1251 = vrcp.f32 %v894_v19  ;;  %v816_v58 = vadd.f32 %v770_v53, %v719_v12 }
 0x218   :  { %966 = vperm.xlu1 %1157, %v1248_v57   ;;  %v895_v10 = vld [vmem:[#allocation3 + $0x68] sm:$0xff] }
 0x219   :  { %v1250_v21 = vpop.eup %1249  ;;  %1253 = vrcp.f32 %v895_v10  ;;  %v776_v10 = vpop.f32.mrf.mxu0 }
 0x21a   :  { %986 = vperm.xlu2 %1158, %v1250_v21  }
 0x21c   :  { %v1799_v62 = vpop.f32.mrf.mxu3 }
 0x21d   :  { %v1252_v23 = vpop.eup %1251  ;;  %v1801_v26 = vpop.f32.mrf.mxu2 }
 0x21e   :  { %976 = vperm.xlu0 %1156, %v1252_v23   ;;  %v897_v3 = vld [vmem:[#allocation3 + $0x78] sm:$0xff] }
 0x21f   :  { %v1254_v37 = vpop.eup %1253  ;;  %1255 = vrcp.f32 %v897_v3  ;;  %v721_v3 = vmul.f32 0.0, %v1728_v17 }
 0x220   :  { %981 = vperm.xlu1 %1157, %v1254_v37   ;;  %v785_v37 = vpop.f32.mrf.mxu1 }
 0x221   :  { %v818_v5 = vadd.f32 %v776_v10, %v721_v3 }
 0x224   :  { %v1809_v30 = vpop.f32.mrf.mxu3 }
 0x225   :  { %v1256_v22 = vpop.eup %1255  ;;  %v800_v44 = vpop.f32.mrf.mxu2 }
 0x226   :  { %991 = vperm.xlu0 %1156, %v1256_v22   ;;  %v826_v20 = vadd.f32 %v800_v44, %v729_v24 }
 0x22c   :  { %v809_v54 = vpop.f32.mrf.mxu3 }
 0x22d   :  { %v829_v21 = vadd.f32 %v809_v54, %v732_v13 }
 0x254   :  { %v927_v18 = vpop.permute.xlu2 %926 }
 0x255   :  { %v996_v27 = vmul.f32 %v927_v18, %v817_v16  ;;  %v819_v18 = vadd.f32 %v1784_v31, %v722_v4  ;;  %v725_v31 = vmul.f32 0.0, %v1732_v43  ;;  %v728_v43 = vmul.f32 0.0, %v1738_v42 }
 0x256   :  { %v730_v42 = vmul.f32 0.0, %v1746_v7 }
 0x257   :  { %v1016_v39 = vadd.f32 %v1790_v33, %v996_v27 }
 0x259   :  { %v1032_v25 = vmax.f32 %v1016_v39, 0.0 }
 0x25b   :  { %1048 = vst [vmem:[%s1889_s5 + $0x10] sm:$0xff] %v1032_v25 }
 0x25c   :  { %v942_v32 = vpop.permute.xlu2 %941 }
 0x25d   :  { %v999_v11 = vmul.f32 %v942_v32, %v820_v48  ;;  %v788_v48 = vpop.f32.mrf.mxu1  ;;  %v821_v32 = vadd.f32 %v785_v37, %v724_v41 }
 0x25e   :  { %v822_v50 = vadd.f32 %v788_v48, %v725_v31 }
 0x25f   :  { %v1019_v63 = vadd.f32 %v1790_v33, %v999_v11 }
 0x261   :  { %v1035_v40 = vmax.f32 %v1019_v63, 0.0 }
 0x263   :  { %1051 = vst [vmem:[%s1889_s5 + $0x28] sm:$0xff] %v1035_v40 }
 0x264   :  { %v957_v51 = vpop.permute.xlu2 %956 }
 0x265   :  { %v1002_v52 = vmul.f32 %v957_v51, %v823_v47  ;;  %v727_v51 = vmul.f32 0.0, %v1740_v45 }
 0x267   :  { %v1022_v34 = vadd.f32 %v1790_v33, %v1002_v52  ;;  %v917_v38 = vpop.permute.xlu0 %916 }
 0x268   :  { %v994_v56 = vmul.f32 %v917_v38, %v815_v15 }
 0x269   :  { %v1038_v61 = vmax.f32 %v1022_v34, 0.0  ;;  %v824_v34 = vadd.f32 %v1792_v0, %v727_v51 }
 0x26a   :  { %v1014_v46 = vadd.f32 %v1790_v33, %v994_v56  ;;  %v825_v56 = vadd.f32 %v1801_v26, %v728_v43 }
 0x26b   :  { %1054 = vst [vmem:[%s1889_s5 + $0x40] sm:$0xff] %v1038_v61 }
 0x26c   :  { %v1030_v35 = vmax.f32 %v1014_v46, 0.0  ;;  %v972_v36 = vpop.permute.xlu2 %971 }
 0x26d   :  { %v1005_v2 = vmul.f32 %v972_v36, %v826_v20  ;;  %v827_v36 = vadd.f32 %v1799_v62, %v730_v42  ;;  %v733_v62 = vmul.f32 0.0, %v1751_v14 }
 0x26e   :  { %1046 = vst [vmem:[%s1889_s5] sm:$0xff] %v1030_v35  ;;  %v731_v35 = vmul.f32 0.0, %v1744_v9  ;;  %v812_v9 = vpop.f32.mrf.mxu3 }
 0x26f   :  { %v1025_v55 = vadd.f32 %v1790_v33, %v1005_v2 }
 0x270   :  { %v828_v12 = vadd.f32 %v1809_v30, %v731_v35 }
 0x271   :  { %v1041_v19 = vmax.f32 %v1025_v55, 0.0 }
 0x272   :  { %v922_v57 = vpop.permute.xlu1 %921 }
 0x273   :  { %1057 = vst [vmem:[%s1889_s5 + $0x58] sm:$0xff] %v1041_v19  ;;  %v995_v23 = vmul.f32 %v922_v57, %v816_v58  ;;  %v830_v57 = vadd.f32 %v812_v9, %v733_v62 }
 0x274   :  { %v987_v22 = vpop.permute.xlu2 %986 }
 0x275   :  { %v1015_v49 = vadd.f32 %v1790_v33, %v995_v23  ;;  %v1008_v59 = vmul.f32 %v987_v22, %v829_v21 }
 0x277   :  { %v1031_v53 = vmax.f32 %v1015_v49, 0.0  ;;  %v1028_v28 = vadd.f32 %v1790_v33, %v1008_v59  ;;  %v932_v29 = vpop.permute.xlu0 %931 }
 0x278   :  { %v997_v16 = vmul.f32 %v932_v29, %v818_v5 }
 0x279   :  { %1047 = vst [vmem:[%s1889_s5 + $0x8] sm:$0xff] %v1031_v53  ;;  %v1044_v17 = vmax.f32 %v1028_v28, 0.0 }
 0x27a   :  { %v1017_v27 = vadd.f32 %v1790_v33, %v997_v16  ;;  %v937_v39 = vpop.permute.xlu1 %936 }
 0x27b   :  { %1060 = vst [vmem:[%s1889_s5 + $0x70] sm:$0xff] %v1044_v17  ;;  %v998_v60 = vmul.f32 %v937_v39, %v819_v18 }
 0x27c   :  { %v1033_v1 = vmax.f32 %v1017_v27, 0.0 }
 0x27d   :  { %v1018_v25 = vadd.f32 %v1790_v33, %v998_v60 }
 0x27e   :  { %1049 = vst [vmem:[%s1889_s5 + $0x18] sm:$0xff] %v1033_v1 }
 0x27f   :  { %v1034_v11 = vmax.f32 %v1018_v25, 0.0 }
 0x280   :  { %v947_v63 = vpop.permute.xlu0 %946 }
 0x281   :  { %1050 = vst [vmem:[%s1889_s5 + $0x20] sm:$0xff] %v1034_v11  ;;  %v1000_v40 = vmul.f32 %v947_v63, %v821_v32 }
 0x282   :  { %v952_v47 = vpop.permute.xlu1 %951 }
 0x283   :  { %v1020_v8 = vadd.f32 %v1790_v33, %v1000_v40  ;;  %v1001_v6 = vmul.f32 %v952_v47, %v822_v50 }
 0x285   :  { %v1036_v52 = vmax.f32 %v1020_v8, 0.0  ;;  %v1021_v15 = vadd.f32 %v1790_v33, %v1001_v6 }
 0x287   :  { %1052 = vst [vmem:[%s1889_s5 + $0x30] sm:$0xff] %v1036_v52  ;;  %v1037_v38 = vmax.f32 %v1021_v15, 0.0 }
 0x288   :  { %v962_v44 = vpop.permute.xlu0 %961 }
 0x289   :  { %1053 = vst [vmem:[%s1889_s5 + $0x38] sm:$0xff] %v1037_v38  ;;  %v1003_v45 = vmul.f32 %v962_v44, %v824_v34 }
 0x28a   :  { %v967_v24 = vpop.permute.xlu1 %966 }
 0x28b   :  { %v1023_v61 = vadd.f32 %v1790_v33, %v1003_v45  ;;  %v1004_v46 = vmul.f32 %v967_v24, %v825_v56 }
 0x28d   :  { %v1039_v0 = vmax.f32 %v1023_v61, 0.0  ;;  %v1024_v20 = vadd.f32 %v1790_v33, %v1004_v46 }
 0x28f   :  { %1055 = vst [vmem:[%s1889_s5 + $0x48] sm:$0xff] %v1039_v0  ;;  %v1040_v26 = vmax.f32 %v1024_v20, 0.0 }
 0x290   :  { %v977_v2 = vpop.permute.xlu0 %976 }
 0x291   :  { %1056 = vst [vmem:[%s1889_s5 + $0x50] sm:$0xff] %v1040_v26  ;;  %v1006_v7 = vmul.f32 %v977_v2, %v827_v36 }
 0x292   :  { %v982_v55 = vpop.permute.xlu1 %981 }
 0x293   :  { %v1026_v54 = vadd.f32 %v1790_v33, %v1006_v7  ;;  %v1007_v13 = vmul.f32 %v982_v55, %v828_v12 }
 0x295   :  { %v1042_v58 = vmax.f32 %v1026_v54, 0.0  ;;  %v1027_v19 = vadd.f32 %v1790_v33, %v1007_v13 }
 0x297   :  { %1058 = vst [vmem:[%s1889_s5 + $0x60] sm:$0xff] %v1042_v58  ;;  %v1043_v30 = vmax.f32 %v1027_v19, 0.0 }
 0x298   :  { %v992_v10 = vpop.permute.xlu0 %991 }
 0x299   :  { %1059 = vst [vmem:[%s1889_s5 + $0x68] sm:$0xff] %v1043_v30  ;;  %v1009_v21 = vmul.f32 %v992_v10, %v830_v57 }
 0x29b   :  { %v1029_v23 = vadd.f32 %v1790_v33, %v1009_v21 }
 0x29d   :  { %v1045_v3 = vmax.f32 %v1029_v23, 0.0 }
 0x29f   :  { %1061 = vst [vmem:[%s1889_s5 + $0x78] sm:$0xff] %v1045_v3 }

// kernel: gat_forward.7
= control target key start
LH: loop header
LB: loop body
LE: loop exit
PB: predicated region body
PF: predicated region fallthrough
CT: control target
= control target key end

     0   :  { %v1241_v0 = vmov 0   ;;  %vm24_vm7 = vcmask 7168   ;;  %s1865_s0 = inlined_call_operand.vmem [shape: f32[128,1], index: 0, kind: input, shape index: {}]   ;;  %s1866_s1 = inlined_call_operand.vmem [shape: f32[1,128], index: 1, kind: input, shape index: {}]   ;;  %s1867_s3 = inlined_call_operand.vmem [shape: bf16[128,128], index: 3, kind: input, shape index: {}]   ;;  %s1868_s2 = inlined_call_operand.vmem [shape: f32[128,128], index: 2, kind: input, shape index: {}]   ;;  %s1869_s4 = inlined_call_operand.vmem [shape: f32[1,128], index: 4, kind: input, shape index: {}]   ;;  %s1870_s5 = inlined_call_operand.vmem [shape: f32[128,128], index: 5, kind: output, shape index: {}]  }
   0x1   :  { %1141 = vset.pattern.permute.xlu1 %v1241_v0  ;;  %1140 = vset.pattern.permute.xlu0 %v1241_v0  ;;  %v75_v1 = vld [vmem:[%s1865_s0 + $0x10] sm:$0xff]  ;;  %v73_v2 = vld [vmem:[%s1865_s0] sm:$0xff]  ;;  %v76_v4 = vld [vmem:[%s1865_s0 + $0x18] sm:$0xff] }
   0x2   :  { %102 = vperm.xlu1 %1141, %v75_v1   ;;  %92 = vperm.xlu0 %1140, %v73_v2   ;;  %v77_v3 = vld [vmem:[%s1865_s0 + $0x20] sm:$0xff]  ;;  %v74_v5 = vld [vmem:[%s1865_s0 + $0x8] sm:$0xff]  ;;  %v80_v7 = vld [vmem:[%s1865_s0 + $0x38] sm:$0xff] }
   0x3   :  { %1142 = vset.pattern.permute.xlu2 %v1241_v0  ;;  %v78_v6 = vld [vmem:[%s1865_s0 + $0x28] sm:$0xff]  ;;  %v79_v8 = vld [vmem:[%s1865_s0 + $0x30] sm:$0xff]  ;;  %v81_v9 = vld [vmem:[%s1865_s0 + $0x40] sm:$0xff] }
   0x4   :  { %112 = vperm.xlu2 %1142, %v77_v3   ;;  %v83_v10 = vld [vmem:[%s1865_s0 + $0x50] sm:$0xff]  ;;  %v82_v11 = vld [vmem:[%s1865_s0 + $0x48] sm:$0xff]  ;;  %v84_v12 = vld [vmem:[%s1865_s0 + $0x58] sm:$0xff] }
   0x5   :  { %v86_v13 = vld [vmem:[%s1865_s0 + $0x68] sm:$0xff]  ;;  %v85_v14 = vld [vmem:[%s1865_s0 + $0x60] sm:$0xff]  ;;  %v87_v15 = vld [vmem:[%s1865_s0 + $0x70] sm:$0xff] }
   0x6   :  { %v88_v16 = vld [vmem:[%s1865_s0 + $0x78] sm:$0xff]  ;;  %v1325_v17 = vld [vmem:[%s1866_s1] ss:$0 sm:$0xff]  ;;  %v1082_v18 = vld [vmem:[%s1867_s3 + $0x8] sm:$0xff]  }
   0x7   :  { %v1051_v19 = vld [vmem:[%s1867_s3] sm:$0xff]   ;;  %v1056_v23 = vunpack.c.l.bf16 %v1082_v18  ;;  %v1339_v30 = vld [vmem:[%s1867_s3 + $0x10] sm:$0xff]   ;;  %v1084_v47 = vld [vmem:[%s1867_s3 + $0x18] sm:$0xff]   ;;  %v1057_v53 = vunpack.c.h.bf16 %v1082_v18 }
   0x8   :  { %v1052_v24 = vunpack.c.l.bf16 %v1051_v19  ;;  %v1060_v34 = vunpack.c.l.bf16 %v1339_v30  ;;  %v1053_v39 = vunpack.c.h.bf16 %v1051_v19  ;;  %v1065_v52 = vunpack.c.h.bf16 %v1084_v47  ;;  %v1365_v1 = vld [vmem:[%s1867_s3 + $0x28] sm:$0xff]   ;;  %v1085_v2 = vld [vmem:[%s1867_s3 + $0x20] sm:$0xff]  }
   0x9   :  { %vm255_vm0 = vcmp.gt.f32.partialorder %v1056_v23, 0.0  ;;  %v1064_v54 = vunpack.c.l.bf16 %v1084_v47  ;;  %vm256_vm5 = vcmp.gt.f32.partialorder %v1057_v53, 0.0  ;;  %v1088_v47 = vld [vmem:[%s1867_s3 + $0x38] sm:$0xff]  }
   0xa   :  { %107 = vperm.xlu1 %1141, %v76_v4   ;;  %97 = vperm.xlu0 %1140, %v74_v5   ;;  %vm253_vm1 = vcmp.gt.f32.partialorder %v1052_v24, 0.0  ;;  %vm257_vm2 = vcmp.gt.f32.partialorder %v1060_v34, 0.0  ;;  %vm254_vm3 = vcmp.gt.f32.partialorder %v1053_v39, 0.0  ;;  %vm260_vm4 = vcmp.gt.f32.partialorder %v1065_v52, 0.0 }
   0xb   :  { %vm259_vm6 = vcmp.gt.f32.partialorder %v1064_v54, 0.0  ;;  %v1081_v52 = vunpack.c.h.bf16 %v1088_v47 }
   0xc   :  { %117 = vperm.xlu2 %1142, %v78_v6   ;;  %v1061_v6 = vunpack.c.h.bf16 %v1339_v30 }
   0xd   :  { %vm268_vm15 = vcmp.gt.f32.partialorder %v1081_v52, 0.0 }
   0xe   :  { %vm258_vm8 = vcmp.gt.f32.partialorder %v1061_v6, 0.0 }
  0x12   :  { %127 = vperm.xlu1 %1141, %v80_v7   ;;  %122 = vperm.xlu0 %1140, %v79_v8  }
  0x14   :  { %132 = vperm.xlu2 %1142, %v81_v9   ;;  %v1072_v9 = vunpack.c.l.bf16 %v1365_v1 }
  0x16   :  { %vm263_vm9 = vcmp.gt.f32.partialorder %v1072_v9, 0.0 }
  0x1a   :  { %142 = vperm.xlu1 %1141, %v83_v10   ;;  %137 = vperm.xlu0 %1140, %v82_v11   ;;  %v1069_v10 = vunpack.c.h.bf16 %v1085_v2 }
  0x1c   :  { %147 = vperm.xlu2 %1142, %v84_v12   ;;  %vm262_vm10 = vcmp.gt.f32.partialorder %v1069_v10, 0.0 }
  0x22   :  { %157 = vperm.xlu1 %1141, %v86_v13   ;;  %152 = vperm.xlu0 %1140, %v85_v14   ;;  %v1242_v13 = vmov -1e+30  }
  0x23   :  { %25 = vst.msk [vmem:[#allocation2] sm:$0xff] %vm24_vm7, %v1242_v13 }
  0x24   :  { %162 = vperm.xlu2 %1142, %v87_v15   ;;  %26 = vst.msk [vmem:[#allocation2 + $0x8] sm:$0xff] %vm24_vm7, %v1242_v13 }
  0x25   :  { %27 = vst.msk [vmem:[#allocation2 + $0x10] sm:$0xff] %vm24_vm7, %v1242_v13 }
  0x26   :  { %28 = vst.msk [vmem:[#allocation2 + $0x18] sm:$0xff] %vm24_vm7, %v1242_v13 }
  0x27   :  { %29 = vst.msk [vmem:[#allocation2 + $0x20] sm:$0xff] %vm24_vm7, %v1242_v13 }
  0x28   :  { %30 = vst.msk [vmem:[#allocation2 + $0x28] sm:$0xff] %vm24_vm7, %v1242_v13 }
  0x29   :  { %31 = vst.msk [vmem:[#allocation2 + $0x30] sm:$0xff] %vm24_vm7, %v1242_v13 }
  0x2a   :  { %167 = vperm.xlu0 %1140, %v88_v16   ;;  %32 = vst.msk [vmem:[#allocation2 + $0x38] sm:$0xff] %vm24_vm7, %v1242_v13 }
  0x2b   :  { %33 = vst.msk [vmem:[#allocation2 + $0x40] sm:$0xff] %vm24_vm7, %v1242_v13  ;;  %v1464_v10 = vld [vmem:[#allocation2 + $0x8] sm:$0xff] }
  0x2c   :  { %34 = vst.msk [vmem:[#allocation2 + $0x48] sm:$0xff] %vm24_vm7, %v1242_v13 }
  0x2d   :  { %35 = vst.msk [vmem:[#allocation2 + $0x50] sm:$0xff] %vm24_vm7, %v1242_v13 }
  0x2e   :  { %36 = vst.msk [vmem:[#allocation2 + $0x58] sm:$0xff] %vm24_vm7, %v1242_v13  ;;  %v289_v9 = vld [vmem:[#allocation2 + $0x20] sm:$0xff] }
  0x2f   :  { %37 = vst.msk [vmem:[#allocation2 + $0x60] sm:$0xff] %vm24_vm7, %v1242_v13 }
  0x30   :  { %38 = vst.msk [vmem:[#allocation2 + $0x68] sm:$0xff] %vm24_vm7, %v1242_v13 }
  0x31   :  { %39 = vst.msk [vmem:[#allocation2 + $0x70] sm:$0xff] %vm24_vm7, %v1242_v13 }
  0x32   :  { %40 = vst.msk [vmem:[#allocation2 + $0x78] sm:$0xff] %vm24_vm7, %v1242_v13 }
  0x5e   :  { %v113_v20 = vpop.permute.xlu2 %112 }
  0x5f   :  { %v177_v25 = vadd.f32 %v1325_v17, %v113_v20 }
  0x61   :  { %v193_v31 = vmul.f32 0.2, %v177_v25 }
  0x63   :  { %v209_v41 = vmax.f32 %v177_v25, %v193_v31 }
  0x65   :  { %v1350_v45 = vsel %vm257_vm2, %v209_v41, -1e+30 }
  0x66   :  { %v118_v42 = vpop.permute.xlu2 %117 }
  0x67   :  { %v178_v57 = vadd.f32 %v1325_v17, %v118_v42 }
  0x69   :  { %v194_v0 = vmul.f32 0.2, %v178_v57 }
  0x6b   :  { %v210_v15 = vmax.f32 %v178_v57, %v194_v0  ;;  %v1455_v0 = vld [vmem:[#allocation2] sm:$0xff] }
  0x6d   :  { %v1392_v24 = vsel %vm258_vm8, %v210_v15, -1e+30  ;;  %v1473_v15 = vld [vmem:[#allocation2 + $0x38] sm:$0xff] }
  0x6e   :  { %v133_v61 = vpop.permute.xlu2 %132 }
  0x6f   :  { %v181_v14 = vadd.f32 %v1325_v17, %v133_v61  ;;  %v1080_v61 = vunpack.c.l.bf16 %v1088_v47 }
  0x74   :  { %v103_v21 = vpop.permute.xlu1 %102  ;;  %v93_v22 = vpop.permute.xlu0 %92 }
  0x75   :  { %v175_v26 = vadd.f32 %v1325_v17, %v103_v21  ;;  %v173_v27 = vadd.f32 %v1325_v17, %v93_v22  ;;  %v1087_v21 = vld [vmem:[%s1867_s3 + $0x30] sm:$0xff]   ;;  %v197_v22 = vmul.f32 0.2, %v181_v14 }
  0x76   :  { %v148_v23 = vpop.permute.xlu2 %147  ;;  %v1077_v30 = vunpack.c.h.bf16 %v1087_v21  ;;  %v1076_v31 = vunpack.c.l.bf16 %v1087_v21 }
  0x77   :  { %v191_v28 = vmul.f32 0.2, %v175_v26  ;;  %v189_v29 = vmul.f32 0.2, %v173_v27  ;;  %v184_v34 = vadd.f32 %v1325_v17, %v148_v23 }
  0x78   :  { %vm266_vm12 = vcmp.gt.f32.partialorder %v1077_v30, 0.0  ;;  %vm265_vm13 = vcmp.gt.f32.partialorder %v1076_v31, 0.0  ;;  %v1496_v30 = vld [vmem:[#allocation2 + $0x48] sm:$0xff] }
  0x79   :  { %v207_v32 = vmax.f32 %v175_v26, %v191_v28  ;;  %v205_v33 = vmax.f32 %v173_v27, %v189_v29  ;;  %v1068_v27 = vunpack.c.l.bf16 %v1085_v2  ;;  %v200_v42 = vmul.f32 0.2, %v184_v34 }
  0x7b   :  { %v1342_v35 = vsel %vm255_vm0, %v207_v32, -1e+30  ;;  %v1344_v36 = vsel %vm253_vm1, %v205_v33, -1e+30  ;;  %vm261_vm11 = vcmp.gt.f32.partialorder %v1068_v27, 0.0  ;;  %vm267_vm0 = vcmp.gt.f32.partialorder %v1080_v61, 0.0 }
  0x7c   :  { %v108_v37 = vpop.permute.xlu1 %107  ;;  %305 = vmax.xlane.f32.xlu0 %v1342_v35  ;;  %301 = vmax.xlane.f32.xlu1 %v1344_v36  ;;  %v98_v38 = vpop.permute.xlu0 %97 }
  0x7d   :  { %v174_v40 = vadd.f32 %v1325_v17, %v98_v38  ;;  %v176_v43 = vadd.f32 %v1325_v17, %v108_v37  ;;  %v213_v37 = vmax.f32 %v181_v14, %v197_v22 }
  0x7f   :  { %v190_v44 = vmul.f32 0.2, %v174_v40  ;;  %v192_v48 = vmul.f32 0.2, %v176_v43 }
  0x81   :  { %v206_v46 = vmax.f32 %v174_v40, %v190_v44  ;;  %v208_v60 = vmax.f32 %v176_v43, %v192_v48  ;;  %v1412_v43 = vsel %vm261_vm11, %v213_v37, -1e+30  ;;  %v163_v48 = vpop.permute.xlu2 %162 }
  0x82   :  { %v187_v54 = vadd.f32 %v1325_v17, %v163_v48 }
  0x83   :  { %v1355_v49 = vsel %vm254_vm3, %v206_v46, -1e+30  ;;  %v1372_v4 = vsel %vm256_vm5, %v208_v60, -1e+30 }
  0x84   :  { %v128_v50 = vpop.permute.xlu1 %127  ;;  %309 = vmax.xlane.f32.xlu1 %v1350_v45  ;;  %303 = vmax.xlane.f32.xlu2 %v1355_v49  ;;  %v123_v51 = vpop.permute.xlu0 %122 }
  0x85   :  { %v180_v55 = vadd.f32 %v1325_v17, %v128_v50  ;;  %v179_v56 = vadd.f32 %v1325_v17, %v123_v51  ;;  %v1073_v51 = vunpack.c.h.bf16 %v1365_v1  ;;  %v287_v1 = vld [vmem:[#allocation2 + $0x10] sm:$0xff] }
  0x87   :  { %v196_v58 = vmul.f32 0.2, %v180_v55  ;;  %v195_v59 = vmul.f32 0.2, %v179_v56  ;;  %vm264_vm14 = vcmp.gt.f32.partialorder %v1073_v51, 0.0 }
  0x89   :  { %v212_v62 = vmax.f32 %v180_v55, %v196_v58  ;;  %v211_v63 = vmax.f32 %v179_v56, %v195_v59  ;;  %v216_v56 = vmax.f32 %v184_v34, %v200_v42  ;;  %v203_v58 = vmul.f32 0.2, %v187_v54  ;;  %v1520_v42 = vld [vmem:[#allocation2 + $0x60] sm:$0xff] }
  0x8b   :  { %v1370_v3 = vsel %vm260_vm4, %v212_v62, -1e+30  ;;  %v1374_v5 = vsel %vm259_vm6, %v211_v63, -1e+30  ;;  %v1430_v59 = vsel %vm264_vm14, %v216_v56, -1e+30  ;;  %v219_v62 = vmax.f32 %v187_v54, %v203_v58 }
  0x8c   :  { %v143_v7 = vpop.permute.xlu1 %142  ;;  %315 = vmax.xlane.f32.xlu1 %v1370_v3  ;;  %307 = vmax.xlane.f32.xlu2 %v1372_v4  ;;  %v138_v8 = vpop.permute.xlu0 %137  ;;  %v1540_v56 = vld [vmem:[#allocation2 + $0x58] sm:$0xff] }
  0x8d   :  { %v183_v11 = vadd.f32 %v1325_v17, %v143_v7  ;;  %313 = vmax.xlane.f32.xlu0 %v1374_v5  ;;  %v182_v12 = vadd.f32 %v1325_v17, %v138_v8  ;;  %v1436_v63 = vsel %vm267_vm0, %v219_v62, -1e+30 }
  0x8f   :  { %v199_v16 = vmul.f32 0.2, %v183_v11  ;;  %v198_v18 = vmul.f32 0.2, %v182_v12 }
  0x91   :  { %v215_v19 = vmax.f32 %v183_v11, %v199_v16  ;;  %v214_v20 = vmax.f32 %v182_v12, %v198_v18  ;;  %v1475_v16 = vld [vmem:[#allocation2 + $0x18] sm:$0xff]  ;;  %v1477_v18 = vld [vmem:[#allocation2 + $0x30] sm:$0xff] }
  0x93   :  { %v1395_v25 = vsel %vm263_vm9, %v215_v19, -1e+30  ;;  %v1397_v26 = vsel %vm262_vm10, %v214_v20, -1e+30 }
  0x94   :  { %v158_v28 = vpop.permute.xlu1 %157  ;;  %321 = vmax.xlane.f32.xlu1 %v1395_v25  ;;  %311 = vmax.xlane.f32.xlu2 %v1392_v24  ;;  %v153_v29 = vpop.permute.xlu0 %152 }
  0x95   :  { %v186_v32 = vadd.f32 %v1325_v17, %v158_v28  ;;  %319 = vmax.xlane.f32.xlu0 %v1397_v26  ;;  %v185_v33 = vadd.f32 %v1325_v17, %v153_v29  ;;  %v1492_v28 = vld [vmem:[#allocation2 + $0x50] sm:$0xff]  ;;  %v1494_v29 = vld [vmem:[#allocation2 + $0x28] sm:$0xff] }
  0x97   :  { %v202_v38 = vmul.f32 0.2, %v186_v32  ;;  %v201_v39 = vmul.f32 0.2, %v185_v33 }
  0x99   :  { %v218_v40 = vmax.f32 %v186_v32, %v202_v38  ;;  %v217_v41 = vmax.f32 %v185_v33, %v201_v39 }
  0x9b   :  { %v1415_v44 = vsel %vm266_vm12, %v218_v40, -1e+30  ;;  %v1417_v46 = vsel %vm265_vm13, %v217_v41, -1e+30  ;;  %v1516_v40 = vld [vmem:[#allocation2 + $0x68] sm:$0xff]  ;;  %v1518_v41 = vld [vmem:[#allocation2 + $0x40] sm:$0xff] }
  0x9c   :  { %327 = vmax.xlane.f32.xlu1 %v1415_v44  ;;  %317 = vmax.xlane.f32.xlu2 %v1412_v43  ;;  %v168_v50 = vpop.permute.xlu0 %167 }
  0x9d   :  { %325 = vmax.xlane.f32.xlu0 %v1417_v46  ;;  %v188_v53 = vadd.f32 %v1325_v17, %v168_v50  ;;  %v1243_v17 = vmov 0.0  }
  0x9e   :  { %41 = vst.msk [vmem:[#allocation3] sm:$0xff] %vm24_vm7, %v1243_v17 }
  0x9f   :  { %v204_v55 = vmul.f32 0.2, %v188_v53  ;;  %42 = vst.msk [vmem:[#allocation3 + $0x8] sm:$0xff] %vm24_vm7, %v1243_v17 }
  0xa0   :  { %43 = vst.msk [vmem:[#allocation3 + $0x10] sm:$0xff] %vm24_vm7, %v1243_v17 }
  0xa1   :  { %v220_v57 = vmax.f32 %v188_v53, %v204_v55  ;;  %44 = vst.msk [vmem:[#allocation3 + $0x18] sm:$0xff] %vm24_vm7, %v1243_v17 }
  0xa2   :  { %45 = vst.msk [vmem:[#allocation3 + $0x20] sm:$0xff] %vm24_vm7, %v1243_v17 }
  0xa3   :  { %v1432_v60 = vsel %vm268_vm15, %v220_v57, -1e+30  ;;  %46 = vst.msk [vmem:[#allocation3 + $0x28] sm:$0xff] %vm24_vm7, %v1243_v17  ;;  %v1542_v57 = vld [vmem:[#allocation2 + $0x78] sm:$0xff] }
  0xa4   :  { %323 = vmax.xlane.f32.xlu2 %v1430_v59  ;;  %47 = vst.msk [vmem:[#allocation3 + $0x30] sm:$0xff] %vm24_vm7, %v1243_v17 }
  0xa5   :  { %331 = vmax.xlane.f32.xlu0 %v1432_v60  ;;  %48 = vst.msk [vmem:[#allocation3 + $0x38] sm:$0xff] %vm24_vm7, %v1243_v17 }
  0xa6   :  { %49 = vst.msk [vmem:[#allocation3 + $0x40] sm:$0xff] %vm24_vm7, %v1243_v17 }
  0xa7   :  { %50 = vst.msk [vmem:[#allocation3 + $0x48] sm:$0xff] %vm24_vm7, %v1243_v17 }
  0xa8   :  { %51 = vst.msk [vmem:[#allocation3 + $0x50] sm:$0xff] %vm24_vm7, %v1243_v17 }
  0xa9   :  { %52 = vst.msk [vmem:[#allocation3 + $0x58] sm:$0xff] %vm24_vm7, %v1243_v17 }
  0xaa   :  { %53 = vst.msk [vmem:[#allocation3 + $0x60] sm:$0xff] %vm24_vm7, %v1243_v17 }
  0xab   :  { %54 = vst.msk [vmem:[#allocation3 + $0x68] sm:$0xff] %vm24_vm7, %v1243_v17 }
  0xac   :  { %329 = vmax.xlane.f32.xlu2 %v1436_v63  ;;  %55 = vst.msk [vmem:[#allocation3 + $0x70] sm:$0xff] %vm24_vm7, %v1243_v17 }
  0xad   :  { %56 = vst.msk [vmem:[#allocation3 + $0x78] sm:$0xff] %vm24_vm7, %v1243_v17 }
  0xef   :  { %v302_v2 = vpop.xlane.xlu1 %301  ;;  %v306_v6 = vpop.xlane.xlu0 %305 }
  0xf0   :  { %v1458_v7 = vmax.f32 %v1455_v0, %v302_v2  ;;  %v335_v8 = vmax.f32 %v287_v1, %v306_v6 }
  0xf2   :  { %847 = vst.msk [vmem:[#allocation2] sm:$0xff] %vm24_vm7, %v1458_v7  ;;  %399 = vperm.xlu1 %1141, %v1458_v7   ;;  %409 = vperm.xlu0 %1140, %v335_v8   ;;  %v351_v39 = vsub.f32 %v287_v1, %v335_v8  ;;  %v349_v6 = vsub.f32 %v1455_v0, %v1458_v7 }
  0xf3   :  { %849 = vst.msk [vmem:[#allocation2 + $0x10] sm:$0xff] %vm24_vm7, %v335_v8 }
  0xf4   :  { %v369_v47 = vmul.f32 1.442695, %v351_v39  ;;  %v365_v0 = vmul.f32 1.442695, %v349_v6  ;;  %v743_v6 = vld [vmem:[%s1868_s2 + $0x48] sm:$0xff] }
  0xf6   :  { %1145 = vpow2.f32 %v369_v47 }
  0xf7   :  { %v310_v11 = vpop.xlane.xlu1 %309  ;;  %v304_v12 = vpop.xlane.xlu2 %303 }
  0xf8   :  { %v337_v13 = vmax.f32 %v289_v9, %v310_v11  ;;  %v1467_v14 = vmax.f32 %v1464_v10, %v304_v12  ;;  %v1564_v11 = vld [vmem:[#allocation2 + $0x70] sm:$0xff] }
  0xfa   :  { %851 = vst.msk [vmem:[#allocation2 + $0x20] sm:$0xff] %vm24_vm7, %v337_v13  ;;  %404 = vperm.xlu2 %1142, %v1467_v14   ;;  %419 = vperm.xlu0 %1140, %v337_v13   ;;  %v353_v55 = vsub.f32 %v289_v9, %v337_v13  ;;  %v350_v9 = vsub.f32 %v1464_v10, %v1467_v14 }
  0xfb   :  { %848 = vst.msk [vmem:[#allocation2 + $0x8] sm:$0xff] %vm24_vm7, %v1467_v14 }
  0xfc   :  { %v373_v58 = vmul.f32 1.442695, %v353_v55  ;;  %v1547_v1 = vpop.eup %1145  ;;  %v367_v13 = vmul.f32 1.442695, %v350_v9  ;;  %v741_v9 = vld [vmem:[%s1868_s2 + $0x38] sm:$0xff] }
  0xfe   :  { %1147 = vpow2.f32 %v373_v58 }
  0xff   :  { %v316_v19 = vpop.xlane.xlu1 %315  ;;  %v308_v20 = vpop.xlane.xlu2 %307  ;;  %1149 = vpow2.f32 %v365_v0 }
 0x100   :  { %v340_v21 = vmax.f32 %v1473_v15, %v316_v19  ;;  %v1481_v22 = vmax.f32 %v1475_v16, %v308_v20  ;;  %v314_v23 = vpop.xlane.xlu0 %313 }
 0x101   :  { %v1484_v27 = vmax.f32 %v1477_v18, %v314_v23 }
 0x102   :  { %854 = vst.msk [vmem:[#allocation2 + $0x38] sm:$0xff] %vm24_vm7, %v340_v21  ;;  %414 = vperm.xlu1 %1141, %v1481_v22   ;;  %434 = vperm.xlu0 %1140, %v340_v21   ;;  %v356_v8 = vsub.f32 %v1473_v15, %v340_v21  ;;  %v352_v15 = vsub.f32 %v1475_v16, %v1481_v22 }
 0x103   :  { %850 = vst.msk [vmem:[#allocation2 + $0x18] sm:$0xff] %vm24_vm7, %v1481_v22 }
 0x104   :  { %853 = vst.msk [vmem:[#allocation2 + $0x30] sm:$0xff] %vm24_vm7, %v1484_v27  ;;  %v379_v7 = vmul.f32 1.442695, %v356_v8  ;;  %v1569_v20 = vpop.eup %1147  ;;  %v371_v21 = vmul.f32 1.442695, %v352_v15  ;;  %v742_v8 = vld [vmem:[%s1868_s2 + $0x40] sm:$0xff] }
 0x105   :  { %v1582_v16 = vpop.eup %1149 }
 0x106   :  { %1151 = vpow2.f32 %v379_v7  ;;  %v740_v7 = vld [vmem:[%s1868_s2 + $0x30] sm:$0xff] }
 0x107   :  { %v322_v31 = vpop.xlane.xlu1 %321  ;;  %v312_v32 = vpop.xlane.xlu2 %311  ;;  %1153 = vpow2.f32 %v367_v13  ;;  %v739_v13 = vld [vmem:[%s1868_s2 + $0x28] sm:$0xff] }
 0x108   :  { %v1499_v33 = vmax.f32 %v1492_v28, %v322_v31  ;;  %v1502_v34 = vmax.f32 %v1494_v29, %v312_v32  ;;  %v320_v37 = vpop.xlane.xlu0 %319  ;;  %1155 = vpow2.f32 %v371_v21  ;;  %v735_v21 = vld [vmem:[%s1868_s2 + $0x8] sm:$0xff] }
 0x109   :  { %v1505_v38 = vmax.f32 %v1496_v30, %v320_v37  ;;  %v355_v37 = vsub.f32 %v1477_v18, %v1484_v27 }
 0x10a   :  { %857 = vst.msk [vmem:[#allocation2 + $0x50] sm:$0xff] %vm24_vm7, %v1499_v33  ;;  %424 = vperm.xlu2 %1142, %v1502_v34   ;;  %449 = vperm.xlu0 %1140, %v1499_v33   ;;  %v359_v10 = vsub.f32 %v1492_v28, %v1499_v33  ;;  %v354_v14 = vsub.f32 %v1494_v29, %v1502_v34  ;;  %v749_v29 = vld [vmem:[%s1868_s2 + $0x78] sm:$0xff] }
 0x10b   :  { %852 = vst.msk [vmem:[#allocation2 + $0x28] sm:$0xff] %vm24_vm7, %v1502_v34  ;;  %429 = vperm.xlu1 %1141, %v1484_v27   ;;  %750 = vmatpush.msra.mxu0 %v749_v29  ;;  %v377_v18 = vmul.f32 1.442695, %v355_v37 }
 0x10c   :  { %856 = vst.msk [vmem:[#allocation2 + $0x48] sm:$0xff] %vm24_vm7, %v1505_v38  ;;  %v385_v23 = vmul.f32 1.442695, %v359_v10  ;;  %v375_v22 = vmul.f32 1.442695, %v354_v14  ;;  %v1584_v31 = vpop.eup %1151  ;;  %1089 = vmatpush.msra.mxu1 %v749_v29  ;;  %1090 = vmatpush.msra.mxu2 %v749_v29  ;;  %v737_v10 = vld [vmem:[%s1868_s2 + $0x18] sm:$0xff] }
 0x10d   :  { %v1586_v32 = vpop.eup %1153  ;;  %1091 = vmatpush.msra.mxu3 %v749_v29  ;;  %v736_v14 = vld [vmem:[%s1868_s2 + $0x10] sm:$0xff] }
 0x10e   :  { %1157 = vpow2.f32 %v385_v23  ;;  %v1600_v34 = vpop.eup %1155  ;;  %v734_v23 = vld [vmem:[%s1868_s2] sm:$0xff] }
 0x10f   :  { %v328_v48 = vpop.xlane.xlu1 %327  ;;  %v318_v50 = vpop.xlane.xlu2 %317  ;;  %1159 = vpow2.f32 %v375_v22 }
 0x110   :  { %v1523_v51 = vmax.f32 %v1516_v40, %v328_v48  ;;  %v1526_v52 = vmax.f32 %v1518_v41, %v318_v50  ;;  %v326_v53 = vpop.xlane.xlu0 %325  ;;  %1161 = vpow2.f32 %v377_v18  ;;  %v358_v48 = vsub.f32 %v1496_v30, %v1505_v38 }
 0x111   :  { %v1529_v54 = vmax.f32 %v1520_v42, %v326_v53 }
 0x112   :  { %860 = vst.msk [vmem:[#allocation2 + $0x68] sm:$0xff] %vm24_vm7, %v1523_v51  ;;  %439 = vperm.xlu2 %1142, %v1526_v52   ;;  %464 = vperm.xlu0 %1140, %v1523_v51   ;;  %v362_v28 = vsub.f32 %v1516_v40, %v1523_v51  ;;  %v357_v33 = vsub.f32 %v1518_v41, %v1526_v52  ;;  %v748_v41 = vld [vmem:[%s1868_s2 + $0x70] sm:$0xff]  ;;  %v747_v51 = vld [vmem:[%s1868_s2 + $0x68] sm:$0xff] }
 0x113   :  { %855 = vst.msk [vmem:[#allocation2 + $0x40] sm:$0xff] %vm24_vm7, %v1526_v52  ;;  %444 = vperm.xlu1 %1141, %v1505_v38   ;;  %751 = vmatpush.msra.mxu0 %v748_v41  ;;  %v383_v52 = vmul.f32 1.442695, %v358_v48  ;;  %v746_v38 = vld [vmem:[%s1868_s2 + $0x60] sm:$0xff] }
 0x114   :  { %859 = vst.msk [vmem:[#allocation2 + $0x60] sm:$0xff] %vm24_vm7, %v1529_v54  ;;  %v391_v27 = vmul.f32 1.442695, %v362_v28  ;;  %v381_v39 = vmul.f32 1.442695, %v357_v33  ;;  %v1602_v40 = vpop.eup %1157  ;;  %1092 = vmatpush.msra.mxu1 %v748_v41  ;;  %1093 = vmatpush.msra.mxu2 %v748_v41 }
 0x115   :  { %v1604_v47 = vpop.eup %1159  ;;  %1094 = vmatpush.msra.mxu3 %v748_v41  ;;  %752 = vmatpush.msra.mxu0 %v747_v51 }
 0x116   :  { %1163 = vpow2.f32 %v391_v27  ;;  %1095 = vmatpush.msra.mxu1 %v747_v51  ;;  %v1619_v53 = vpop.eup %1161  ;;  %1096 = vmatpush.msra.mxu2 %v747_v51 }
 0x117   :  { %v324_v61 = vpop.xlane.xlu2 %323  ;;  %1165 = vpow2.f32 %v381_v39  ;;  %1097 = vmatpush.msra.mxu3 %v747_v51  ;;  %753 = vmatpush.msra.mxu0 %v746_v38 }
 0x118   :  { %v1545_v62 = vmax.f32 %v1540_v56, %v324_v61  ;;  %v332_v17 = vpop.xlane.xlu0 %331  ;;  %1098 = vmatpush.msra.mxu1 %v746_v38  ;;  %v744_v61 = vld [vmem:[%s1868_s2 + $0x50] sm:$0xff]  ;;  %1167 = vpow2.f32 %v383_v52  ;;  %1099 = vmatpush.msra.mxu2 %v746_v38 }
 0x119   :  { %v1550_v2 = vmax.f32 %v1542_v57, %v332_v17  ;;  %1100 = vmatpush.msra.mxu3 %v746_v38 }
 0x11a   :  { %858 = vst.msk [vmem:[#allocation2 + $0x58] sm:$0xff] %vm24_vm7, %v1545_v62  ;;  %454 = vperm.xlu2 %1142, %v1545_v62   ;;  %650 = vperm.xlu0 %1140, %v1547_v1   ;;  %v360_v50 = vsub.f32 %v1540_v56, %v1545_v62  ;;  %v745_v56 = vld [vmem:[%s1868_s2 + $0x58] sm:$0xff]  ;;  %v361_v62 = vsub.f32 %v1520_v42, %v1529_v54 }
 0x11b   :  { %862 = vst.msk [vmem:[#allocation2 + $0x78] sm:$0xff] %vm24_vm7, %v1550_v2  ;;  %459 = vperm.xlu1 %1141, %v1529_v54   ;;  %754 = vmatpush.msra.mxu0 %v745_v56 }
 0x11c   :  { %v387_v30 = vmul.f32 1.442695, %v360_v50  ;;  %v1624_v55 = vpop.eup %1163  ;;  %1101 = vmatpush.msra.mxu1 %v745_v56  ;;  %1102 = vmatpush.msra.mxu2 %v745_v56  ;;  %v389_v42 = vmul.f32 1.442695, %v361_v62 }
 0x11d   :  { %v1629_v58 = vpop.eup %1165  ;;  %755 = vmatpush.msra.mxu0 %v744_v61  ;;  %1103 = vmatpush.msra.mxu3 %v745_v56 }
 0x11e   :  { %1169 = vpow2.f32 %v387_v30  ;;  %1104 = vmatpush.msra.mxu1 %v744_v61  ;;  %1105 = vmatpush.msra.mxu2 %v744_v61 }
 0x11f   :  { %v330_v12 = vpop.xlane.xlu2 %329  ;;  %756 = vmatpush.msra.mxu0 %v743_v6  ;;  %1106 = vmatpush.msra.mxu3 %v744_v61  ;;  %1171 = vpow2.f32 %v389_v42 }
 0x120   :  { %v1567_v19 = vmax.f32 %v1564_v11, %v330_v12  ;;  %1107 = vmatpush.msra.mxu1 %v743_v6  ;;  %1108 = vmatpush.msra.mxu2 %v743_v6  ;;  %v364_v12 = vsub.f32 %v1542_v57, %v1550_v2  ;;  %v738_v57 = vld [vmem:[%s1868_s2 + $0x20] sm:$0xff] }
 0x121   :  { %757 = vmatpush.msra.mxu0 %v742_v8  ;;  %1109 = vmatpush.msra.mxu3 %v743_v6 }
 0x122   :  { %861 = vst.msk [vmem:[#allocation2 + $0x70] sm:$0xff] %vm24_vm7, %v1567_v19  ;;  %469 = vperm.xlu2 %1142, %v1567_v19   ;;  %660 = vperm.xlu0 %1140, %v1569_v20   ;;  %v363_v17 = vsub.f32 %v1564_v11, %v1567_v19  ;;  %v1650_v11 = vpop.eup %1167  ;;  %v395_v19 = vmul.f32 1.442695, %v364_v12 }
 0x123   :  { %474 = vperm.xlu1 %1141, %v1550_v2   ;;  %758 = vmatpush.msra.mxu0 %v741_v9 }
 0x124   :  { %v393_v54 = vmul.f32 1.442695, %v363_v17  ;;  %v1652_v0 = vpop.eup %1169  ;;  %1110 = vmatpush.msra.mxu1 %v742_v8  ;;  %1111 = vmatpush.msra.mxu2 %v742_v8 }
 0x125   :  { %759 = vmatpush.msra.mxu0 %v740_v7  ;;  %1112 = vmatpush.msra.mxu3 %v742_v8  ;;  %v1667_v2 = vpop.eup %1171 }
 0x126   :  { %1173 = vpow2.f32 %v393_v54  ;;  %1113 = vmatpush.msra.mxu1 %v741_v9  ;;  %1114 = vmatpush.msra.mxu2 %v741_v9 }
 0x127   :  { %760 = vmatpush.msra.mxu0 %v739_v13  ;;  %1115 = vmatpush.msra.mxu3 %v741_v9  ;;  %1175 = vpow2.f32 %v395_v19 }
 0x128   :  { %1116 = vmatpush.msra.mxu1 %v740_v7  ;;  %1117 = vmatpush.msra.mxu2 %v740_v7 }
 0x129   :  { %761 = vmatpush.msra.mxu0 %v738_v57  ;;  %1118 = vmatpush.msra.mxu3 %v740_v7 }
 0x12a   :  { %640 = vperm.xlu2 %1142, %v1582_v16   ;;  %675 = vperm.xlu0 %1140, %v1584_v31  }
 0x12b   :  { %645 = vperm.xlu1 %1141, %v1586_v32   ;;  %1119 = vmatpush.msra.mxu1 %v739_v13 }
 0x12c   :  { %v1669_v15 = vpop.eup %1173  ;;  %762 = vmatpush.msra.mxu0 %v737_v10  ;;  %1120 = vmatpush.msra.mxu2 %v739_v13 }
 0x12d   :  { %1122 = vmatpush.msra.mxu1 %v738_v57  ;;  %1121 = vmatpush.msra.mxu3 %v739_v13  ;;  %v1685_v22 = vpop.eup %1175 }
 0x12e   :  { %763 = vmatpush.msra.mxu0 %v736_v14  ;;  %1123 = vmatpush.msra.mxu2 %v738_v57 }
 0x12f   :  { %1125 = vmatpush.msra.mxu1 %v737_v10  ;;  %1124 = vmatpush.msra.mxu3 %v738_v57 }
 0x130   :  { %764 = vmatpush.msra.mxu0 %v735_v21  ;;  %1126 = vmatpush.msra.mxu2 %v737_v10 }
 0x131   :  { %1128 = vmatpush.msra.mxu1 %v736_v14  ;;  %1127 = vmatpush.msra.mxu3 %v737_v10 }
 0x132   :  { %655 = vperm.xlu2 %1142, %v1600_v34   ;;  %690 = vperm.xlu0 %1140, %v1602_v40  }
 0x133   :  { %665 = vperm.xlu1 %1141, %v1604_v47   ;;  %765 = vmatpush.msra.mxu0 %v734_v23 }
 0x134   :  { %1129 = vmatpush.msra.mxu2 %v736_v14  ;;  %1131 = vmatpush.msra.mxu1 %v735_v21 }
 0x135   :  { %1130 = vmatpush.msra.mxu3 %v736_v14 }
 0x136   :  { %1132 = vmatpush.msra.mxu2 %v735_v21  ;;  %1134 = vmatpush.msra.mxu1 %v734_v23 }
 0x137   :  { %1133 = vmatpush.msra.mxu3 %v735_v21 }
 0x138   :  { %1135 = vmatpush.msra.mxu2 %v734_v23 }
 0x139   :  { %1136 = vmatpush.msra.mxu3 %v734_v23 }
 0x13a   :  { %705 = vperm.xlu0 %1140, %v1624_v55   ;;  %670 = vperm.xlu2 %1142, %v1619_v53  }
 0x13b   :  { %680 = vperm.xlu1 %1141, %v1629_v58  }
 0x142   :  { %685 = vperm.xlu2 %1142, %v1650_v11  }
 0x143   :  { %695 = vperm.xlu1 %1141, %v1652_v0  }
 0x14a   :  { %700 = vperm.xlu2 %1142, %v1667_v2  }
 0x14b   :  { %710 = vperm.xlu1 %1141, %v1669_v15  }
 0x152   :  { %715 = vperm.xlu2 %1142, %v1685_v22  }
 0x154   :  { %v405_v37 = vpop.permute.xlu2 %404 }
 0x155   :  { %v478_v41 = vsub.f32 %v1355_v49, %v405_v37 }
 0x157   :  { %v495_v50 = vmul.f32 1.442695, %v478_v41 }
 0x164   :  { %v400_v28 = vpop.permute.xlu1 %399  ;;  %v425_v29 = vpop.permute.xlu2 %424 }
 0x165   :  { %v477_v33 = vsub.f32 %v1344_v36, %v400_v28  ;;  %v410_v18 = vpop.permute.xlu0 %409  ;;  %v482_v38 = vsub.f32 %v1392_v24, %v425_v29 }
 0x166   :  { %v479_v27 = vsub.f32 %v1342_v35, %v410_v18 }
 0x167   :  { %v493_v39 = vmul.f32 1.442695, %v477_v33  ;;  %v503_v35 = vmul.f32 1.442695, %v482_v38 }
 0x168   :  { %v497_v48 = vmul.f32 1.442695, %v479_v27 }
 0x169   :  { %1177 = vpow2.f32 %v493_v39 }
 0x16a   :  { %1179 = vpow2.f32 %v497_v48 }
 0x16b   :  { %1181 = vpow2.f32 %v495_v50 }
 0x16c   :  { %v440_v51 = vpop.permute.xlu2 %439 }
 0x16d   :  { %v485_v52 = vsub.f32 %v1412_v43, %v440_v51  ;;  %v420_v30 = vpop.permute.xlu0 %419 }
 0x16e   :  { %v481_v56 = vsub.f32 %v1350_v45, %v420_v30 }
 0x16f   :  { %v1178_v61 = vpop.eup %1177  ;;  %v509_v36 = vmul.f32 1.442695, %v485_v52 }
 0x170   :  { %v501_v62 = vmul.f32 1.442695, %v481_v56  ;;  %766 = vmatmul.f32.vlgmr.msra.gmra.mxu0 %v1178_v61  ;;  %557 = vadd.xlane.f32.xlu0 %v1178_v61  ;;  %v1180_v49 = vpop.eup %1179 }
 0x171   :  { %1183 = vpow2.f32 %v509_v36  ;;  %v1182_v8 = vpop.eup %1181 }
 0x172   :  { %1185 = vpow2.f32 %v501_v62 }
 0x173   :  { %1187 = vpow2.f32 %v503_v35 }
 0x174   :  { %v415_v17 = vpop.permute.xlu1 %414  ;;  %v455_v54 = vpop.permute.xlu2 %454 }
 0x175   :  { %v480_v6 = vsub.f32 %v1372_v4, %v415_v17  ;;  %561 = vadd.xlane.f32.xlu1 %v1180_v49  ;;  %v435_v43 = vpop.permute.xlu0 %434  ;;  %v488_v4 = vsub.f32 %v1430_v59, %v455_v54 }
 0x176   :  { %v484_v7 = vsub.f32 %v1370_v3, %v435_v43 }
 0x177   :  { %v1184_v24 = vpop.eup %1183  ;;  %v499_v42 = vmul.f32 1.442695, %v480_v6  ;;  %v515_v21 = vmul.f32 1.442695, %v488_v4 }
 0x178   :  { %v1186_v45 = vpop.eup %1185  ;;  %769 = vmatmul.f32.gmra.mxu0 %v1182_v8  ;;  %790 = vmatmul.f32.vlgmr.msra.gmra.mxu2 %v1184_v24  ;;  %v507_v10 = vmul.f32 1.442695, %v484_v7 }
 0x179   :  { %1189 = vpow2.f32 %v499_v42  ;;  %778 = vmatmul.f32.vlgmr.msra.gmra.mxu1 %v1186_v45  ;;  %v1188_v9 = vpop.eup %1187 }
 0x17b   :  { %559 = vadd.xlane.f32.xlu2 %v1182_v8 }
 0x17c   :  { %v470_v23 = vpop.permute.xlu2 %469 }
 0x17d   :  { %v430_v12 = vpop.permute.xlu1 %429  ;;  %567 = vadd.xlane.f32.xlu1 %v1188_v9  ;;  %v450_v57 = vpop.permute.xlu0 %449  ;;  %v491_v59 = vsub.f32 %v1436_v63, %v470_v23 }
 0x17e   :  { %v483_v13 = vsub.f32 %v1374_v5, %v430_v12  ;;  %v487_v3 = vsub.f32 %v1395_v25, %v450_v57  ;;  %v525_v12 = vld [vmem:[#allocation3] sm:$0xff] }
 0x17f   :  { %v1190_v19 = vpop.eup %1189  ;;  %v521_v39 = vmul.f32 1.442695, %v491_v59  ;;  %v530_v59 = vld [vmem:[#allocation3 + $0x28] sm:$0xff] }
 0x180   :  { %v505_v14 = vmul.f32 1.442695, %v483_v13  ;;  %563 = vadd.xlane.f32.xlu0 %v1190_v19  ;;  %772 = vmatmul.f32.gmra.mxu0 %v1180_v49  ;;  %v513_v29 = vmul.f32 1.442695, %v487_v3  ;;  %v541_v13 = vmul.f32 %v1582_v16, %v525_v12  ;;  %v536_v12 = vld [vmem:[#allocation3 + $0x58] sm:$0xff] }
 0x181   :  { %781 = vmatmul.f32.gmra.mxu1 %v1188_v9 }
 0x182   :  { %1191 = vpow2.f32 %v505_v14 }
 0x183   :  { %565 = vadd.xlane.f32.xlu2 %v1186_v45  ;;  %1193 = vpow2.f32 %v507_v10  ;;  %v527_v10 = vld [vmem:[#allocation3 + $0x10] sm:$0xff] }
 0x184   :  { %1195 = vpow2.f32 %v515_v21  ;;  %v1706_v35 = vpop.permute.xlu2 %640  ;;  %v543_v21 = vmul.f32 %v1547_v1, %v527_v10 }
 0x185   :  { %v445_v37 = vpop.permute.xlu1 %444  ;;  %573 = vadd.xlane.f32.xlu1 %v1184_v24  ;;  %v465_v18 = vpop.permute.xlu0 %464 }
 0x186   :  { %v486_v5 = vsub.f32 %v1397_v26, %v445_v37  ;;  %v490_v25 = vsub.f32 %v1415_v44, %v465_v18  ;;  %v526_v37 = vld [vmem:[#allocation3 + $0x8] sm:$0xff]  ;;  %v528_v18 = vld [vmem:[#allocation3 + $0x18] sm:$0xff] }
 0x187   :  { %v544_v1 = vmul.f32 %v1600_v34, %v528_v18  ;;  %v531_v34 = vld [vmem:[#allocation3 + $0x30] sm:$0xff] }
 0x188   :  { %v1192_v28 = vpop.eup %1191  ;;  %v511_v33 = vmul.f32 1.442695, %v486_v5  ;;  %775 = vmatmul.f32.gmra.mxu0 %v1190_v19  ;;  %v519_v50 = vmul.f32 1.442695, %v490_v25  ;;  %v542_v5 = vmul.f32 %v1586_v32, %v526_v37  ;;  %v534_v37 = vld [vmem:[#allocation3 + $0x48] sm:$0xff] }
 0x189   :  { %569 = vadd.xlane.f32.xlu0 %v1192_v28  ;;  %784 = vmatmul.f32.gmra.mxu1 %v1192_v28  ;;  %v1194_v27 = vpop.eup %1193 }
 0x18a   :  { %1197 = vpow2.f32 %v511_v33  ;;  %v1196_v41 = vpop.eup %1195  ;;  %v546_v33 = vmul.f32 %v1604_v47, %v530_v59 }
 0x18b   :  { %571 = vadd.xlane.f32.xlu2 %v1194_v27  ;;  %1199 = vpow2.f32 %v513_v29 }
 0x18c   :  { %1201 = vpow2.f32 %v521_v39  ;;  %v1712_v17 = vpop.permute.xlu2 %655 }
 0x18d   :  { %v460_v48 = vpop.permute.xlu1 %459  ;;  %579 = vadd.xlane.f32.xlu1 %v1196_v41  ;;  %v1704_v62 = vpop.permute.xlu0 %650 }
 0x18e   :  { %v489_v26 = vsub.f32 %v1417_v46, %v460_v48 }
 0x190   :  { %v1198_v63 = vpop.eup %1197  ;;  %v517_v51 = vmul.f32 1.442695, %v489_v26 }
 0x191   :  { %575 = vadd.xlane.f32.xlu0 %v1198_v63  ;;  %787 = vmatmul.f32.gmra.mxu1 %v1194_v27  ;;  %v1200_v52 = vpop.eup %1199 }
 0x192   :  { %1203 = vpow2.f32 %v517_v51  ;;  %793 = vmatmul.f32.gmra.mxu2 %v1198_v63  ;;  %v1202_v30 = vpop.eup %1201  ;;  %v533_v63 = vld [vmem:[#allocation3 + $0x40] sm:$0xff] }
 0x193   :  { %577 = vadd.xlane.f32.xlu2 %v1200_v52  ;;  %1205 = vpow2.f32 %v519_v50 }
 0x194   :  { %v1718_v8 = vpop.permute.xlu2 %670 }
 0x195   :  { %v475_v38 = vpop.permute.xlu1 %474  ;;  %585 = vadd.xlane.f32.xlu1 %v1202_v30 }
 0x196   :  { %v492_v44 = vsub.f32 %v1432_v60, %v475_v38  ;;  %v1710_v60 = vpop.permute.xlu0 %660 }
 0x198   :  { %v1204_v56 = vpop.eup %1203  ;;  %v523_v61 = vmul.f32 1.442695, %v492_v44 }
 0x199   :  { %581 = vadd.xlane.f32.xlu0 %v1204_v56  ;;  %802 = vmatmul.f32.vlgmr.msra.gmra.mxu3 %v1204_v56  ;;  %v1206_v46 = vpop.eup %1205 }
 0x19a   :  { %1207 = vpow2.f32 %v523_v61  ;;  %796 = vmatmul.f32.gmra.mxu2 %v1200_v52  ;;  %v549_v52 = vmul.f32 %v1629_v58, %v533_v63  ;;  %v532_v61 = vld [vmem:[#allocation3 + $0x38] sm:$0xff] }
 0x19b   :  { %583 = vadd.xlane.f32.xlu2 %v1206_v46  ;;  %v548_v58 = vmul.f32 %v1584_v31, %v532_v61  ;;  %v535_v31 = vld [vmem:[#allocation3 + $0x50] sm:$0xff] }
 0x19c   :  { %v1724_v45 = vpop.permute.xlu2 %685 }
 0x19d   :  { %v1708_v49 = vpop.permute.xlu1 %645 }
 0x19e   :  { %v1716_v43 = vpop.permute.xlu0 %675 }
 0x1a0   :  { %v1208_v36 = vpop.eup %1207 }
 0x1a1   :  { %587 = vadd.xlane.f32.xlu0 %v1208_v36  ;;  %805 = vmatmul.f32.gmra.mxu3 %v1206_v46 }
 0x1a2   :  { %799 = vmatmul.f32.gmra.mxu2 %v1196_v41  ;;  %v529_v41 = vld [vmem:[#allocation3 + $0x20] sm:$0xff] }
 0x1a3   :  { %v545_v50 = vmul.f32 %v1569_v20, %v529_v41  ;;  %v547_v20 = vmul.f32 %v1619_v53, %v531_v34 }
 0x1a4   :  { %v1730_v7 = vpop.permute.xlu2 %700 }
 0x1a5   :  { %v1714_v6 = vpop.permute.xlu1 %665 }
 0x1a6   :  { %v1722_v42 = vpop.permute.xlu0 %690 }
 0x1a9   :  { %808 = vmatmul.f32.gmra.mxu3 %v1202_v30 }
 0x1ac   :  { %v1735_v14 = vpop.permute.xlu2 %715 }
 0x1ad   :  { %v1720_v24 = vpop.permute.xlu1 %680 }
 0x1ae   :  { %v1728_v9 = vpop.permute.xlu0 %705 }
 0x1b1   :  { %811 = vmatmul.f32.gmra.mxu3 %v1208_v36 }
 0x1b5   :  { %v1726_v54 = vpop.permute.xlu1 %695 }
 0x1bd   :  { %v1732_v4 = vpop.permute.xlu1 %710 }
 0x1e3   :  { %v558_v19 = vpop.xlane.xlu0 %557 }
 0x1e4   :  { %v589_v57 = vadd.f32 %v558_v19, %v541_v13 }
 0x1e6   :  { %606 = vst.msk [vmem:[#allocation3] sm:$0xff] %vm24_vm7, %v589_v57 }
 0x1e8   :  { %v562_v23 = vpop.xlane.xlu1 %561 }
 0x1e9   :  { %v591_v3 = vadd.f32 %v562_v23, %v543_v21  ;;  %v552_v23 = vmul.f32 %v1652_v0, %v536_v12  ;;  %v539_v0 = vld [vmem:[#allocation3 + $0x70] sm:$0xff] }
 0x1eb   :  { %608 = vst.msk [vmem:[#allocation3 + $0x10] sm:$0xff] %vm24_vm7, %v591_v3 }
 0x1ed   :  { %v882_v28 = vld [vmem:[#allocation3] sm:$0xff] }
 0x1ee   :  { %v560_v29 = vpop.xlane.xlu2 %559  ;;  %1209 = vrcp.f32 %v882_v28 }
 0x1ef   :  { %v590_v16 = vadd.f32 %v560_v29, %v542_v5  ;;  %v550_v29 = vmul.f32 %v1650_v11, %v534_v37  ;;  %v537_v11 = vld [vmem:[#allocation3 + $0x60] sm:$0xff] }
 0x1f0   :  { %v568_v27 = vpop.xlane.xlu1 %567 }
 0x1f1   :  { %607 = vst.msk [vmem:[#allocation3 + $0x8] sm:$0xff] %vm24_vm7, %v590_v16  ;;  %v594_v39 = vadd.f32 %v568_v27, %v546_v33  ;;  %v551_v27 = vmul.f32 %v1602_v40, %v535_v31  ;;  %v538_v40 = vld [vmem:[#allocation3 + $0x68] sm:$0xff] }
 0x1f2   :  { %v884_v25 = vld [vmem:[#allocation3 + $0x10] sm:$0xff]  ;;  %v554_v34 = vmul.f32 %v1624_v55, %v538_v40 }
 0x1f3   :  { %611 = vst.msk [vmem:[#allocation3 + $0x28] sm:$0xff] %vm24_vm7, %v594_v39  ;;  %v564_v48 = vpop.xlane.xlu0 %563  ;;  %1211 = vrcp.f32 %v884_v25 }
 0x1f4   :  { %v1210_v32 = vpop.eup %1209  ;;  %v592_v26 = vadd.f32 %v564_v48, %v544_v1  ;;  %v555_v48 = vmul.f32 %v1669_v15, %v539_v0 }
 0x1f5   :  { %916 = vperm.xlu0 %1140, %v1210_v32  }
 0x1f6   :  { %609 = vst.msk [vmem:[#allocation3 + $0x18] sm:$0xff] %vm24_vm7, %v592_v26  ;;  %v566_v47 = vpop.xlane.xlu2 %565  ;;  %v779_v31 = vpop.f32.mrf.mxu1 }
 0x1f7   :  { %v593_v51 = vadd.f32 %v566_v47, %v545_v50 }
 0x1f8   :  { %v574_v30 = vpop.xlane.xlu1 %573  ;;  %v883_v38 = vld [vmem:[#allocation3 + $0x8] sm:$0xff] }
 0x1f9   :  { %v1212_v44 = vpop.eup %1211  ;;  %610 = vst.msk [vmem:[#allocation3 + $0x20] sm:$0xff] %vm24_vm7, %v593_v51  ;;  %v597_v56 = vadd.f32 %v574_v30, %v549_v52  ;;  %1213 = vrcp.f32 %v883_v38  ;;  %v553_v51 = vmul.f32 %v1667_v2, %v537_v11 }
 0x1fa   :  { %926 = vperm.xlu2 %1142, %v1212_v44   ;;  %v887_v46 = vld [vmem:[#allocation3 + $0x28] sm:$0xff] }
 0x1fb   :  { %614 = vst.msk [vmem:[#allocation3 + $0x40] sm:$0xff] %vm24_vm7, %v597_v56  ;;  %1215 = vrcp.f32 %v887_v46  ;;  %v540_v46 = vld [vmem:[#allocation3 + $0x78] sm:$0xff] }
 0x1fc   :  { %v570_v36 = vpop.xlane.xlu0 %569  ;;  %v556_v12 = vmul.f32 %v1685_v22, %v540_v46  ;;  %v719_v46 = vmul.f32 0.0, %v1708_v49 }
 0x1fd   :  { %v595_v13 = vadd.f32 %v570_v36, %v547_v20  ;;  %v885_v19 = vld [vmem:[#allocation3 + $0x18] sm:$0xff] }
 0x1fe   :  { %v572_v57 = vpop.xlane.xlu2 %571  ;;  %1217 = vrcp.f32 %v885_v19 }
 0x1ff   :  { %v1214_v10 = vpop.eup %1213  ;;  %612 = vst.msk [vmem:[#allocation3 + $0x30] sm:$0xff] %vm24_vm7, %v595_v13  ;;  %v596_v21 = vadd.f32 %v572_v57, %v548_v58 }
 0x200   :  { %v580_v3 = vpop.xlane.xlu1 %579  ;;  %921 = vperm.xlu1 %1141, %v1214_v10   ;;  %v886_v59 = vld [vmem:[#allocation3 + $0x20] sm:$0xff] }
 0x201   :  { %v1216_v53 = vpop.eup %1215  ;;  %613 = vst.msk [vmem:[#allocation3 + $0x38] sm:$0xff] %vm24_vm7, %v596_v21  ;;  %v600_v5 = vadd.f32 %v580_v3, %v552_v23  ;;  %1219 = vrcp.f32 %v886_v59  ;;  %v767_v59 = vpop.f32.mrf.mxu0 }
 0x202   :  { %941 = vperm.xlu2 %1142, %v1216_v53   ;;  %v890_v28 = vld [vmem:[#allocation3 + $0x40] sm:$0xff] }
 0x203   :  { %617 = vst.msk [vmem:[#allocation3 + $0x58] sm:$0xff] %vm24_vm7, %v600_v5  ;;  %1221 = vrcp.f32 %v890_v28  ;;  %v791_v5 = vpop.f32.mrf.mxu2 }
 0x204   :  { %v1218_v16 = vpop.eup %1217  ;;  %v576_v33 = vpop.xlane.xlu0 %575 }
 0x205   :  { %v598_v18 = vadd.f32 %v576_v33, %v550_v29  ;;  %931 = vperm.xlu0 %1140, %v1218_v16   ;;  %v720_v29 = vmul.f32 0.0, %v1704_v62  ;;  %v1772_v33 = vld [vmem:[%s1869_s4] ss:$0 sm:$0xff] }
 0x206   :  { %v578_v39 = vpop.xlane.xlu2 %577  ;;  %v888_v1 = vld [vmem:[#allocation3 + $0x30] sm:$0xff] }
 0x207   :  { %v1220_v41 = vpop.eup %1219  ;;  %615 = vst.msk [vmem:[#allocation3 + $0x48] sm:$0xff] %vm24_vm7, %v598_v18  ;;  %v599_v25 = vadd.f32 %v578_v39, %v551_v27  ;;  %1223 = vrcp.f32 %v888_v1  ;;  %v782_v1 = vpop.f32.mrf.mxu1 }
 0x208   :  { %v586_v32 = vpop.xlane.xlu1 %585  ;;  %936 = vperm.xlu1 %1141, %v1220_v41   ;;  %v889_v26 = vld [vmem:[#allocation3 + $0x38] sm:$0xff]  ;;  %v723_v41 = vmul.f32 0.0, %v1714_v6 }
 0x209   :  { %v1222_v63 = vpop.eup %1221  ;;  %616 = vst.msk [vmem:[#allocation3 + $0x50] sm:$0xff] %vm24_vm7, %v599_v25  ;;  %v603_v50 = vadd.f32 %v586_v32, %v555_v48  ;;  %1225 = vrcp.f32 %v889_v26  ;;  %v770_v53 = vpop.f32.mrf.mxu0 }
 0x20a   :  { %956 = vperm.xlu2 %1142, %v1222_v63   ;;  %v893_v47 = vld [vmem:[#allocation3 + $0x58] sm:$0xff]  ;;  %v820_v62 = vadd.f32 %v782_v1, %v723_v41  ;;  %v726_v63 = vmul.f32 0.0, %v1720_v24 }
 0x20b   :  { %620 = vst.msk [vmem:[#allocation3 + $0x70] sm:$0xff] %vm24_vm7, %v603_v50  ;;  %1227 = vrcp.f32 %v893_v47  ;;  %v718_v50 = vmul.f32 0.0, %v1706_v35 }
 0x20c   :  { %v582_v52 = vpop.xlane.xlu0 %581  ;;  %v823_v6 = vadd.f32 %v791_v5, %v726_v63 }
 0x20d   :  { %v1224_v15 = vpop.eup %1223  ;;  %v601_v30 = vadd.f32 %v582_v52, %v553_v51  ;;  %v815_v51 = vadd.f32 %v767_v59, %v718_v50 }
 0x20e   :  { %946 = vperm.xlu0 %1140, %v1224_v15   ;;  %v584_v38 = vpop.xlane.xlu2 %583  ;;  %v891_v44 = vld [vmem:[#allocation3 + $0x48] sm:$0xff] }
 0x20f   :  { %v1226_v56 = vpop.eup %1225  ;;  %618 = vst.msk [vmem:[#allocation3 + $0x60] sm:$0xff] %vm24_vm7, %v601_v30  ;;  %v602_v61 = vadd.f32 %v584_v38, %v554_v34  ;;  %1229 = vrcp.f32 %v891_v44  ;;  %v729_v44 = vmul.f32 0.0, %v1726_v54  ;;  %v732_v54 = vmul.f32 0.0, %v1732_v4 }
 0x210   :  { %951 = vperm.xlu1 %1141, %v1226_v56   ;;  %v892_v20 = vld [vmem:[#allocation3 + $0x50] sm:$0xff] }
 0x211   :  { %v1228_v36 = vpop.eup %1227  ;;  %619 = vst.msk [vmem:[#allocation3 + $0x68] sm:$0xff] %vm24_vm7, %v602_v61  ;;  %1231 = vrcp.f32 %v892_v20  ;;  %v773_v28 = vpop.f32.mrf.mxu0 }
 0x212   :  { %971 = vperm.xlu2 %1142, %v1228_v36   ;;  %v896_v2 = vld [vmem:[#allocation3 + $0x70] sm:$0xff]  ;;  %v817_v16 = vadd.f32 %v773_v28, %v720_v29 }
 0x213   :  { %1233 = vrcp.f32 %v896_v2  ;;  %v816_v2 = vadd.f32 %v770_v53, %v719_v46 }
 0x214   :  { %v588_v55 = vpop.xlane.xlu0 %587 }
 0x215   :  { %v1230_v13 = vpop.eup %1229  ;;  %v604_v58 = vadd.f32 %v588_v55, %v556_v12  ;;  %v1774_v0 = vpop.f32.mrf.mxu2 }
 0x216   :  { %961 = vperm.xlu0 %1140, %v1230_v13   ;;  %v894_v19 = vld [vmem:[#allocation3 + $0x60] sm:$0xff] }
 0x217   :  { %v1232_v57 = vpop.eup %1231  ;;  %621 = vst.msk [vmem:[#allocation3 + $0x78] sm:$0xff] %vm24_vm7, %v604_v58  ;;  %1235 = vrcp.f32 %v894_v19  ;;  %v721_v19 = vmul.f32 0.0, %v1712_v17 }
 0x218   :  { %966 = vperm.xlu1 %1141, %v1232_v57   ;;  %v895_v10 = vld [vmem:[#allocation3 + $0x68] sm:$0xff]  ;;  %v785_v57 = vpop.f32.mrf.mxu1 }
 0x219   :  { %v1234_v21 = vpop.eup %1233  ;;  %1237 = vrcp.f32 %v895_v10  ;;  %v776_v55 = vpop.f32.mrf.mxu0 }
 0x21a   :  { %986 = vperm.xlu2 %1142, %v1234_v21  }
 0x21c   :  { %v1781_v25 = vpop.f32.mrf.mxu3 }
 0x21d   :  { %v1236_v23 = vpop.eup %1235  ;;  %v1783_v11 = vpop.f32.mrf.mxu2 }
 0x21e   :  { %976 = vperm.xlu0 %1140, %v1236_v23   ;;  %v897_v3 = vld [vmem:[#allocation3 + $0x78] sm:$0xff]  ;;  %v818_v23 = vadd.f32 %v776_v55, %v721_v19 }
 0x21f   :  { %v1238_v37 = vpop.eup %1237  ;;  %1239 = vrcp.f32 %v897_v3  ;;  %v722_v3 = vmul.f32 0.0, %v1710_v60  ;;  %v724_v60 = vmul.f32 0.0, %v1718_v8  ;;  %v728_v8 = vmul.f32 0.0, %v1722_v42 }
 0x220   :  { %981 = vperm.xlu1 %1141, %v1238_v37   ;;  %v788_v29 = vpop.f32.mrf.mxu1 }
 0x221   :  { %v819_v59 = vadd.f32 %v779_v31, %v722_v3  ;;  %v821_v31 = vadd.f32 %v785_v57, %v724_v60  ;;  %v825_v63 = vadd.f32 %v1783_v11, %v728_v8 }
 0x224   :  { %v1791_v52 = vpop.f32.mrf.mxu3 }
 0x225   :  { %v1240_v22 = vpop.eup %1239  ;;  %v800_v34 = vpop.f32.mrf.mxu2 }
 0x226   :  { %991 = vperm.xlu0 %1140, %v1240_v22   ;;  %v826_v56 = vadd.f32 %v800_v34, %v729_v44 }
 0x22c   :  { %v809_v36 = vpop.f32.mrf.mxu3 }
 0x22d   :  { %v829_v13 = vadd.f32 %v809_v36, %v732_v54 }
 0x234   :  { %v812_v44 = vpop.f32.mrf.mxu3 }
 0x254   :  { %v927_v18 = vpop.permute.xlu2 %926 }
 0x255   :  { %v996_v27 = vmul.f32 %v927_v18, %v817_v16  ;;  %v725_v16 = vmul.f32 0.0, %v1716_v43 }
 0x257   :  { %v1016_v39 = vadd.f32 %v1772_v33, %v996_v27  ;;  %v822_v27 = vadd.f32 %v788_v29, %v725_v16 }
 0x259   :  { %1032 = vst [vmem:[%s1870_s5 + $0x10] sm:$0xff] %v1016_v39 }
 0x25c   :  { %v942_v48 = vpop.permute.xlu2 %941 }
 0x25d   :  { %v999_v32 = vmul.f32 %v942_v48, %v820_v62  ;;  %v727_v48 = vmul.f32 0.0, %v1724_v45 }
 0x25f   :  { %v1019_v26 = vadd.f32 %v1772_v33, %v999_v32  ;;  %v824_v32 = vadd.f32 %v1774_v0, %v727_v48  ;;  %v731_v0 = vmul.f32 0.0, %v1728_v9 }
 0x261   :  { %1035 = vst [vmem:[%s1870_s5 + $0x28] sm:$0xff] %v1019_v26 }
 0x264   :  { %v957_v40 = vpop.permute.xlu2 %956 }
 0x265   :  { %v1002_v47 = vmul.f32 %v957_v40, %v823_v6 }
 0x267   :  { %v1022_v15 = vadd.f32 %v1772_v33, %v1002_v47  ;;  %v917_v30 = vpop.permute.xlu0 %916  ;;  %v730_v47 = vmul.f32 0.0, %v1730_v7 }
 0x268   :  { %v994_v38 = vmul.f32 %v917_v30, %v815_v51 }
 0x269   :  { %1038 = vst [vmem:[%s1870_s5 + $0x40] sm:$0xff] %v1022_v15  ;;  %v827_v51 = vadd.f32 %v1781_v25, %v730_v47  ;;  %v828_v15 = vadd.f32 %v1791_v52, %v731_v0 }
 0x26a   :  { %v1014_v24 = vadd.f32 %v1772_v33, %v994_v38 }
 0x26c   :  { %1030 = vst [vmem:[%s1870_s5] sm:$0xff] %v1014_v24  ;;  %v972_v35 = vpop.permute.xlu2 %971  ;;  %v733_v24 = vmul.f32 0.0, %v1735_v14 }
 0x26d   :  { %v1005_v61 = vmul.f32 %v972_v35, %v826_v56 }
 0x26e   :  { %v830_v25 = vadd.f32 %v812_v44, %v733_v24 }
 0x26f   :  { %v1025_v20 = vadd.f32 %v1772_v33, %v1005_v61 }
 0x271   :  { %1041 = vst [vmem:[%s1870_s5 + $0x58] sm:$0xff] %v1025_v20 }
 0x272   :  { %v922_v12 = vpop.permute.xlu1 %921 }
 0x273   :  { %v995_v58 = vmul.f32 %v922_v12, %v816_v2 }
 0x274   :  { %v987_v10 = vpop.permute.xlu2 %986 }
 0x275   :  { %v1015_v49 = vadd.f32 %v1772_v33, %v995_v58  ;;  %v1008_v21 = vmul.f32 %v987_v10, %v829_v13 }
 0x277   :  { %1031 = vst [vmem:[%s1870_s5 + $0x8] sm:$0xff] %v1015_v49  ;;  %v1028_v4 = vadd.f32 %v1772_v33, %v1008_v21  ;;  %v932_v37 = vpop.permute.xlu0 %931 }
 0x278   :  { %v997_v22 = vmul.f32 %v932_v37, %v818_v23 }
 0x279   :  { %1044 = vst [vmem:[%s1870_s5 + $0x70] sm:$0xff] %v1028_v4 }
 0x27a   :  { %v1017_v17 = vadd.f32 %v1772_v33, %v997_v22  ;;  %v937_v53 = vpop.permute.xlu1 %936 }
 0x27b   :  { %v998_v5 = vmul.f32 %v937_v53, %v819_v59 }
 0x27c   :  { %1033 = vst [vmem:[%s1870_s5 + $0x18] sm:$0xff] %v1017_v17 }
 0x27d   :  { %v1018_v28 = vadd.f32 %v1772_v33, %v998_v5 }
 0x27f   :  { %1034 = vst [vmem:[%s1870_s5 + $0x20] sm:$0xff] %v1018_v28 }
 0x280   :  { %v947_v18 = vpop.permute.xlu0 %946 }
 0x281   :  { %v1000_v39 = vmul.f32 %v947_v18, %v821_v31 }
 0x282   :  { %v952_v1 = vpop.permute.xlu1 %951 }
 0x283   :  { %v1020_v41 = vadd.f32 %v1772_v33, %v1000_v39  ;;  %v1001_v62 = vmul.f32 %v952_v1, %v822_v27 }
 0x285   :  { %1036 = vst [vmem:[%s1870_s5 + $0x30] sm:$0xff] %v1020_v41  ;;  %v1021_v43 = vadd.f32 %v1772_v33, %v1001_v62 }
 0x287   :  { %1037 = vst [vmem:[%s1870_s5 + $0x38] sm:$0xff] %v1021_v43 }
 0x288   :  { %v962_v26 = vpop.permute.xlu0 %961 }
 0x289   :  { %v1003_v6 = vmul.f32 %v962_v26, %v824_v32 }
 0x28a   :  { %v967_v50 = vpop.permute.xlu1 %966 }
 0x28b   :  { %v1023_v45 = vadd.f32 %v1772_v33, %v1003_v6  ;;  %v1004_v40 = vmul.f32 %v967_v50, %v825_v63 }
 0x28d   :  { %1039 = vst [vmem:[%s1870_s5 + $0x48] sm:$0xff] %v1023_v45  ;;  %v1024_v42 = vadd.f32 %v1772_v33, %v1004_v40 }
 0x28f   :  { %1040 = vst [vmem:[%s1870_s5 + $0x50] sm:$0xff] %v1024_v42 }
 0x290   :  { %v977_v11 = vpop.permute.xlu0 %976 }
 0x291   :  { %v1006_v30 = vmul.f32 %v977_v11, %v827_v51 }
 0x292   :  { %v982_v34 = vpop.permute.xlu1 %981 }
 0x293   :  { %v1026_v7 = vadd.f32 %v1772_v33, %v1006_v30  ;;  %v1007_v38 = vmul.f32 %v982_v34, %v828_v15 }
 0x295   :  { %1042 = vst [vmem:[%s1870_s5 + $0x60] sm:$0xff] %v1026_v7  ;;  %v1027_v9 = vadd.f32 %v1772_v33, %v1007_v38 }
 0x297   :  { %1043 = vst [vmem:[%s1870_s5 + $0x68] sm:$0xff] %v1027_v9 }
 0x298   :  { %v992_v52 = vpop.permute.xlu0 %991 }
 0x299   :  { %v1009_v56 = vmul.f32 %v992_v52, %v830_v25 }
 0x29b   :  { %v1029_v35 = vadd.f32 %v1772_v33, %v1009_v56 }
 0x29d   :  { %1045 = vst [vmem:[%s1870_s5 + $0x78] sm:$0xff] %v1029_v35 }

</bundles_post_ra>
